<compile_context>
chip_gen: v6e
topology: v6e:2x2x1
jax: 0.10.0
libtpu: 0.0.40
codegen_flags: <defaults>
</compile_context>

<pallas_src>
import math
import functools

import jax
import jax.numpy as jnp
from jax.experimental import pallas as pl
from jax.experimental.pallas import tpu as pltpu


# ----------------------------- model config ---------------------------------
D_IN = 8             # tabular feature dim (d_in == d_out of MLPDiffusion)
DIM_T = 128          # dim_t (kept small for the demo; PyTorch default is 1024)
D_HID = 128          # rtdl_params['d_layers'] = [D_HID, D_HID]
NUM_CLASSES = 4      # is_y_cond=True, num_classes>0 -> nn.Embedding(num_classes, dim_t)
NUM_CLASSES_PAD = 8  # class axis padded to a full sublane group for the one-hot matmul
MAX_PERIOD = 10000.0
DIM_PAD = 128        # lane-dense padded output width; out[:, :D_IN] is the real output
COMPUTE_DTYPE = jnp.bfloat16   # matmul-input / output-store dtype (MXU accumulates in f32)


# ----------------------------- Pallas kernel ---------------------------------
def mlpdiffusion_kernel(
    x_ref, t_ref, y_ref,
    freqs_ref, lab_ref,
    wt1c_ref, wt1s_ref, bt1_ref,
    wt2_ref, bt2_ref,
    wp_ref, bp_ref,
    w0_ref, b0_ref,
    w1_ref, b1_ref,
    wh_ref, bh_ref,
    out_ref,
):
    f32 = jnp.float32
    cdt = wt2_ref.dtype                      # matmul-input dtype (bf16)

    def silu(z):
        # single EUP push (tanh) + VPU fma; avoids exp + full-precision divide
        # TODO(synk): on v6e/v7x this elementwise region could run in bf16; kept
        # in f32 so the same kernel is v5e-safe (no bf16 VPU/EUP there).
        return 0.5 * z * (jnp.tanh(0.5 * z) + 1.0)

    # --- fused sinusoidal timestep embedding (phase path stays in f32) ---
    args = t_ref[...] * freqs_ref[...]                               # [tile_n, half]
    cos_a = jnp.cos(args)
    sin_a = jnp.sin(args)

    # time_embed: Linear -> SiLU -> Linear
    # (wt1 is pre-split into cos/sin halves so no lane-axis concat is needed.)
    emb = (jnp.dot(cos_a.astype(cdt), wt1c_ref[...], preferred_element_type=f32)
           + jnp.dot(sin_a.astype(cdt), wt1s_ref[...], preferred_element_type=f32)
           + bt1_ref[...])
    emb = silu(emb)
    emb = jnp.dot(emb.astype(cdt), wt2_ref[...], preferred_element_type=f32) + bt2_ref[...]

    # --- fused label conditioning: emb += SiLU(Embedding(y)) ---
    # one-hot matmul on the MXU instead of an unrolled where/mul/add chain.
    # TODO(synk): is_y_cond=True / num_classes>0 branch is baked in (matches config).
    n_cls = lab_ref.shape[0]
    cls_iota = jax.lax.broadcasted_iota(jnp.int32, (1, n_cls), 1)
    onehot = jnp.where(y_ref[...] == cls_iota, 1.0, 0.0).astype(cdt)  # [tile_n, n_cls]
    yemb = jnp.dot(onehot, lab_ref[...], preferred_element_type=f32)
    emb = emb + silu(yemb)

    # --- proj(x) + emb ---  (x arrives pre-cast to bf16)
    h = (jnp.dot(x_ref[...], wp_ref[...], preferred_element_type=f32)
         + bp_ref[...] + emb)

    # --- MLP blocks: Linear -> ReLU -> Dropout (eval-mode identity) ---
    # TODO(synk): dropout is eval-mode identity; training would need pltpu.prng_* masking.
    h = jnp.maximum(jnp.dot(h.astype(cdt), w0_ref[...], preferred_element_type=f32)
                    + b0_ref[...], 0.0)
    h = jnp.maximum(jnp.dot(h.astype(cdt), w1_ref[...], preferred_element_type=f32)
                    + b1_ref[...], 0.0)

    # --- head (zero-padded to a lane-dense 128-wide slab, stored as bf16) ---
    out_ref[...] = (jnp.dot(h.astype(cdt), wh_ref[...], preferred_element_type=f32)
                    + bh_ref[...]).astype(out_ref.dtype)


# ----------------------------- wrapper ----------------------------------------
def prepare_params(params_f32, compute_dtype=COMPUTE_DTYPE):
    """Split / pad / cast f32 master params into the kernel layout."""
    (lab, wt1, bt1, wt2, bt2, wp, bp, w0, b0, w1, b1, wh, bh) = params_f32
    half = wt1.shape[0] // 2
    cd = compute_dtype

    # sinusoid frequency row precomputed on the host (VMEM-resident input)
    freqs = jnp.exp(
        -math.log(MAX_PERIOD) * jnp.arange(half, dtype=jnp.float32) / half
    ).reshape(1, half)

    # class axis padded to a full sublane group (extra rows are zero / never hot)
    lab_pad = jnp.zeros((NUM_CLASSES_PAD, lab.shape[1]), jnp.float32).at[:lab.shape[0]].set(lab)

    # lane-dense head weights: zero-pad output columns to 128 lanes
    wh_pad = jnp.zeros((wh.shape[0], DIM_PAD), jnp.float32).at[:, :wh.shape[1]].set(wh)
    bh_pad = jnp.zeros((1, DIM_PAD), jnp.float32).at[:, :bh.shape[1]].set(bh)

    return (
        freqs,
        lab_pad.astype(cd),
        wt1[:half].astype(cd), wt1[half:].astype(cd), bt1,
        wt2.astype(cd), bt2,
        wp.astype(cd), bp,
        w0.astype(cd), b0,
        w1.astype(cd), b1,
        wh_pad.astype(cd), bh_pad,
    )


def choose_tile_n(n, candidates=(1024, 512, 256, 128)):
    """Largest batch tile that still leaves >= 2 grid tiles (v7x has 2 TCs)."""
    for t in candidates:
        if pl.cdiv(n, t) >= 2:
            return t
    return candidates[-1]


@functools.partial(jax.jit, static_argnames=("tile_n",))
def _mlpdiffusion_forward_impl(x, timesteps, y, kparams, *, tile_n):
    n = x.shape[0]
    grid = (pl.cdiv(n, tile_n),)   # no input padding; ragged tail block is masked

    x_in = x.astype(COMPUTE_DTYPE)                       # bf16: halves x HBM read
    t_in = timesteps.astype(jnp.float32).reshape(n, 1)   # phase path stays f32
    y_in = y.astype(jnp.int32).reshape(n, 1)

    batch_in = [x_in, t_in, y_in]
    weights = list(kparams)

    def tile_spec(a):
        return pl.BlockSpec((tile_n, a.shape[1]), lambda i: (i, 0))

    def resident_spec(a):
        # constant block index -> weight stays VMEM-resident across batch tiles
        return pl.BlockSpec(a.shape, lambda i: (0, 0))

    in_specs = [tile_spec(a) for a in batch_in] + [resident_spec(w) for w in weights]
    out_spec = pl.BlockSpec((tile_n, DIM_PAD), lambda i: (i, 0))

    # advisory cost hint so XLA schedules surrounding ops around the call
    half = DIM_T // 2
    flops = 2 * n * (2 * half * DIM_T + DIM_T * DIM_T + NUM_CLASSES_PAD * DIM_T
                     + D_IN * DIM_T + DIM_T * D_HID + D_HID * D_HID + D_HID * DIM_PAD)
    transcendentals = n * (2 * half + 3 * DIM_T)          # cos/sin + 3 tanh-SiLUs
    weight_bytes = sum(int(w.size) * w.dtype.itemsize for w in weights)
    io_bytes = n * (D_IN * 2 + 4 + 4 + DIM_PAD * 2)       # x bf16, t f32, y i32, out bf16
    cost = pl.CostEstimate(flops=int(flops), transcendentals=int(transcendentals),
                           bytes_accessed=int(weight_bytes + io_bytes))

    out = pl.pallas_call(
        mlpdiffusion_kernel,
        out_shape=jax.ShapeDtypeStruct((n, DIM_PAD), COMPUTE_DTYPE),
        grid_spec=pltpu.PrefetchScalarGridSpec(
            num_scalar_prefetch=0,
            grid=grid,
            in_specs=in_specs,
            out_specs=out_spec,
        ),
        compiler_params=pltpu.CompilerParams(
            dimension_semantics=("parallel",),   # independent batch tiles -> v7x megacore
        ),
        cost_estimate=cost,
    )(*batch_in, *weights)
    return out[:, :D_IN].astype(jnp.float32)


def mlpdiffusion_forward(x, timesteps, y, kparams, tile_n=None):
    if tile_n is None:
        tile_n = choose_tile_n(x.shape[0])
    return _mlpdiffusion_forward_impl(x, timesteps, y, kparams, tile_n=tile_n)


# ----------------------------- reference (pure JAX) ----------------------------
def timestep_embedding(timesteps, dim, max_period=10000):
    half = dim // 2
    freqs = jnp.exp(-math.log(max_period) * jnp.arange(0, half, dtype=jnp.float32) / half)
    args = timesteps.astype(jnp.float32)[:, None] * freqs[None]
    emb = jnp.concatenate([jnp.cos(args), jnp.sin(args)], axis=-1)
    if dim % 2:
        emb = jnp.concatenate([emb, jnp.zeros_like(emb[:, :1])], axis=-1)
    return emb


def reference_forward(x, timesteps, y, params_f32, emulate_dtype=None):
    """PyTorch-equivalent forward (eval mode). If emulate_dtype is set, matmul
    inputs / embedding table / the final store are rounded through that dtype to
    match the kernel's mixed-precision arithmetic."""
    (lab, wt1, bt1, wt2, bt2, wp, bp, w0, b0, w1, b1, wh, bh) = params_f32

    def q(v):
        return v.astype(emulate_dtype).astype(jnp.float32) if emulate_dtype is not None else v

    temb = timestep_embedding(timesteps, DIM_T)
    emb = q(temb) @ q(wt1) + bt1
    emb = emb * jax.nn.sigmoid(emb)
    emb = q(emb) @ q(wt2) + bt2
    yemb = q(lab)[y]
    emb = emb + yemb * jax.nn.sigmoid(yemb)
    h = q(x) @ q(wp) + bp + emb
    h = jnp.maximum(q(h) @ q(w0) + b0, 0.0)
    h = jnp.maximum(q(h) @ q(w1) + b1, 0.0)
    out = q(h) @ q(wh) + bh
    return q(out)   # kernel stores the output slab in the compute dtype


# ----------------------------- main --------------------------------------------
if __name__ == "__main__":
    key = jax.random.PRNGKey(0)
    keys = jax.random.split(key, 20)

    def init(k, shape, scale=0.05):
        return (scale * jax.random.normal(k, shape)).astype(jnp.float32)

    # master params in f32; Linear weights stored pre-transposed as [in, out]
    lab = init(keys[0], (NUM_CLASSES, DIM_T))            # nn.Embedding(num_classes, dim_t)
    wt1 = init(keys[1], (DIM_T, DIM_T)); bt1 = init(keys[2], (1, DIM_T))
    wt2 = init(keys[3], (DIM_T, DIM_T)); bt2 = init(keys[4], (1, DIM_T))
    wp  = init(keys[5], (D_IN, DIM_T));  bp  = init(keys[6], (1, DIM_T))
    w0  = init(keys[7], (DIM_T, D_HID)); b0  = init(keys[8], (1, D_HID))
    w1  = init(keys[9], (D_HID, D_HID)); b1  = init(keys[10], (1, D_HID))
    wh  = init(keys[11], (D_HID, D_IN)); bh  = init(keys[12], (1, D_IN))
    params_f32 = (lab, wt1, bt1, wt2, bt2, wp, bp, w0, b0, w1, b1, wh, bh)

    # small example inputs; batch deliberately not a multiple of the tile size
    N = 200
    x = jax.random.normal(keys[13], (N, D_IN), dtype=jnp.float32)
    timesteps = jax.random.uniform(keys[14], (N,), minval=0.0, maxval=1000.0)
    y = jax.random.randint(keys[15], (N,), 0, NUM_CLASSES)

    kparams = prepare_params(params_f32, COMPUTE_DTYPE)
    out = mlpdiffusion_forward(x, timesteps, y, kparams)
    out = jax.block_until_ready(out)
    assert out.shape == (N, D_IN)

    # tight check against a reference with the same bf16 rounding as the kernel
    ref_bf16 = reference_forward(x, timesteps, y, params_f32, emulate_dtype=COMPUTE_DTYPE)
    assert jnp.allclose(out, ref_bf16, rtol=1e-2, atol=1e-2), "mismatch vs bf16-emulated reference"

    # loose sanity check against the pure-f32 PyTorch-equivalent forward
    ref_f32 = reference_forward(x, timesteps, y, params_f32)
    assert jnp.allclose(out, ref_f32, rtol=3e-2, atol=2e-2), "mismatch vs f32 reference"

    print("KERNEL_OK")
</pallas_src>

<mosaic_0001>
module attributes {stable_mosaic.version = 11 : i64} {
  func.func @mlpdiffusion_kernel(%arg0: i32, %arg1: memref<128x8xbf16, #tpu.memory_space<vmem>>, %arg2: memref<128x1xf32, #tpu.memory_space<vmem>>, %arg3: memref<128x1xi32, #tpu.memory_space<vmem>>, %arg4: memref<1x64xf32, #tpu.memory_space<vmem>>, %arg5: memref<8x128xbf16, #tpu.memory_space<vmem>>, %arg6: memref<64x128xbf16, #tpu.memory_space<vmem>>, %arg7: memref<64x128xbf16, #tpu.memory_space<vmem>>, %arg8: memref<1x128xf32, #tpu.memory_space<vmem>>, %arg9: memref<128x128xbf16, #tpu.memory_space<vmem>>, %arg10: memref<1x128xf32, #tpu.memory_space<vmem>>, %arg11: memref<8x128xbf16, #tpu.memory_space<vmem>>, %arg12: memref<1x128xf32, #tpu.memory_space<vmem>>, %arg13: memref<128x128xbf16, #tpu.memory_space<vmem>>, %arg14: memref<1x128xf32, #tpu.memory_space<vmem>>, %arg15: memref<128x128xbf16, #tpu.memory_space<vmem>>, %arg16: memref<1x128xf32, #tpu.memory_space<vmem>>, %arg17: memref<128x128xbf16, #tpu.memory_space<vmem>>, %arg18: memref<1x128xf32, #tpu.memory_space<vmem>>, %arg19: memref<128x128xbf16, #tpu.memory_space<vmem>>) attributes {dimension_semantics = [#tpu.dimension_semantics<parallel>], iteration_bounds = array<i64: 2>, scalar_prefetch = 0 : i64, scratch_operands = 0 : i64, tpu.core_type = #tpu.core_type<tc>, window_params = [{transform_indices = @transform_0, window_bounds = array<i64: 128, 8>}, {transform_indices = @transform_1, window_bounds = array<i64: 128, 1>}, {transform_indices = @transform_2, window_bounds = array<i64: 128, 1>}, {pipeline_mode = #tpu.pipeline_mode<synchronous>, transform_indices = @transform_3, window_bounds = array<i64: 1, 64>}, {pipeline_mode = #tpu.pipeline_mode<synchronous>, transform_indices = @transform_4, window_bounds = array<i64: 8, 128>}, {pipeline_mode = #tpu.pipeline_mode<synchronous>, transform_indices = @transform_5, window_bounds = array<i64: 64, 128>}, {pipeline_mode = #tpu.pipeline_mode<synchronous>, transform_indices = @transform_6, window_bounds = array<i64: 64, 128>}, {pipeline_mode = #tpu.pipeline_mode<synchronous>, transform_indices = @transform_7, window_bounds = array<i64: 1, 128>}, {pipeline_mode = #tpu.pipeline_mode<synchronous>, transform_indices = @transform_8, window_bounds = array<i64: 128, 128>}, {pipeline_mode = #tpu.pipeline_mode<synchronous>, transform_indices = @transform_9, window_bounds = array<i64: 1, 128>}, {pipeline_mode = #tpu.pipeline_mode<synchronous>, transform_indices = @transform_10, window_bounds = array<i64: 8, 128>}, {pipeline_mode = #tpu.pipeline_mode<synchronous>, transform_indices = @transform_11, window_bounds = array<i64: 1, 128>}, {pipeline_mode = #tpu.pipeline_mode<synchronous>, transform_indices = @transform_12, window_bounds = array<i64: 128, 128>}, {pipeline_mode = #tpu.pipeline_mode<synchronous>, transform_indices = @transform_13, window_bounds = array<i64: 1, 128>}, {pipeline_mode = #tpu.pipeline_mode<synchronous>, transform_indices = @transform_14, window_bounds = array<i64: 128, 128>}, {pipeline_mode = #tpu.pipeline_mode<synchronous>, transform_indices = @transform_15, window_bounds = array<i64: 1, 128>}, {pipeline_mode = #tpu.pipeline_mode<synchronous>, transform_indices = @transform_16, window_bounds = array<i64: 128, 128>}, {pipeline_mode = #tpu.pipeline_mode<synchronous>, transform_indices = @transform_17, window_bounds = array<i64: 1, 128>}, {transform_indices = @transform_18, window_bounds = array<i64: 128, 128>}]} {
    %c0 = arith.constant 0 : index
    %c0_0 = arith.constant 0 : index
    %0 = vector.load %arg2[%c0, %c0_0] : memref<128x1xf32, #tpu.memory_space<vmem>>, vector<128x1xf32>
    %c0_1 = arith.constant 0 : index
    %c0_2 = arith.constant 0 : index
    %1 = vector.load %arg4[%c0_1, %c0_2] : memref<1x64xf32, #tpu.memory_space<vmem>>, vector<1x64xf32>
    %2 = vector.broadcast %0 : vector<128x1xf32> to vector<128x64xf32>
    %3 = vector.broadcast %1 : vector<1x64xf32> to vector<128x64xf32>
    %4 = arith.mulf %2, %3 : vector<128x64xf32>
    %5 = math.cos %4 : vector<128x64xf32>
    %6 = math.sin %4 : vector<128x64xf32>
    %7 = arith.truncf %5 : vector<128x64xf32> to vector<128x64xbf16>
    %c0_3 = arith.constant 0 : index
    %c0_4 = arith.constant 0 : index
    %8 = vector.load %arg6[%c0_3, %c0_4] : memref<64x128xbf16, #tpu.memory_space<vmem>>, vector<64x128xbf16>
    %cst = arith.constant dense<0.000000e+00> : vector<128x128xf32>
    %9 = tpu.matmul %7, %8, %cst {dimension_numbers = #tpu.dot_dimension_numbers<[1], [0], [0], [1], [0, 0, 1, 1], [], []>} : vector<128x64xbf16>, vector<64x128xbf16>, vector<128x128xf32> -> vector<128x128xf32>
    %10 = arith.truncf %6 : vector<128x64xf32> to vector<128x64xbf16>
    %c0_5 = arith.constant 0 : index
    %c0_6 = arith.constant 0 : index
    %11 = vector.load %arg7[%c0_5, %c0_6] : memref<64x128xbf16, #tpu.memory_space<vmem>>, vector<64x128xbf16>
    %cst_7 = arith.constant dense<0.000000e+00> : vector<128x128xf32>
    %12 = tpu.matmul %10, %11, %cst_7 {dimension_numbers = #tpu.dot_dimension_numbers<[1], [0], [0], [1], [0, 0, 1, 1], [], []>} : vector<128x64xbf16>, vector<64x128xbf16>, vector<128x128xf32> -> vector<128x128xf32>
    %13 = arith.addf %9, %12 : vector<128x128xf32>
    %c0_8 = arith.constant 0 : index
    %c0_9 = arith.constant 0 : index
    %14 = vector.load %arg8[%c0_8, %c0_9] : memref<1x128xf32, #tpu.memory_space<vmem>>, vector<1x128xf32>
    %15 = vector.broadcast %14 : vector<1x128xf32> to vector<128x128xf32>
    %16 = arith.addf %13, %15 : vector<128x128xf32>
    %cst_10 = arith.constant 5.000000e-01 : f32
    %17 = vector.broadcast %cst_10 : f32 to vector<128x128xf32>
    %18 = arith.mulf %17, %16 : vector<128x128xf32>
    %cst_11 = arith.constant 5.000000e-01 : f32
    %19 = vector.broadcast %cst_11 : f32 to vector<128x128xf32>
    %20 = arith.mulf %19, %16 : vector<128x128xf32>
    %21 = math.tanh %20 : vector<128x128xf32>
    %cst_12 = arith.constant 1.000000e+00 : f32
    %22 = vector.broadcast %cst_12 : f32 to vector<128x128xf32>
    %23 = arith.addf %21, %22 : vector<128x128xf32>
    %24 = arith.mulf %18, %23 : vector<128x128xf32>
    %25 = arith.truncf %24 : vector<128x128xf32> to vector<128x128xbf16>
    %c0_13 = arith.constant 0 : index
    %c0_14 = arith.constant 0 : index
    %26 = vector.load %arg9[%c0_13, %c0_14] : memref<128x128xbf16, #tpu.memory_space<vmem>>, vector<128x128xbf16>
    %cst_15 = arith.constant dense<0.000000e+00> : vector<128x128xf32>
    %27 = tpu.matmul %25, %26, %cst_15 {dimension_numbers = #tpu.dot_dimension_numbers<[1], [0], [0], [1], [0, 0, 1, 1], [], []>} : vector<128x128xbf16>, vector<128x128xbf16>, vector<128x128xf32> -> vector<128x128xf32>
    %c0_16 = arith.constant 0 : index
    %c0_17 = arith.constant 0 : index
    %28 = vector.load %arg10[%c0_16, %c0_17] : memref<1x128xf32, #tpu.memory_space<vmem>>, vector<1x128xf32>
    %29 = vector.broadcast %28 : vector<1x128xf32> to vector<128x128xf32>
    %30 = arith.addf %27, %29 : vector<128x128xf32>
    %31 = tpu.iota {dimensions = array<i32: 1>} : vector<1x8xi32>
    %c0_18 = arith.constant 0 : index
    %c0_19 = arith.constant 0 : index
    %32 = vector.load %arg3[%c0_18, %c0_19] : memref<128x1xi32, #tpu.memory_space<vmem>>, vector<128x1xi32>
    %33 = vector.broadcast %32 : vector<128x1xi32> to vector<128x8xi32>
    %34 = vector.broadcast %31 : vector<1x8xi32> to vector<128x8xi32>
    %35 = arith.cmpi eq, %33, %34 : vector<128x8xi32>
    %cst_20 = arith.constant 1.000000e+00 : f32
    %cst_21 = arith.constant 0.000000e+00 : f32
    %36 = vector.broadcast %cst_20 : f32 to vector<128x8xf32>
    %37 = vector.broadcast %cst_21 : f32 to vector<128x8xf32>
    %38 = arith.select %35, %36, %37 : vector<128x8xi1>, vector<128x8xf32>
    %39 = arith.truncf %38 : vector<128x8xf32> to vector<128x8xbf16>
    %c0_22 = arith.constant 0 : index
    %c0_23 = arith.constant 0 : index
    %40 = vector.load %arg5[%c0_22, %c0_23] : memref<8x128xbf16, #tpu.memory_space<vmem>>, vector<8x128xbf16>
    %cst_24 = arith.constant dense<0.000000e+00> : vector<128x128xf32>
    %41 = tpu.matmul %39, %40, %cst_24 {dimension_numbers = #tpu.dot_dimension_numbers<[1], [0], [0], [1], [0, 0, 1, 1], [], []>} : vector<128x8xbf16>, vector<8x128xbf16>, vector<128x128xf32> -> vector<128x128xf32>
    %cst_25 = arith.constant 5.000000e-01 : f32
    %42 = vector.broadcast %cst_25 : f32 to vector<128x128xf32>
    %43 = arith.mulf %42, %41 : vector<128x128xf32>
    %cst_26 = arith.constant 5.000000e-01 : f32
    %44 = vector.broadcast %cst_26 : f32 to vector<128x128xf32>
    %45 = arith.mulf %44, %41 : vector<128x128xf32>
    %46 = math.tanh %45 : vector<128x128xf32>
    %cst_27 = arith.constant 1.000000e+00 : f32
    %47 = vector.broadcast %cst_27 : f32 to vector<128x128xf32>
    %48 = arith.addf %46, %47 : vector<128x128xf32>
    %49 = arith.mulf %43, %48 : vector<128x128xf32>
    %50 = arith.addf %30, %49 : vector<128x128xf32>
    %c0_28 = arith.constant 0 : index
    %c0_29 = arith.constant 0 : index
    %51 = vector.load %arg1[%c0_28, %c0_29] : memref<128x8xbf16, #tpu.memory_space<vmem>>, vector<128x8xbf16>
    %c0_30 = arith.constant 0 : index
    %c0_31 = arith.constant 0 : index
    %52 = vector.load %arg11[%c0_30, %c0_31] : memref<8x128xbf16, #tpu.memory_space<vmem>>, vector<8x128xbf16>
    %cst_32 = arith.constant dense<0.000000e+00> : vector<128x128xf32>
    %53 = tpu.matmul %51, %52, %cst_32 {dimension_numbers = #tpu.dot_dimension_numbers<[1], [0], [0], [1], [0, 0, 1, 1], [], []>} : vector<128x8xbf16>, vector<8x128xbf16>, vector<128x128xf32> -> vector<128x128xf32>
    %c0_33 = arith.constant 0 : index
    %c0_34 = arith.constant 0 : index
    %54 = vector.load %arg12[%c0_33, %c0_34] : memref<1x128xf32, #tpu.memory_space<vmem>>, vector<1x128xf32>
    %55 = vector.broadcast %54 : vector<1x128xf32> to vector<128x128xf32>
    %56 = arith.addf %53, %55 : vector<128x128xf32>
    %57 = arith.addf %56, %50 : vector<128x128xf32>
    %58 = arith.truncf %57 : vector<128x128xf32> to vector<128x128xbf16>
    %c0_35 = arith.constant 0 : index
    %c0_36 = arith.constant 0 : index
    %59 = vector.load %arg13[%c0_35, %c0_36] : memref<128x128xbf16, #tpu.memory_space<vmem>>, vector<128x128xbf16>
    %cst_37 = arith.constant dense<0.000000e+00> : vector<128x128xf32>
    %60 = tpu.matmul %58, %59, %cst_37 {dimension_numbers = #tpu.dot_dimension_numbers<[1], [0], [0], [1], [0, 0, 1, 1], [], []>} : vector<128x128xbf16>, vector<128x128xbf16>, vector<128x128xf32> -> vector<128x128xf32>
    %c0_38 = arith.constant 0 : index
    %c0_39 = arith.constant 0 : index
    %61 = vector.load %arg14[%c0_38, %c0_39] : memref<1x128xf32, #tpu.memory_space<vmem>>, vector<1x128xf32>
    %62 = vector.broadcast %61 : vector<1x128xf32> to vector<128x128xf32>
    %63 = arith.addf %60, %62 : vector<128x128xf32>
    %cst_40 = arith.constant 0.000000e+00 : f32
    %64 = vector.broadcast %cst_40 : f32 to vector<128x128xf32>
    %65 = arith.maximumf %63, %64 : vector<128x128xf32>
    %66 = arith.truncf %65 : vector<128x128xf32> to vector<128x128xbf16>
    %c0_41 = arith.constant 0 : index
    %c0_42 = arith.constant 0 : index
    %67 = vector.load %arg15[%c0_41, %c0_42] : memref<128x128xbf16, #tpu.memory_space<vmem>>, vector<128x128xbf16>
    %cst_43 = arith.constant dense<0.000000e+00> : vector<128x128xf32>
    %68 = tpu.matmul %66, %67, %cst_43 {dimension_numbers = #tpu.dot_dimension_numbers<[1], [0], [0], [1], [0, 0, 1, 1], [], []>} : vector<128x128xbf16>, vector<128x128xbf16>, vector<128x128xf32> -> vector<128x128xf32>
    %c0_44 = arith.constant 0 : index
    %c0_45 = arith.constant 0 : index
    %69 = vector.load %arg16[%c0_44, %c0_45] : memref<1x128xf32, #tpu.memory_space<vmem>>, vector<1x128xf32>
    %70 = vector.broadcast %69 : vector<1x128xf32> to vector<128x128xf32>
    %71 = arith.addf %68, %70 : vector<128x128xf32>
    %cst_46 = arith.constant 0.000000e+00 : f32
    %72 = vector.broadcast %cst_46 : f32 to vector<128x128xf32>
    %73 = arith.maximumf %71, %72 : vector<128x128xf32>
    %74 = arith.truncf %73 : vector<128x128xf32> to vector<128x128xbf16>
    %c0_47 = arith.constant 0 : index
    %c0_48 = arith.constant 0 : index
    %75 = vector.load %arg17[%c0_47, %c0_48] : memref<128x128xbf16, #tpu.memory_space<vmem>>, vector<128x128xbf16>
    %cst_49 = arith.constant dense<0.000000e+00> : vector<128x128xf32>
    %76 = tpu.matmul %74, %75, %cst_49 {dimension_numbers = #tpu.dot_dimension_numbers<[1], [0], [0], [1], [0, 0, 1, 1], [], []>} : vector<128x128xbf16>, vector<128x128xbf16>, vector<128x128xf32> -> vector<128x128xf32>
    %c0_50 = arith.constant 0 : index
    %c0_51 = arith.constant 0 : index
    %77 = vector.load %arg18[%c0_50, %c0_51] : memref<1x128xf32, #tpu.memory_space<vmem>>, vector<1x128xf32>
    %78 = vector.broadcast %77 : vector<1x128xf32> to vector<128x128xf32>
    %79 = arith.addf %76, %78 : vector<128x128xf32>
    %80 = arith.truncf %79 : vector<128x128xf32> to vector<128x128xbf16>
    %c0_52 = arith.constant 0 : index
    %c0_53 = arith.constant 0 : index
    %81 = vector.load %arg19[%c0_52, %c0_53] : memref<128x128xbf16, #tpu.memory_space<vmem>>, vector<128x128xbf16>
    tpu.vector_store %arg19[%c0_52, %c0_53], %80 {strides = array<i32>} : memref<128x128xbf16, #tpu.memory_space<vmem>>, vector<128x128xbf16>,
    return
  }
  func.func @transform_0(%arg0: i32) -> (i32, i32) {
    %c0_i32 = arith.constant 0 : i32
    %c0_i32_0 = arith.constant 0 : i32
    return %arg0, %c0_i32 : i32, i32
  }
  func.func @transform_1(%arg0: i32) -> (i32, i32) {
    %c0_i32 = arith.constant 0 : i32
    %c0_i32_0 = arith.constant 0 : i32
    return %arg0, %c0_i32 : i32, i32
  }
  func.func @transform_2(%arg0: i32) -> (i32, i32) {
    %c0_i32 = arith.constant 0 : i32
    %c0_i32_0 = arith.constant 0 : i32
    return %arg0, %c0_i32 : i32, i32
  }
  func.func @transform_3(%arg0: i32) -> (i32, i32) {
    %c0_i32 = arith.constant 0 : i32
    %c0_i32_0 = arith.constant 0 : i32
    %c0_i32_1 = arith.constant 0 : i32
    return %c0_i32, %c0_i32_0 : i32, i32
  }
  func.func @transform_4(%arg0: i32) -> (i32, i32) {
    %c0_i32 = arith.constant 0 : i32
    %c0_i32_0 = arith.constant 0 : i32
    %c0_i32_1 = arith.constant 0 : i32
    return %c0_i32, %c0_i32_0 : i32, i32
  }
  func.func @transform_5(%arg0: i32) -> (i32, i32) {
    %c0_i32 = arith.constant 0 : i32
    %c0_i32_0 = arith.constant 0 : i32
    %c0_i32_1 = arith.constant 0 : i32
    return %c0_i32, %c0_i32_0 : i32, i32
  }
  func.func @transform_6(%arg0: i32) -> (i32, i32) {
    %c0_i32 = arith.constant 0 : i32
    %c0_i32_0 = arith.constant 0 : i32
    %c0_i32_1 = arith.constant 0 : i32
    return %c0_i32, %c0_i32_0 : i32, i32
  }
  func.func @transform_7(%arg0: i32) -> (i32, i32) {
    %c0_i32 = arith.constant 0 : i32
    %c0_i32_0 = arith.constant 0 : i32
    %c0_i32_1 = arith.constant 0 : i32
    return %c0_i32, %c0_i32_0 : i32, i32
  }
  func.func @transform_8(%arg0: i32) -> (i32, i32) {
    %c0_i32 = arith.constant 0 : i32
    %c0_i32_0 = arith.constant 0 : i32
    %c0_i32_1 = arith.constant 0 : i32
    return %c0_i32, %c0_i32_0 : i32, i32
  }
  func.func @transform_9(%arg0: i32) -> (i32, i32) {
    %c0_i32 = arith.constant 0 : i32
    %c0_i32_0 = arith.constant 0 : i32
    %c0_i32_1 = arith.constant 0 : i32
    return %c0_i32, %c0_i32_0 : i32, i32
  }
  func.func @transform_10(%arg0: i32) -> (i32, i32) {
    %c0_i32 = arith.constant 0 : i32
    %c0_i32_0 = arith.constant 0 : i32
    %c0_i32_1 = arith.constant 0 : i32
    return %c0_i32, %c0_i32_0 : i32, i32
  }
  func.func @transform_11(%arg0: i32) -> (i32, i32) {
    %c0_i32 = arith.constant 0 : i32
    %c0_i32_0 = arith.constant 0 : i32
    %c0_i32_1 = arith.constant 0 : i32
    return %c0_i32, %c0_i32_0 : i32, i32
  }
  func.func @transform_12(%arg0: i32) -> (i32, i32) {
    %c0_i32 = arith.constant 0 : i32
    %c0_i32_0 = arith.constant 0 : i32
    %c0_i32_1 = arith.constant 0 : i32
    return %c0_i32, %c0_i32_0 : i32, i32
  }
  func.func @transform_13(%arg0: i32) -> (i32, i32) {
    %c0_i32 = arith.constant 0 : i32
    %c0_i32_0 = arith.constant 0 : i32
    %c0_i32_1 = arith.constant 0 : i32
    return %c0_i32, %c0_i32_0 : i32, i32
  }
  func.func @transform_14(%arg0: i32) -> (i32, i32) {
    %c0_i32 = arith.constant 0 : i32
    %c0_i32_0 = arith.constant 0 : i32
    %c0_i32_1 = arith.constant 0 : i32
    return %c0_i32, %c0_i32_0 : i32, i32
  }
  func.func @transform_15(%arg0: i32) -> (i32, i32) {
    %c0_i32 = arith.constant 0 : i32
    %c0_i32_0 = arith.constant 0 : i32
    %c0_i32_1 = arith.constant 0 : i32
    return %c0_i32, %c0_i32_0 : i32, i32
  }
  func.func @transform_16(%arg0: i32) -> (i32, i32) {
    %c0_i32 = arith.constant 0 : i32
    %c0_i32_0 = arith.constant 0 : i32
    %c0_i32_1 = arith.constant 0 : i32
    return %c0_i32, %c0_i32_0 : i32, i32
  }
  func.func @transform_17(%arg0: i32) -> (i32, i32) {
    %c0_i32 = arith.constant 0 : i32
    %c0_i32_0 = arith.constant 0 : i32
    %c0_i32_1 = arith.constant 0 : i32
    return %c0_i32, %c0_i32_0 : i32, i32
  }
  func.func @transform_18(%arg0: i32) -> (i32, i32) {
    %c0_i32 = arith.constant 0 : i32
    %c0_i32_0 = arith.constant 0 : i32
    return %arg0, %c0_i32 : i32, i32
  }
}

</mosaic_0001>

<bundles_post_ra>
// kernel: _mlpdiffusion_forward_impl.1
= control target key start
LH: loop header
LB: loop body
LE: loop exit
PB: predicated region body
PF: predicated region fallthrough
CT: control target
= control target key end

     0   :  { %s9707_s0 = inlined_call_operand.vmem [shape: bf16[200,8], index: 0, kind: input, shape index: {}]   ;;  %s9708_s1 = inlined_call_operand.vmem [shape: f32[200,1], index: 1, kind: input, shape index: {}]   ;;  %s9709_s2 = inlined_call_operand.vmem [shape: s32[200,1], index: 2, kind: input, shape index: {}]   ;;  %s9710_s3 = inlined_call_operand.vmem [shape: f32[1,64], index: 3, kind: input, shape index: {}]   ;;  %s9711_s4 = inlined_call_operand.vmem [shape: bf16[8,128], index: 4, kind: input, shape index: {}]   ;;  %s9712_s5 = inlined_call_operand.vmem [shape: bf16[64,128], index: 5, kind: input, shape index: {}]   ;;  %s9713_s6 = inlined_call_operand.vmem [shape: bf16[64,128], index: 6, kind: input, shape index: {}]   ;;  %s9714_s7 = inlined_call_operand.vmem [shape: f32[1,128], index: 7, kind: input, shape index: {}]   ;;  %s9715_s8 = inlined_call_operand.vmem [shape: bf16[128,128], index: 8, kind: input, shape index: {}]   ;;  %s9716_s9 = inlined_call_operand.vmem [shape: f32[1,128], index: 9, kind: input, shape index: {}]   ;;  %s9717_s10 = inlined_call_operand.vmem [shape: bf16[8,128], index: 10, kind: input, shape index: {}]   ;;  %s9718_s11 = inlined_call_operand.vmem [shape: f32[1,128], index: 11, kind: input, shape index: {}]   ;;  %s9719_s12 = inlined_call_operand.vmem [shape: bf16[128,128], index: 12, kind: input, shape index: {}]   ;;  %s9720_s13 = inlined_call_operand.vmem [shape: f32[1,128], index: 13, kind: input, shape index: {}]   ;;  %s9721_s14 = inlined_call_operand.vmem [shape: bf16[128,128], index: 14, kind: input, shape index: {}]   ;;  %s9722_s15 = inlined_call_operand.vmem [shape: f32[1,128], index: 15, kind: input, shape index: {}]   ;;  %s9723_s16 = inlined_call_operand.vmem [shape: bf16[128,128], index: 16, kind: input, shape index: {}]   ;;  %s9724_s17 = inlined_call_operand.vmem [shape: f32[1,128], index: 17, kind: input, shape index: {}]   ;;  %s9725_s18 = inlined_call_operand.vmem [shape: bf16[200,128], index: 18, kind: output, shape index: {}]  }
   0x1   :  { %9790 = sst [smem:[#allocation35_spill]] %s9707_s0 }
   0x2   :  { %9791 = sst [smem:[#allocation36_spill]] %s9708_s1 }
   0x3   :  { %9792 = sst [smem:[#allocation37_spill]] %s9709_s2 }
   0x4   :  { %9793 = sst [smem:[#allocation38_spill]] %s9725_s18 }
   0x5   :  { %s7332_s27 = smov 0   ;;  %s7334_s28 = smov 0  }
   0x6   :  { %s7336_s29 = smov 0  }
   0x7 LB: > { %9794 = sst [smem:[#allocation3_spill]] %s7191_s28  ;;  %s7345_s30 = sadd.s32 4294967295, %s7195_s29   ;;  %s7195_s29 = sphi %s7336_s29, %s9926_s29   ;;  %s7191_s28 = sphi %s7334_s28, %s9928_s28   ;;  %s7187_s27 = sphi %s7332_s27, %s9927_s27  }
   0x8   : > { %s7347_s0 = sadd.s32 1, %s7195_s29   ;;  %s428_s1 = sadd.s32 1, %s7191_s28 }
   0x9   : > { %9795 = sst [smem:[#allocation4_spill]] %s7347_s0  ;;  %s425_s19 = ssub.s32 %s7195_s29, %s7347_s0 }
   0xa   : > { %p426_p0 = scmp.eq.s32.totalorder %s425_s19, 0  ;;  %p438_p1 = scmp.ne.s32.totalorder %s7191_s28, %s7187_s27 }
   0xb   : > { %p439_p2 = scmp.eq.s32.totalorder %s7345_s30, 1  ;;  %p6159_p3 = scmp.ge.s32.totalorder %s7195_s29, 1 }
   0xc   : > { %s7355_s20 = scalar_select %p426_p0, %s7191_s28, %s428_s1  }
   0xd   : > { %p7357_p4 = por %p439_p2, %p438_p1  ;;  %p559_p5 = scmp.lt.s32.totalorder %s7195_s29, 3 }
   0xe   : > { %9796 = sst [smem:[#allocation5_spill]] %s7355_s20 }
   0xf   : > { %p560_p6 = pnand %p6159_p3, %p559_p5 }
  0x11   : > { %563 = sbr.rel (%p560_p6) target bundleno = 1732 (0x6c4), region = 92 }
  0x16   : > { %s7362_s22 = sshll.u32 %s7345_s30, 4  ;;  %v7229_v0 = vmov 0   ;;  %s9798_s26 = sld [smem:[#allocation36_spill]]  ;;  %v7406_v33 = vld [vmem:[%s9710_s3] ss:$0 sm:$0xff] }
  0x17   : > { %6962 = vset.pattern.permute.xlu1 %v7229_v0  ;;  %6961 = vset.pattern.permute.xlu0 %v7229_v0  ;;  %p639_p7 = scmp.lt.s32.totalorder %s7362_s22, 24  ;;  %s9799_s25 = sld [smem:[#allocation35_spill]] }
  0x18   : > { %s9800_s0 = sld [smem:[#allocation37_spill]] }
  0x19   : > { %s7366_s2 = scalar_select %p639_p7, %s7362_s22, 24 }
  0x1b   : > { %s6164_s23 = sshll.u32 %s7366_s2, 3  ;;  %s6162_s19 = sshll.u32 %s7366_s2, 2 }
  0x1c   : > { %s656_s29 = scalar_lea.vmem %s9798_s26, %s6164_s23  ;;  %s9922_s2 = sld [smem:[#allocation38_spill]] (%p7357_p4) }
  0x1d   : > { %v684_v1 = vld [vmem:[%s656_s29 + $0x10] sm:$0xff]  ;;  %v682_v2 = vld [vmem:[%s656_s29] sm:$0xff]  ;;  %v685_v3 = vld [vmem:[%s656_s29 + $0x18] sm:$0xff]  ;;  %s7378_s26 = scalar_lea.vmem %s9799_s25, %s6162_s19  ;;  %s631_s19 = sand.u32 1, %s7187_s27  }
  0x1e   : > { %711 = vperm.xlu1 %6962, %v684_v1   ;;  %701 = vperm.xlu0 %6961, %v682_v2   ;;  %v683_v4 = vld [vmem:[%s656_s29 + $0x8] sm:$0xff]  ;;  %v686_v6 = vld [vmem:[%s656_s29 + $0x20] sm:$0xff]  ;;  %v689_v7 = vld [vmem:[%s656_s29 + $0x38] sm:$0xff]  ;;  %s7385_s18 = scalar_lea.vmem %s9800_s0, %s6164_s23  ;;  %s6160_s25 = sshll.u32 %s631_s19, 6 }
  0x1f   : > { %v687_v5 = vld [vmem:[%s656_s29 + $0x28] sm:$0xff]  ;;  %v688_v8 = vld [vmem:[%s656_s29 + $0x30] sm:$0xff]  ;;  %v690_v10 = vld [vmem:[%s656_s29 + $0x40] sm:$0xff]  ;;  %s9594_s28 = scalar_lea.vmem [#allocation2], %s6160_s25   ;;  %s5864_s27 = ssub.s32 (%p7357_p4), 25, %s7362_s22 }
  0x20   : > { %v691_v9 = vld [vmem:[%s656_s29 + $0x48] sm:$0xff]  ;;  %v693_v11 = vld [vmem:[%s656_s29 + $0x58] sm:$0xff]  ;;  %v692_v12 = vld [vmem:[%s656_s29 + $0x50] sm:$0xff]  ;;  %s6431_s0 = sshll.u32 (%p7357_p4), %s7345_s30, 6  ;;  %p5865_p8 = scmp.lt.s32.totalorder (%p7357_p4), %s5864_s27, 16 }
  0x21   : > { %v695_v13 = vld [vmem:[%s656_s29 + $0x68] sm:$0xff]  ;;  %v694_v14 = vld [vmem:[%s656_s29 + $0x60] sm:$0xff]  ;;  %v697_v15 = vld [vmem:[%s656_s29 + $0x78] sm:$0xff] }
  0x22   : > { %716 = vperm.xlu1 %6962, %v685_v3   ;;  %706 = vperm.xlu0 %6961, %v683_v4   ;;  %v696_v16 = vld [vmem:[%s656_s29 + $0x70] sm:$0xff]  ;;  %v4702_v17 = vld [vmem:[%s7385_s18 + $0x8] sm:$0xff]  ;;  %v4701_v18 = vld [vmem:[%s7385_s18] sm:$0xff]  ;;  %v9739_v3 = vmov 683565275   ;;  %s9611_s23 = scalar_lea.vmem (%p7357_p4), %s9922_s2, %s6431_s0  }
  0x23   : > { %v4704_v19 = vld [vmem:[%s7385_s18 + $0x18] sm:$0xff]  ;;  %v4703_v20 = vld [vmem:[%s7385_s18 + $0x10] sm:$0xff]  ;;  %v4706_v21 = vld [vmem:[%s7385_s18 + $0x28] sm:$0xff] }
  0x24   : > { %v4705_v22 = vld [vmem:[%s7385_s18 + $0x20] sm:$0xff]  ;;  %v4708_v23 = vld [vmem:[%s7385_s18 + $0x38] sm:$0xff]  ;;  %v4707_v24 = vld [vmem:[%s7385_s18 + $0x30] sm:$0xff] }
  0x25   : > { %v4710_v25 = vld [vmem:[%s7385_s18 + $0x48] sm:$0xff]  ;;  %v4709_v26 = vld [vmem:[%s7385_s18 + $0x40] sm:$0xff]  ;;  %v4712_v27 = vld [vmem:[%s7385_s18 + $0x58] sm:$0xff] }
  0x26   : > { %726 = vperm.xlu1 %6962, %v687_v5   ;;  %721 = vperm.xlu0 %6961, %v686_v6   ;;  %v4711_v28 = vld [vmem:[%s7385_s18 + $0x50] sm:$0xff]  ;;  %v4714_v29 = vld [vmem:[%s7385_s18 + $0x68] sm:$0xff]  ;;  %v4713_v30 = vld [vmem:[%s7385_s18 + $0x60] sm:$0xff]  ;;  %v9736_v5 = vmov 2475754826  }
  0x27   : > { %v4716_v31 = vld [vmem:[%s7385_s18 + $0x78] sm:$0xff]  ;;  %v4715_v32 = vld [vmem:[%s7385_s18 + $0x70] sm:$0xff] }
  0x2a   : > { %736 = vperm.xlu1 %6962, %v689_v7   ;;  %731 = vperm.xlu0 %6961, %v688_v8   ;;  %v9734_v7 = vmov 2131351028  }
  0x2e   : > { %746 = vperm.xlu1 %6962, %v691_v9   ;;  %741 = vperm.xlu0 %6961, %v690_v10   ;;  %v9749_v9 = vmov 2102212464  }
  0x32   : > { %756 = vperm.xlu1 %6962, %v693_v11   ;;  %751 = vperm.xlu0 %6961, %v692_v12  }
  0x36   : > { %766 = vperm.xlu1 %6962, %v695_v13   ;;  %761 = vperm.xlu0 %6961, %v694_v14   ;;  %v9752_v14 = vmov 920167782  }
  0x3a   : > { %776 = vperm.xlu1 %6962, %v697_v15   ;;  %771 = vperm.xlu0 %6961, %v696_v16  }
  0x3e   : > { %4721 = vperm.xlu1 %6962, %v4702_v17   ;;  %4718 = vperm.xlu0 %6961, %v4701_v18   ;;  %v9744_v17 = vmov 1326507024  }
  0x42   : > { %4727 = vperm.xlu1 %6962, %v4704_v19   ;;  %4724 = vperm.xlu0 %6961, %v4703_v20  }
  0x46   : > { %4733 = vperm.xlu1 %6962, %v4706_v21   ;;  %4730 = vperm.xlu0 %6961, %v4705_v22  }
  0x4a   : > { %4739 = vperm.xlu1 %6962, %v4708_v23   ;;  %4736 = vperm.xlu0 %6961, %v4707_v24  }
  0x4e   : > { %4745 = vperm.xlu1 %6962, %v4710_v25   ;;  %4742 = vperm.xlu0 %6961, %v4709_v26  }
  0x52   : > { %4751 = vperm.xlu1 %6962, %v4712_v27   ;;  %4748 = vperm.xlu0 %6961, %v4711_v28  }
  0x56   : > { %4757 = vperm.xlu1 %6962, %v4714_v29   ;;  %4754 = vperm.xlu0 %6961, %v4713_v30  }
  0x5a   : > { %4763 = vperm.xlu1 %6962, %v4716_v31   ;;  %4760 = vperm.xlu0 %6961, %v4715_v32  }
  0x99   : > { %v712_v34 = vpop.permute.xlu1 %711  ;;  %v702_v35 = vpop.permute.xlu0 %701 }
  0x9a   : > { %v7409_v36 = vmul.f32 %v7406_v33, %v712_v34  ;;  %v7412_v37 = vmul.f32 %v7406_v33, %v702_v35 }
  0x9c   : > { %9801 = vst [vmem:[#allocation6_spill] sm:$0xff] %v7409_v36  ;;  %v1007_v38 = vand.u32 2147483647, %v7409_v36  ;;  %v1010_v39 = vand.u32 2139095040, %v7409_v36  ;;  %v804_v40 = vand.u32 2139095040, %v7412_v37 }
  0x9d   : > { %v717_v41 = vpop.permute.xlu1 %716  ;;  %v9730_v45 = vand.u32 2147483647, %v7412_v37  ;;  %v707_v55 = vpop.permute.xlu0 %706 }
  0x9e   : > { %v1011_v42 = vshrl.u32 %v1010_v39, 23  ;;  %v7418_v43 = vmul.f32 %v7406_v33, %v717_v41  ;;  %v1014_v44 = vand.u32 8388607, %v1007_v38  ;;  %v805_v46 = vshrl.u32 %v804_v40, 23 }
  0x9f   : > { %v7426_v52 = vand.u32 8388607, %v9730_v45  ;;  %v7432_v62 = vmul.f32 %v7406_v33, %v707_v55 }
  0xa0   : > { %9802 = vst [vmem:[#allocation7_spill] sm:$0xff] %v7418_v43  ;;  %v6176_v47 = vadd.s32 4294967169, %v1011_v42  ;;  %v6168_v48 = vadd.s32 4294967169, %v805_v46  ;;  %v1113_v49 = vand.u32 2139095040, %v7418_v43  ;;  %v1015_v51 = vor.u32 8388608, %v1014_v44 }
  0xa1   : > { %v809_v61 = vor.u32 8388608, %v7426_v52 }
  0xa2   : > { %v1017_v50 = vadd.s32 1, %v6176_v47  ;;  %v811_v53 = vadd.s32 1, %v6168_v48  ;;  %v1114_v54 = vshrl.u32 %v1113_v49, 23  ;;  %v7428_v60 = vshll.u32 %v1015_v51, 8 }
  0xa4   : > { %vm1018_vm0 = vcmp.gt.s32.totalorder %v1017_v50, 0  ;;  %vm812_vm1 = vcmp.gt.s32.totalorder %v811_v53, 0  ;;  %v6180_v2 = vadd.s32 4294967169, %v1114_v54 }
  0xa5   : > { %v1019_v56 = vsel %vm1018_vm0, %v1017_v50, 0  ;;  %v813_v58 = vsel %vm812_vm1, %v811_v53, 0 }
  0xa6   : > { %v1021_v57 = vand.u32 31, %v1019_v56  ;;  %v1020_v59 = vshrl.u32 %v1019_v56, 5  ;;  %v7434_v0 = vshrl.u32 %v813_v58, 5  ;;  %v815_v1 = vand.u32 31, %v813_v58 }
  0xa8   : > { %v1022_v63 = vsub.s32 32, %v1021_v57  ;;  %v1024_v4 = vshll.u32 %v9739_v3, %v1021_v57  ;;  %v1027_v6 = vshll.u32 %v9736_v5, %v1021_v57  ;;  %v1030_v8 = vshll.u32 %v9734_v7, %v1021_v57 }
  0xa9   : > { %v1033_v10 = vshll.u32 %v9749_v9, %v1021_v57  ;;  %v1036_v15 = vshll.u32 %v9752_v14, %v1021_v57  ;;  %vm1039_vm2 = vcmp.lt.s32.totalorder %v1020_v59, 1  ;;  %vm1040_vm3 = vcmp.lt.s32.totalorder %v1020_v59, 2 }
  0xaa   : > { %v1025_v11 = vshrl.u32 %v9736_v5, %v1022_v63  ;;  %v1028_v12 = vshrl.u32 %v9734_v7, %v1022_v63  ;;  %v1031_v13 = vshrl.u32 %v9749_v9, %v1022_v63  ;;  %v1034_v16 = vshrl.u32 %v9752_v14, %v1022_v63 }
  0xab   : > { %v1037_v18 = vshrl.u32 %v9744_v17, %v1022_v63  ;;  %v816_v22 = vsub.s32 32, %v815_v1  ;;  %v1023_v23 = vshrl.u32 %v9739_v3, %v1022_v63  ;;  %vm1042_vm4 = vcmp.lt.s32.totalorder %v1020_v59, 4 }
  0xac   : > { %v1026_v19 = vor.u32 %v1025_v11, %v1024_v4  ;;  %v1029_v20 = vor.u32 %v1028_v12, %v1027_v6  ;;  %v1032_v21 = vor.u32 %v1031_v13, %v1030_v8  ;;  %v1035_v24 = vor.u32 %v1034_v16, %v1033_v10 }
  0xad   : > { %v1038_v25 = vor.u32 %v1037_v18, %v1036_v15  ;;  %vm1041_vm5 = vcmp.lt.s32.totalorder %v1020_v59, 3  ;;  %v818_v31 = vshll.u32 %v9739_v3, %v815_v1  ;;  %v821_v32 = vshll.u32 %v9736_v5, %v815_v1 }
  0xae   : > { %v1044_v26 = vsel %vm1042_vm4, %v1032_v21, 2102212464  ;;  %v1047_v27 = vsel %vm1039_vm2, %v1026_v19, %v1029_v20  ;;  %v1051_v28 = vsel %vm1039_vm2, %v1029_v20, %v1032_v21  ;;  %v1048_v29 = vsel %vm1042_vm4, %v1035_v24, 920167782 }
  0xaf   : > { %v1052_v30 = vsel %vm1042_vm4, %v1038_v25, 1326507024  ;;  %v1043_v34 = vsel %vm1039_vm2, %v1023_v23, %v1026_v19  ;;  %v1049_v35 = vsel %vm1041_vm5, %v1032_v21, %v1048_v29  ;;  %v819_v40 = vshrl.u32 %v9736_v5, %v816_v22 }
  0xb0   : > { %v1053_v39 = vsel %vm1041_vm5, %v1035_v24, %v1052_v30  ;;  %v1045_v41 = vsel %vm1041_vm5, %v1029_v20, %v1044_v26  ;;  %v1050_v42 = vsel %vm1040_vm3, %v1047_v27, %v1049_v35  ;;  %v822_v46 = vshrl.u32 %v9734_v7, %v816_v22 }
  0xb1   : > { %v1054_v44 = vsel %vm1040_vm3, %v1051_v28, %v1053_v39  ;;  %v7461_v49 = vmul.u32.u64.low %v7428_v60, %v1050_v42  ;;  %v7462_v50 = vmul.u32.u64.high %v7428_v60, %v1050_v42, %v7461_v49  ;;  %v820_v51 = vor.u32 %v819_v40, %v818_v31 }
  0xb2   : > { %v7457_v47 = vmul.u32.u64.low %v7428_v60, %v1054_v44  ;;  %v7458_v48 = vmul.u32.u64.high %v7428_v60, %v1054_v44, %v7457_v47  ;;  %v823_v52 = vor.u32 %v822_v46, %v821_v32  ;;  %v824_v53 = vshll.u32 %v9734_v7, %v815_v1 }
  0xb3   : > { %v825_v54 = vshrl.u32 %v9749_v9, %v816_v22  ;;  %v1046_v55 = vsel %vm1040_vm3, %v1043_v34, %v1045_v41  ;;  %v827_v56 = vshll.u32 %v9749_v9, %v815_v1  ;;  %v828_v57 = vshrl.u32 %v9752_v14, %v816_v22 }
  0xb4   : > { %v831_v58 = vshrl.u32 %v9744_v17, %v816_v22  ;;  %v830_v4 = vshll.u32 %v9752_v14, %v815_v1  ;;  %v7472_v6 = vshll.u32 %v809_v61, 8  ;;  %v1120_v8 = vadd.s32 1, %v6180_v2 }
  0xb5   : > { %v826_v63 = vor.u32 %v825_v54, %v824_v53  ;;  %vm1064_vm6 = vc.u32 %v7458_v48, %v7461_v49  ;;  %v1065_v10 = vadd.s32 1, %v7462_v50  ;;  %v829_v11 = vor.u32 %v828_v57, %v827_v56 }
  0xb6   : > { %vm833_vm7 = vcmp.lt.s32.totalorder %v7434_v0, 1  ;;  %v1062_v59 = vmul.u32 %v7428_v60, %v1046_v55  ;;  %v832_v12 = vor.u32 %v831_v58, %v830_v4  ;;  %vm836_vm8 = vcmp.lt.s32.totalorder %v7434_v0, 4 }
  0xb7   : > { %v841_v13 = vsel %vm833_vm7, %v820_v51, %v823_v52  ;;  %v1066_v61 = vsel %vm1064_vm6, %v1065_v10, %v7462_v50  ;;  %vm835_vm9 = vcmp.lt.s32.totalorder %v7434_v0, 3  ;;  %v842_v1 = vsel %vm836_vm8, %v829_v11, 920167782 }
  0xb8   : > { %v845_v2 = vsel %vm833_vm7, %v823_v52, %v826_v63  ;;  %v1067_v15 = vadd.s32 %v1066_v61, %v1062_v59  ;;  %vm834_vm10 = vcmp.lt.s32.totalorder %v7434_v0, 2  ;;  %v843_v60 = vsel %vm835_vm9, %v826_v63, %v842_v1 }
  0xb9   : > { %v846_v16 = vsel %vm836_vm8, %v832_v12, 1326507024  ;;  %v838_v18 = vsel %vm836_vm8, %v826_v63, 2102212464  ;;  %v844_v19 = vsel %vm834_vm10, %v841_v13, %v843_v60  ;;  %vm1121_vm11 = vcmp.gt.s32.totalorder %v1120_v8, 0 }
  0xba   : > { %v847_v20 = vsel %vm835_vm9, %v829_v11, %v846_v16  ;;  %v1068_v21 = vadd.s32 536870912, %v1067_v15  ;;  %v7496_v24 = vmul.u32.u64.low %v7472_v6, %v844_v19  ;;  %v7497_v25 = vmul.u32.u64.high %v7472_v6, %v844_v19, %v7496_v24 }
  0xbb   : > { %v848_v23 = vsel %vm834_vm10, %v845_v2, %v847_v20  ;;  %v817_v26 = vshrl.u32 %v9739_v3, %v816_v22  ;;  %v1122_v29 = vsel %vm1121_vm11, %v1120_v8, 0  ;;  %v1110_v31 = vand.u32 2147483647, %v7418_v43 }
  0xbc   : > { %v7502_v27 = vmul.u32.u64.low %v7472_v6, %v848_v23  ;;  %v7503_v28 = vmul.u32.u64.high %v7472_v6, %v848_v23, %v7502_v27  ;;  %v7505_v30 = vshrl.u32 %v1068_v21, 30  ;;  %v1124_v32 = vand.u32 31, %v1122_v29 }
  0xbd   : > { %v907_v34 = vand.u32 2139095040, %v7432_v62  ;;  %v837_v35 = vsel %vm833_vm7, %v817_v26, %v820_v51  ;;  %v839_v39 = vsel %vm835_vm9, %v823_v52, %v838_v18  ;;  %v1117_v42 = vand.u32 8388607, %v1110_v31 }
  0xbe   : > { %v1070_v22 = vshll.u32 %v7505_v30, 30  ;;  %v1125_v40 = vsub.s32 32, %v1124_v32  ;;  %v840_v41 = vsel %vm834_vm10, %v837_v35, %v839_v39  ;;  %v7518_v44 = vshrl.u32 %v1122_v29, 5 }
  0xbf   : > { %v908_v46 = vshrl.u32 %v907_v34, 23  ;;  %v859_v47 = vadd.s32 1, %v7497_v25  ;;  %v1127_v50 = vshll.u32 %v9739_v3, %v1124_v32  ;;  %v1130_v54 = vshll.u32 %v9736_v5, %v1124_v32 }
  0xc0   : > { %v1128_v51 = vshrl.u32 %v9736_v5, %v1125_v40  ;;  %v1131_v52 = vshrl.u32 %v9734_v7, %v1125_v40  ;;  %v7524_v53 = vsub.s32 %v1067_v15, %v1070_v22  ;;  %v1133_v0 = vshll.u32 %v9734_v7, %v1124_v32 }
  0xc1   : > { %v1134_v55 = vshrl.u32 %v9749_v9, %v1125_v40  ;;  %vm858_vm12 = vc.u32 %v7503_v28, %v7496_v24  ;;  %v1136_v57 = vshll.u32 %v9749_v9, %v1124_v32  ;;  %v1137_v58 = vshrl.u32 %v9752_v14, %v1125_v40 }
  0xc2   : > { %v1129_v56 = vor.u32 %v1128_v51, %v1127_v50  ;;  %v1132_v63 = vor.u32 %v1131_v52, %v1130_v54  ;;  %v1139_v8 = vshll.u32 %v9752_v14, %v1124_v32  ;;  %v1140_v10 = vshrl.u32 %v9744_v17, %v1125_v40 }
  0xc3   : > { %v1135_v4 = vor.u32 %v1134_v55, %v1133_v0  ;;  %v1138_v11 = vor.u32 %v1137_v58, %v1136_v57  ;;  %v1073_v59 = vsub.s32 0, %v7524_v53  ;;  %v860_v12 = vsel %vm858_vm12, %v859_v47, %v7497_v25 }
  0xc4   : > { %v1118_v13 = vor.u32 8388608, %v1117_v42  ;;  %v1141_v61 = vor.u32 %v1140_v10, %v1139_v8  ;;  %v856_v1 = vmul.u32 %v7472_v6, %v840_v41  ;;  %vm1142_vm13 = vcmp.lt.s32.totalorder %v7518_v44, 1 }
  0xc5   : > { %vm1145_vm14 = vcmp.lt.s32.totalorder %v7518_v44, 4  ;;  %v6172_v2 = vadd.s32 4294967169, %v908_v46  ;;  %vm1144_vm15 = vcmp.lt.s32.totalorder %v7518_v44, 3  ;;  %v1150_v15 = vsel %vm1142_vm13, %v1129_v56, %v1132_v63  ;;  %v727_v46 = vpop.permute.xlu1 %726 }
  0xc6   : > { %v1151_v60 = vsel %vm1145_vm14, %v1138_v11, 920167782  ;;  %v1154_v16 = vsel %vm1142_vm13, %v1132_v63, %v1135_v4  ;;  %v861_v18 = vadd.s32 %v860_v12, %v856_v1  ;;  %v1155_v19 = vsel %vm1145_vm14, %v1141_v61, 1326507024 }
  0xc7   : > { %v1152_v6 = vsel %vm1144_vm15, %v1135_v4, %v1151_v60  ;;  %v6177_v20 = vmin.u32 %v1073_v59, %v7524_v53  ;;  %vm1143_vm0 = vcmp.lt.s32.totalorder %v7518_v44, 2  ;;  %v1156_v21 = vsel %vm1144_vm15, %v1138_v11, %v1155_v19 }
  0xc8   : > { %v1153_v23 = vsel %vm1143_vm0, %v1150_v15, %v1152_v6  ;;  %v1157_v25 = vsel %vm1143_vm0, %v1154_v16, %v1156_v21  ;;  %v1158_v26 = vshll.u32 %v1118_v13, 8  ;;  %v914_v27 = vadd.s32 1, %v6172_v2 }
  0xc9   : > { %v862_v29 = vadd.s32 536870912, %v861_v18  ;;  %v1075_v35 = vclz %v6177_v20  ;;  %v1147_v41 = vsel %vm1145_vm14, %v1135_v4, 2102212464  ;;  %v1126_v47 = vshrl.u32 %v9739_v3, %v1125_v40 }
  0xca   : > { %v7559_v32 = vmul.u32.u64.low %v1158_v26, %v1157_v25  ;;  %v7560_v34 = vmul.u32.u64.high %v1158_v26, %v1157_v25, %v7559_v32  ;;  %vm915_vm1 = vcmp.gt.s32.totalorder %v914_v27, 0  ;;  %v1148_v0 = vsel %vm1144_vm15, %v1132_v63, %v1147_v41 }
  0xcb   : > { %v7562_v39 = vmul.u32.u64.low %v1158_v26, %v1153_v23  ;;  %v7563_v22 = vmul.u32.u64.high %v1158_v26, %v1153_v23, %v7562_v39  ;;  %v916_v42 = vsel %vm915_vm1, %v914_v27, 0  ;;  %v7569_v50 = vshrl.u32 %v862_v29, 30 }
  0xcc   : > { %v918_v51 = vand.u32 31, %v916_v42  ;;  %v6178_v52 = vadd.s32 4294967294, %v1075_v35  ;;  %v1146_v54 = vsel %vm1142_vm13, %v1126_v47, %v1129_v56  ;;  %v7576_v55 = vmul.f32 %v7406_v33, %v727_v46 }
  0xcd   : > { %v1168_v57 = vadd.s32 1, %v7563_v22  ;;  %vm1167_vm2 = vc.u32 %v7560_v34, %v7562_v39  ;;  %v864_v40 = vshll.u32 %v7569_v50, 30  ;;  %v1149_v58 = vsel %vm1143_vm0, %v1146_v54, %v1148_v0 }
  0xce   : > { %9803 = vst [vmem:[#allocation8_spill] sm:$0xff] %v7576_v55  ;;  %v7584_v4 = vsub.s32 32, %v918_v51  ;;  %vm6179_vm3 = vcmp.lt.s32.totalorder %v6178_v52, 0  ;;  %v1319_v56 = vand.u32 2139095040, %v7576_v55  ;;  %v1165_v8 = vmul.u32 %v1158_v26, %v1149_v58 }
  0xcf   : > { %v1169_v63 = vsel %vm1167_vm2, %v1168_v57, %v7563_v22  ;;  %v9729_v10 = vand.u32 2147483647, %v7432_v62  ;;  %v1078_v11 = vsel %vm6179_vm3, 0, %v6178_v52  ;;  %v7589_v59 = vsub.s32 %v861_v18, %v864_v40 }
  0xd0   : > { %v931_v12 = vshrl.u32 %v9752_v14, %v7584_v4  ;;  %v1170_v13 = vadd.s32 %v1169_v63, %v1165_v8  ;;  %v922_v44 = vshrl.u32 %v9736_v5, %v7584_v4  ;;  %v930_v61 = vshll.u32 %v9749_v9, %v918_v51 }
  0xd1   : > { %v1320_v1 = vshrl.u32 %v1319_v56, 23  ;;  %v7596_v2 = vshrl.u32 %v916_v42, 5  ;;  %v925_v15 = vshrl.u32 %v9734_v7, %v7584_v4  ;;  %v928_v60 = vshrl.u32 %v9749_v9, %v7584_v4 }
  0xd2   : > { %v934_v16 = vshrl.u32 %v9744_v17, %v7584_v4  ;;  %v911_v18 = vand.u32 8388607, %v9729_v10  ;;  %v921_v6 = vshll.u32 %v9739_v3, %v918_v51  ;;  %v932_v19 = vor.u32 %v931_v12, %v930_v61 }
  0xd3   : > { %v867_v20 = vsub.s32 0, %v7589_v59  ;;  %v924_v21 = vshll.u32 %v9736_v5, %v918_v51  ;;  %v927_v23 = vshll.u32 %v9734_v7, %v918_v51  ;;  %v933_v25 = vshll.u32 %v9752_v14, %v918_v51 }
  0xd4   : > { %v1083_v26 = vsub.s32 4294967266, %v1078_v11  ;;  %v1171_v27 = vadd.s32 536870912, %v1170_v13  ;;  %v923_v29 = vor.u32 %v922_v44, %v921_v6  ;;  %v6188_v32 = vadd.s32 4294967169, %v1320_v1 }
  0xd5   : > { %v7611_v35 = vor.u32 %v925_v15, %v924_v21  ;;  %v929_v22 = vor.u32 %v928_v60, %v927_v23  ;;  %v935_v41 = vor.u32 %v934_v16, %v933_v25  ;;  %vm939_vm4 = vcmp.lt.s32.totalorder %v7596_v2, 4 }
  0xd6   : > { %v912_v42 = vor.u32 8388608, %v911_v18  ;;  %v945_v46 = vsel %vm939_vm4, %v932_v19, 920167782  ;;  %v1063_v47 = vadd.s32 %v7461_v49, %v7458_v48  ;;  %v1079_v52 = vsub.s32 32, %v1078_v11 }
  0xd7   : > { %v6169_v51 = vmin.u32 %v867_v20, %v7589_v59  ;;  %v9733_v54 = vand.u32 2147483647, %v7576_v55  ;;  %v1084_v0 = vadd.s32 127, %v1083_v26  ;;  %v7620_v57 = vshrl.u32 %v1171_v27, 30 }
  0xd8   : > { %vm936_vm5 = vcmp.lt.s32.totalorder %v7596_v2, 1  ;;  %vm938_vm6 = vcmp.lt.s32.totalorder %v7596_v2, 3  ;;  %v949_v48 = vsel %vm939_vm4, %v935_v41, 1326507024  ;;  %v1326_v49 = vadd.s32 1, %v6188_v32 }
  0xd9   : > { %v944_v40 = vsel %vm936_vm5, %v923_v29, %v7611_v35  ;;  %v946_v58 = vsel %vm938_vm6, %v929_v22, %v945_v46  ;;  %v7631_v56 = vshll.u32 %v912_v42, 8  ;;  %v1081_v63 = vshrl.u32 %v1063_v47, %v1079_v52 }
  0xda   : > { %v869_v8 = vclz %v6169_v51  ;;  %vm937_vm7 = vcmp.lt.s32.totalorder %v7596_v2, 2  ;;  %vm1327_vm8 = vcmp.gt.s32.totalorder %v1326_v49, 0  ;;  %v948_v44 = vsel %vm936_vm5, %v7611_v35, %v929_v22 }
  0xdb   : > { %v947_v12 = vsel %vm937_vm7, %v944_v40, %v946_v58  ;;  %v950_v61 = vsel %vm938_vm6, %v932_v19, %v949_v48  ;;  %v1328_v1 = vsel %vm1327_vm8, %v1326_v49, 0  ;;  %v1085_v15 = vshll.u32 %v1084_v0, 23  ;;  %v722_v49 = vpop.permute.xlu0 %721 }
  0xdc   : > { %v1173_v60 = vshll.u32 %v7620_v57, 30  ;;  %v1323_v16 = vand.u32 8388607, %v9733_v54  ;;  %v1330_v18 = vand.u32 31, %v1328_v1  ;;  %v1080_v6 = vshll.u32 %v7524_v53, %v1078_v11 }
  0xdd   : > { %v951_v20 = vsel %vm937_vm7, %v948_v44, %v950_v61  ;;  %v7648_v21 = vmul.u32.u64.low %v7631_v56, %v947_v12  ;;  %v7649_v23 = vmul.u32.u64.high %v7631_v56, %v947_v12, %v7648_v21  ;;  %v7654_v19 = vadd.s32 4294967294, %v869_v8 }
  0xde   : > { %v7652_v25 = vor.u32 %v1081_v63, %v1080_v6  ;;  %v1331_v26 = vsub.s32 32, %v1330_v18  ;;  %v7656_v27 = vor.u32 4788187, %v1085_v15  ;;  %v7658_v32 = vsub.s32 %v1170_v13, %v1173_v60 }
  0xdf   : > { %v920_v53 = vshrl.u32 %v9739_v3, %v7584_v4  ;;  %v1324_v11 = vor.u32 8388608, %v1323_v16  ;;  %v7663_v41 = vmul.u32.u64.low %v7631_v56, %v951_v20  ;;  %v7664_v42 = vmul.u32.u64.high %v7631_v56, %v951_v20, %v7663_v41 }
  0xe0   : > { %v1334_v46 = vshrl.u32 %v9736_v5, %v1331_v26  ;;  %v1337_v47 = vshrl.u32 %v9734_v7, %v1331_v26  ;;  %v1333_v52 = vshll.u32 %v9739_v3, %v1330_v18  ;;  %v1336_v51 = vshll.u32 %v9736_v5, %v1330_v18 }
  0xe1   : > { %v1339_v0 = vshll.u32 %v9734_v7, %v1330_v18  ;;  %v1340_v13 = vshrl.u32 %v9749_v9, %v1331_v26  ;;  %v941_v4 = vsel %vm939_vm4, %v929_v22, 2102212464  ;;  %v1329_v40 = vshrl.u32 %v1328_v1, 5 }
  0xe2   : > { %v1342_v58 = vshll.u32 %v9749_v9, %v1330_v18  ;;  %v1343_v48 = vshrl.u32 %v9752_v14, %v1331_v26  ;;  %vm6171_vm9 = vcmp.lt.s32.totalorder %v7654_v19, 0  ;;  %v940_v63 = vsel %vm936_vm5, %v920_v53, %v923_v29 }
  0xe3   : > { %v1335_v8 = vor.u32 %v1334_v46, %v1333_v52  ;;  %v1338_v12 = vor.u32 %v1337_v47, %v1336_v51  ;;  %v1341_v44 = vor.u32 %v1340_v13, %v1339_v0  ;;  %v1176_v61 = vsub.s32 0, %v7658_v32  ;;  %v737_v0 = vpop.permute.xlu1 %736 }
  0xe4   : > { %v1344_v15 = vor.u32 %v1343_v48, %v1342_v58  ;;  %v1345_v60 = vshll.u32 %v9752_v14, %v1330_v18  ;;  %v1346_v22 = vshrl.u32 %v9744_v17, %v1331_v26  ;;  %v942_v1 = vsel %vm938_vm6, %v7611_v35, %v941_v4 }
  0xe5   : > { %v962_v16 = vadd.s32 1, %v7649_v23  ;;  %v1364_v6 = vshll.u32 %v1324_v11, 8  ;;  %v7687_v20 = vmul.f32 %v7406_v33, %v722_v49  ;;  %v1332_v29 = vshrl.u32 %v9739_v3, %v1331_v26 }
  0xe6   : > { %v1347_v53 = vor.u32 %v1346_v22, %v1345_v60  ;;  %vm1348_vm10 = vcmp.lt.s32.totalorder %v1329_v40, 1  ;;  %vm1351_vm11 = vcmp.lt.s32.totalorder %v1329_v40, 4  ;;  %vm1350_vm12 = vcmp.lt.s32.totalorder %v1329_v40, 3 }
  0xe7   : > { %9804 = vst [vmem:[#allocation9_spill] sm:$0xff] %v7687_v20  ;;  %v1353_v41 = vsel %vm1351_vm11, %v1341_v44, 2102212464  ;;  %v1356_v18 = vsel %vm1348_vm10, %v1335_v8, %v1338_v12  ;;  %v1357_v46 = vsel %vm1351_vm11, %v1344_v15, 920167782  ;;  %vm961_vm13 = vc.u32 %v7664_v42, %v7648_v21 }
  0xe8   : > { %vm1349_vm14 = vcmp.lt.s32.totalorder %v1329_v40, 2  ;;  %v1358_v35 = vsel %vm1350_vm12, %v1341_v44, %v1357_v46  ;;  %v1360_v47 = vsel %vm1348_vm10, %v1338_v12, %v1341_v44  ;;  %v943_v11 = vsel %vm937_vm7, %v940_v63, %v942_v1 }
  0xe9   : > { %v1352_v52 = vsel %vm1348_vm10, %v1332_v29, %v1335_v8  ;;  %v1359_v51 = vsel %vm1349_vm14, %v1356_v18, %v1358_v35  ;;  %v1361_v26 = vsel %vm1351_vm11, %v1347_v53, 1326507024  ;;  %v1354_v13 = vsel %vm1350_vm12, %v1338_v12, %v1353_v41 }
  0xea   : > { %v1362_v4 = vsel %vm1350_vm12, %v1344_v15, %v1361_v26  ;;  %v7695_v58 = vmul.u32.u64.low %v1364_v6, %v1359_v51  ;;  %v7696_v48 = vmul.u32.u64.high %v1364_v6, %v1359_v51, %v7695_v58  ;;  %v6181_v49 = vmin.u32 %v1176_v61, %v7658_v32 }
  0xeb   : > { %v963_v60 = vsel %vm961_vm13, %v962_v16, %v7649_v23  ;;  %v1363_v44 = vsel %vm1349_vm14, %v1360_v47, %v1362_v4  ;;  %v1216_v2 = vand.u32 2139095040, %v7687_v20  ;;  %v959_v63 = vmul.u32 %v7631_v56, %v943_v11 }
  0xec   : > { %v7704_v8 = vmul.u32.u64.low %v1364_v6, %v1363_v44  ;;  %v7705_v22 = vmul.u32.u64.high %v1364_v6, %v1363_v44, %v7704_v8  ;;  %v7708_v12 = vmul.f32 %v7406_v33, %v737_v0  ;;  %v1087_v15 = vand.u32 2147483647, %v7656_v27 }
  0xed   : > { %v1355_v1 = vsel %vm1349_vm14, %v1352_v52, %v1354_v13  ;;  %v1217_v29 = vshrl.u32 %v1216_v2, 23  ;;  %v7715_v23 = vsel %vm6171_vm9, 0, %v7654_v19  ;;  %v964_v61 = vadd.s32 %v963_v60, %v959_v63 }
  0xee   : > { %9805 = vst [vmem:[#allocation10_spill] sm:$0xff] %v7708_v12  ;;  %v1374_v16 = vadd.s32 1, %v7696_v48  ;;  %v1089_v56 = vcvt.s32.f32 %v7652_v25  ;;  %v1178_v53 = vclz %v6181_v49  ;;  %v1371_v18 = vmul.u32 %v1364_v6, %v1355_v1 }
  0xef   : > { %v6184_v41 = vadd.s32 4294967169, %v1217_v29  ;;  %vm1373_vm15 = vc.u32 %v7705_v22, %v7695_v58  ;;  %v1525_v27 = vand.u32 2139095040, %v7708_v12  ;;  %v877_v46 = vsub.s32 4294967266, %v7715_v23 }
  0xf0   : > { %v1090_v40 = vmul.f32 %v1089_v56, %v1087_v15  ;;  %v1375_v35 = vsel %vm1373_vm15, %v1374_v16, %v7696_v48  ;;  %v965_v47 = vadd.s32 536870912, %v964_v61  ;;  %v9731_v52 = vand.u32 2147483647, %v7687_v20 }
  0xf1   : > { %v1223_v19 = vadd.s32 1, %v6184_v41  ;;  %v1376_v11 = vadd.s32 %v1375_v35, %v1371_v18  ;;  %v6182_v51 = vadd.s32 4294967294, %v1178_v53  ;;  %v1526_v25 = vshrl.u32 %v1525_v27, 23 }
  0xf2   : > { %v1091_v26 = vxor.u32 2147483648, %v1090_v40  ;;  %v873_v6 = vsub.s32 32, %v7715_v23  ;;  %v7726_v0 = vadd.s32 127, %v877_v46  ;;  %v7728_v4 = vshrl.u32 %v965_v47, 30 }
  0xf3   : > { %vm1224_vm0 = vcmp.gt.s32.totalorder %v1223_v19, 0  ;;  %v1377_v49 = vadd.s32 536870912, %v1376_v11  ;;  %v1220_v48 = vand.u32 8388607, %v9731_v52  ;;  %v857_v60 = vadd.s32 %v7496_v24, %v7503_v28 }
  0xf4   : > { %v1225_v13 = vsel %vm1224_vm0, %v1223_v19, 0  ;;  %9806 = vst [vmem:[#allocation11_spill] sm:$0xff] %v7728_v4  ;;  %vm6183_vm1 = vcmp.lt.s32.totalorder %v6182_v51, 0  ;;  %vm1009_vm2 = vcmp.lt.s32.totalorder %v7409_v36, 0  ;;  %v1093_v2 = vsub.s32 4, %v7505_v30 }
  0xf5   : > { %v1227_v44 = vand.u32 31, %v1225_v13  ;;  %v874_v63 = vshll.u32 %v7589_v59, %v7715_v23  ;;  %v6196_v8 = vadd.s32 4294967169, %v1526_v25  ;;  %v1092_v15 = vsel %vm1009_vm2, %v1091_v26, %v1090_v40 }
  0xf6   : > { %v875_v1 = vshrl.u32 %v857_v60, %v873_v6  ;;  %v879_v29 = vshll.u32 %v7726_v0, 23  ;;  %v7741_v56 = vsel %vm6183_vm1, 0, %v6182_v51  ;;  %v967_v24 = vshll.u32 %v7728_v4, 30 }
  0xf7   : > { %v1228_v16 = vsub.s32 32, %v1227_v44  ;;  %v7744_v28 = vshrl.u32 %v1377_v49, 30  ;;  %v1221_v53 = vor.u32 8388608, %v1220_v48  ;;  %v1230_v41 = vshll.u32 %v9739_v3, %v1227_v44 }
  0xf8   : > { %v1233_v59 = vshll.u32 %v9736_v5, %v1227_v44  ;;  %v1226_v27 = vshrl.u32 %v1225_v13, 5  ;;  %v1236_v40 = vshll.u32 %v9734_v7, %v1227_v44  ;;  %v1532_v35 = vadd.s32 1, %v6196_v8 }
  0xf9   : > { %v1231_v18 = vshrl.u32 %v9736_v5, %v1228_v16  ;;  %v1234_v23 = vshrl.u32 %v9734_v7, %v1228_v16  ;;  %v1237_v46 = vshrl.u32 %v9749_v9, %v1228_v16  ;;  %v1239_v51 = vshll.u32 %v9749_v9, %v1227_v44 }
  0xfa   : > { %v1240_v25 = vshrl.u32 %v9752_v14, %v1228_v16  ;;  %v1379_v26 = vshll.u32 %v7744_v28, 30  ;;  %v1242_v0 = vshll.u32 %v9752_v14, %v1227_v44  ;;  %v1243_v49 = vshrl.u32 %v9744_v17, %v1228_v16 }
  0xfb   : > { %v1232_v19 = vor.u32 %v1231_v18, %v1230_v41  ;;  %v1235_v47 = vor.u32 %v1234_v23, %v1233_v59  ;;  %v1238_v6 = vor.u32 %v1237_v46, %v1236_v40  ;;  %vm7759_vm3 = vcmp.le.f32.partialorder %v1007_v38, 0.7853982 }
  0xfc   : > { %v1186_v48 = vsub.s32 4294967266, %v7741_v56  ;;  %v7764_v60 = vsub.s32 %v964_v61, %v967_v24  ;;  %v1241_v8 = vor.u32 %v1240_v25, %v1239_v51  ;;  %v1261_v41 = vshll.u32 %v1221_v53, 8 }
  0xfd   : > { %v1229_v18 = vshrl.u32 %v9739_v3, %v1228_v16  ;;  %v1244_v59 = vor.u32 %v1243_v49, %v1242_v0  ;;  %vm1245_vm4 = vcmp.lt.s32.totalorder %v1226_v27, 1  ;;  %vm1248_vm5 = vcmp.lt.s32.totalorder %v1226_v27, 4 }
  0xfe   : > { %vm1247_vm6 = vcmp.lt.s32.totalorder %v1226_v27, 3  ;;  %v1250_v44 = vsel %vm1248_vm5, %v1238_v6, 2102212464  ;;  %v1253_v23 = vsel %vm1245_vm4, %v1232_v19, %v1235_v47  ;;  %v1254_v40 = vsel %vm1248_vm5, %v1241_v8, 920167782 }
  0xff   : > { %v7767_v46 = vsub.s32 %v1376_v11, %v1379_v26  ;;  %vm1246_vm7 = vcmp.lt.s32.totalorder %v1226_v27, 2  ;;  %v1255_v38 = vsel %vm1247_vm6, %v1238_v6, %v1254_v40  ;;  %vm1533_vm8 = vcmp.gt.s32.totalorder %v1532_v35, 0  ;;  %v732_v40 = vpop.permute.xlu0 %731 }
 0x100   : > { %v1249_v10 = vsel %vm1245_vm4, %v1229_v18, %v1232_v19  ;;  %v1256_v61 = vsel %vm1246_vm7, %v1253_v23, %v1255_v38  ;;  %v1257_v24 = vsel %vm1245_vm4, %v1235_v47, %v1238_v6  ;;  %v1258_v51 = vsel %vm1248_vm5, %v1244_v59, 1326507024 }
 0x101   : > { %v1251_v53 = vsel %vm1247_vm6, %v1235_v47, %v1250_v44  ;;  %v1259_v25 = vsel %vm1247_vm6, %v1241_v8, %v1258_v51  ;;  %v7770_v16 = vmul.u32.u64.low %v1261_v41, %v1256_v61  ;;  %v7771_v0 = vmul.u32.u64.high %v1261_v41, %v1256_v61, %v7770_v16 }
 0x102   : > { %v7774_v49 = vadd.s32 127, %v1186_v48  ;;  %v970_v45 = vsub.s32 0, %v7764_v60  ;;  %v1260_v11 = vsel %vm1246_vm7, %v1257_v24, %v1259_v25  ;;  %v1534_v26 = vsel %vm1533_vm8, %v1532_v35, 0 }
 0x103   : > { %v7778_v52 = vor.u32 %v875_v1, %v874_v63  ;;  %v1166_v19 = vadd.s32 %v7562_v39, %v7560_v34  ;;  %v1382_v47 = vsub.s32 0, %v7767_v46  ;;  %v9732_v6 = vand.u32 2147483647, %v7708_v12 }
 0x104   : > { %v1252_v8 = vsel %vm1246_vm7, %v1249_v10, %v1251_v53  ;;  %v7785_v18 = vmul.u32.u64.low %v1261_v41, %v1260_v11  ;;  %v7786_v48 = vmul.u32.u64.high %v1261_v41, %v1260_v11, %v7785_v18  ;;  %v1536_v59 = vand.u32 31, %v1534_v26 }
 0x105   : > { %v7791_v35 = vsel %vm7759_vm3, %v7409_v36, %v1092_v15  ;;  %v7793_v63 = vor.u32 4788187, %v879_v29  ;;  %v1271_v1 = vadd.s32 1, %v7771_v0  ;;  %v7797_v34 = vmul.f32 %v7406_v33, %v732_v40 }
 0x106   : > { %v1182_v39 = vsub.s32 32, %v7741_v56  ;;  %v1188_v10 = vshll.u32 %v7774_v49, 23  ;;  %v6173_v27 = vmin.u32 %v970_v45, %v7764_v60  ;;  %v1537_v44 = vsub.s32 32, %v1536_v59 }
 0x107   : > { %9809 = vst [vmem:[#allocation12_spill] sm:$0xff] %v7797_v34  ;;  %v6189_v23 = vmin.u32 %v1382_v47, %v7767_v46  ;;  %v1268_v38 = vmul.u32 %v1261_v41, %v1252_v8  ;;  %v1529_v15 = vand.u32 8388607, %v9732_v6  ;;  %v7805_v29 = vshrl.u32 %v1534_v26, 5 }
 0x108   : > { %vm1270_vm9 = vc.u32 %v7786_v48, %v7770_v16  ;;  %v1539_v61 = vshll.u32 %v9739_v3, %v1536_v59  ;;  %v1540_v24 = vshrl.u32 %v9736_v5, %v1537_v44  ;;  %v1542_v51 = vshll.u32 %v9736_v5, %v1536_v59 }
 0x109   : > { %v1272_v45 = vsel %vm1270_vm9, %v1271_v1, %v7771_v0  ;;  %v1543_v53 = vshrl.u32 %v9734_v7, %v1537_v44  ;;  %v1545_v41 = vshll.u32 %v9734_v7, %v1536_v59  ;;  %v1548_v25 = vshll.u32 %v9749_v9, %v1536_v59 }
 0x10a   : > { %v7816_v49 = vadd.s32 %v1272_v45, %v1268_v38  ;;  %v1541_v11 = vor.u32 %v1540_v24, %v1539_v61  ;;  %v1546_v26 = vshrl.u32 %v9749_v9, %v1537_v44  ;;  %v1549_v40 = vshrl.u32 %v9752_v14, %v1537_v44 }
 0x10b   : > { %v1530_v47 = vor.u32 8388608, %v1529_v15  ;;  %v1544_v8 = vor.u32 %v1543_v53, %v1542_v51  ;;  %v1551_v18 = vshll.u32 %v9752_v14, %v1536_v59  ;;  %v1552_v6 = vshrl.u32 %v9744_v17, %v1537_v44 }
 0x10c   : > { %v972_v0 = vclz %v6173_v27  ;;  %v1547_v1 = vor.u32 %v1546_v26, %v1545_v41  ;;  %v1550_v54 = vor.u32 %v1549_v40, %v1548_v25  ;;  %v1422_v7 = vand.u32 2139095040, %v7797_v34 }
 0x10d   : > { %v1274_v5 = vadd.s32 536870912, %v7816_v49  ;;  %v1553_v38 = vor.u32 %v1552_v6, %v1551_v18  ;;  %vm1554_vm10 = vcmp.lt.s32.totalorder %v7805_v29, 1  ;;  %vm1557_vm11 = vcmp.lt.s32.totalorder %v7805_v29, 4 }
 0x10e   : > { %v1384_v61 = vclz %v6189_v23  ;;  %vm1556_vm12 = vcmp.lt.s32.totalorder %v7805_v29, 3  ;;  %v1562_v59 = vsel %vm1554_vm10, %v1541_v11, %v1544_v8  ;;  %v1563_v27 = vsel %vm1557_vm11, %v1550_v54, 920167782 }
 0x10f   : > { %v1184_v15 = vshrl.u32 %v1166_v19, %v1182_v39  ;;  %vm1555_vm13 = vcmp.lt.s32.totalorder %v7805_v29, 2  ;;  %v1564_v24 = vsel %vm1556_vm12, %v1547_v1, %v1563_v27  ;;  %v7834_v6 = vshll.u32 %v1530_v47, 8 }
 0x110   : > { %v6174_v51 = vadd.s32 4294967294, %v972_v0  ;;  %v1565_v23 = vsel %vm1555_vm13, %v1562_v59, %v1564_v24  ;;  %v1566_v45 = vsel %vm1554_vm10, %v1544_v8, %v1547_v1  ;;  %v1423_v53 = vshrl.u32 %v1422_v7, 23 }
 0x111   : > { %vm1112_vm14 = vcmp.lt.s32.totalorder %v7418_v43, 0  ;;  %v7841_v41 = vshrl.u32 %v1274_v5, 30  ;;  %v1567_v19 = vsel %vm1557_vm11, %v1553_v38, 1326507024  ;;  %v1183_v26 = vshll.u32 %v7658_v32, %v7741_v56 }
 0x112   : > { %v7846_v39 = vmul.u32.u64.low %v7834_v6, %v1565_v23  ;;  %v7847_v25 = vmul.u32.u64.high %v7834_v6, %v1565_v23, %v7846_v39  ;;  %v1189_v40 = vor.u32 4788187, %v1188_v10  ;;  %v6190_v47 = vadd.s32 4294967294, %v1384_v61  ;;  %v747_v23 = vpop.permute.xlu1 %746 }
 0x113   : > { %v1568_v7 = vsel %vm1556_vm12, %v1550_v54, %v1567_v19  ;;  %v881_v18 = vand.u32 2147483647, %v7793_v63  ;;  %v883_v5 = vcvt.s32.f32 %v7778_v52  ;;  %v1559_v0 = vsel %vm1557_vm11, %v1547_v1, 2102212464 }
 0x114   : > { %v1569_v38 = vsel %vm1555_vm13, %v1566_v45, %v1568_v7  ;;  %vm7862_vm15 = vcmp.le.f32.partialorder %v1110_v31, 0.7853982  ;;  %v1185_v32 = vor.u32 %v1184_v15, %v1183_v26  ;;  %v1538_v56 = vshrl.u32 %v9739_v3, %v1537_v44 }
 0x115   : > { %v7868_v54 = vmul.u32.u64.low %v7834_v6, %v1569_v38  ;;  %v7869_v63 = vmul.u32.u64.high %v7834_v6, %v1569_v38, %v7868_v54  ;;  %v1196_v52 = vsub.s32 4, %v7620_v57  ;;  %vm6175_vm0 = vcmp.lt.s32.totalorder %v6174_v51, 0 }
 0x116   : > { %v1276_v10 = vshll.u32 %v7841_v41, 30  ;;  %v6192_v1 = vadd.s32 4294967169, %v1423_v53  ;;  %v1190_v61 = vand.u32 2147483647, %v1189_v40  ;;  %vm6191_vm1 = vcmp.lt.s32.totalorder %v6190_v47, 0 }
 0x117   : > { %v1558_v31 = vsel %vm1554_vm10, %v1538_v56, %v1541_v11  ;;  %v1560_v27 = vsel %vm1556_vm12, %v1544_v8, %v1559_v0  ;;  %v1094_v44 = vsel %vm1009_vm2, %v1093_v2, %v7505_v30  ;;  %7011 = vcosq.f32 %v7791_v35 }
 0x118   : > { %v1580_v15 = vadd.s32 1, %v7847_v25  ;;  %v1429_v24 = vadd.s32 1, %v6192_v1  ;;  %v7884_v45 = vmul.f32 %v883_v5, %v881_v18  ;;  %v1192_v53 = vcvt.s32.f32 %v1185_v32 }
 0x119   : > { %v7886_v19 = vsel %vm6175_vm0, 0, %v6174_v51  ;;  %vm1579_vm4 = vc.u32 %v7869_v63, %v7846_v39  ;;  %v7890_v11 = vsel %vm6191_vm1, 0, %v6190_v47  ;;  %v7893_v8 = vsub.s32 %v7816_v49, %v1276_v10 }
 0x11a   : > { %v1561_v30 = vsel %vm1555_vm13, %v1558_v31, %v1560_v27  ;;  %vm1430_vm2 = vcmp.gt.s32.totalorder %v1429_v24, 0  ;;  %v7897_v2 = vmul.f32 %v1192_v53, %v1190_v61  ;;  %v1197_v26 = vsel %vm1112_vm14, %v1196_v52, %v7620_v57 }
 0x11b   : > { %v1431_v51 = vsel %vm1430_vm2, %v1429_v24, 0  ;;  %v7903_v40 = vmul.f32 %v7406_v33, %v747_v23  ;;  %v7907_v47 = vsel %vm7759_vm3, 0, %v1094_v44  ;;  %7013 = vsinq.f32 %v7791_v35 }
 0x11c   : > { %9813 = vst [vmem:[#allocation14_spill] sm:$0xff] %v7907_v47  ;;  %v1581_v29 = vsel %vm1579_vm4, %v1580_v15, %v7847_v25  ;;  %v1433_v49 = vand.u32 31, %v1431_v51  ;;  %v980_v7 = vsub.s32 4294967266, %v7886_v19  ;;  %v1392_v18 = vsub.s32 4294967266, %v7890_v11 }
 0x11d   : > { %9812 = vst [vmem:[#allocation13_spill] sm:$0xff] %v7903_v40  ;;  %v1577_v5 = vmul.u32 %v7834_v6, %v1561_v30  ;;  %v9738_v57 = vand.u32 2147483647, %v7797_v34  ;;  %v7918_v13 = vsel %vm7862_vm15, 0, %v1197_v26  ;;  %v1279_v0 = vsub.s32 0, %v7893_v8 }
 0x11e   : > { %9814 = vst [vmem:[#allocation15_spill] sm:$0xff] %v7918_v13  ;;  %v1434_v35 = vsub.s32 32, %v1433_v49  ;;  %v1194_v25 = vxor.u32 2147483648, %v7897_v2  ;;  %v960_v38 = vadd.s32 %v7648_v21, %v7664_v42  ;;  %v1731_v6 = vand.u32 2139095040, %v7903_v40 }
 0x11f   : > { %v7924_v32 = vadd.s32 %v1581_v29, %v1577_v5  ;;  %v976_v56 = vsub.s32 32, %v7886_v19  ;;  %v1372_v54 = vadd.s32 %v7695_v58, %v7705_v22  ;;  %v9815_v52 = vmov 2475754826  }
 0x120   : > { %v1437_v10 = vshrl.u32 %v9815_v52, %v1434_v35  ;;  %v9816_v1 = vmov 2131351028   ;;  %v7932_v31 = vadd.s32 127, %v980_v7  ;;  %v1388_v27 = vsub.s32 32, %v7890_v11 }
 0x121   : > { %v1440_v61 = vshrl.u32 %v9816_v1, %v1434_v35  ;;  %v1393_v44 = vadd.s32 127, %v1392_v18  ;;  %v1426_v21 = vand.u32 8388607, %v9738_v57  ;;  %v6185_v42 = vmin.u32 %v1279_v0, %v7893_v8 }
 0x122   : > { %v1436_v15 = vshll.u32 %v9739_v3, %v1433_v49  ;;  %v1439_v24 = vshll.u32 %v9815_v52, %v1433_v49  ;;  %v1443_v58 = vshrl.u32 %v9749_v9, %v1434_v35  ;;  %v1583_v22 = vadd.s32 536870912, %v7924_v32 }
 0x123   : > { %v1432_v23 = vshrl.u32 %v1431_v51, 5  ;;  %v1442_v53 = vshll.u32 %v9816_v1, %v1433_v49  ;;  %v1732_v30 = vshrl.u32 %v1731_v6, 23  ;;  %v1445_v7 = vshll.u32 %v9749_v9, %v1433_v49 }
 0x124   : > { %v1438_v26 = vor.u32 %v1437_v10, %v1436_v15  ;;  %v1441_v29 = vor.u32 %v1440_v61, %v1439_v24  ;;  %v1446_v18 = vshrl.u32 %v9752_v14, %v1434_v35  ;;  %v7945_v5 = vpop.eup %7011  ;;  %v1427_v0 = vor.u32 8388608, %v1426_v21 }
 0x125   : > { %9817 = vst [vmem:[#allocation16_spill] sm:$0xff] %v7945_v5  ;;  %v1444_v57 = vor.u32 %v1443_v58, %v1442_v53  ;;  %v1448_v33 = vshll.u32 %v9752_v14, %v1433_v49  ;;  %v1449_v3 = vshrl.u32 %v9744_v17, %v1434_v35  ;;  %v1389_v51 = vshll.u32 %v7767_v46, %v7890_v11 }
 0x126   : > { %v1390_v36 = vshrl.u32 %v1372_v54, %v1388_v27  ;;  %v1281_v13 = vclz %v6185_v42  ;;  %v1447_v6 = vor.u32 %v1446_v18, %v1445_v7  ;;  %v7951_v10 = vshrl.u32 %v1583_v22, 30 }
 0x127   : > { %v1450_v61 = vor.u32 %v1449_v3, %v1448_v33  ;;  %vm1451_vm3 = vcmp.lt.s32.totalorder %v1432_v23, 1  ;;  %vm1454_vm5 = vcmp.lt.s32.totalorder %v1432_v23, 4  ;;  %vm803_vm6 = vcmp.lt.s32.totalorder %v7412_v37, 0 }
 0x128   : > { %vm1453_vm7 = vcmp.lt.s32.totalorder %v1432_v23, 3  ;;  %v1459_v21 = vsel %vm1451_vm3, %v1438_v26, %v1441_v29  ;;  %v1460_v15 = vsel %vm1454_vm5, %v1447_v6, 920167782  ;;  %v6204_v49 = vadd.s32 4294967169, %v1732_v30  ;;  %v7955_v24 = vpop.eup %7013 }
 0x129   : > { %9818 = vst [vmem:[#allocation17_spill] sm:$0xff] %v7955_v24  ;;  %v1394_v58 = vshll.u32 %v1393_v44, 23  ;;  %vm1452_vm8 = vcmp.lt.s32.totalorder %v1432_v23, 2  ;;  %v1461_v46 = vsel %vm1453_vm7, %v1444_v57, %v1460_v15  ;;  %v1467_v11 = vshll.u32 %v1427_v0, 8 }
 0x12a   : > { %v1456_v54 = vsel %vm1454_vm5, %v1444_v57, 2102212464  ;;  %v1462_v27 = vsel %vm1452_vm8, %v1459_v21, %v1461_v46  ;;  %v1463_v3 = vsel %vm1451_vm3, %v1441_v29, %v1444_v57  ;;  %v1464_v33 = vsel %vm1454_vm5, %v1450_v61, 1326507024 }
 0x12b   : > { %v6186_v42 = vadd.s32 4294967294, %v1281_v13  ;;  %v1585_v22 = vshll.u32 %v7951_v10, 30  ;;  %v9819_v53 = vmov 683565275   ;;  %v1465_v30 = vsel %vm1453_vm7, %v1447_v6, %v1464_v33 }
 0x12c   : > { %v1435_v7 = vshrl.u32 %v9819_v53, %v1434_v35  ;;  %v1466_v18 = vsel %vm1452_vm8, %v1463_v3, %v1465_v30  ;;  %v7964_v44 = vmul.u32.u64.low %v1467_v11, %v1462_v27  ;;  %v7965_v17 = vmul.u32.u64.high %v1467_v11, %v1462_v27, %v7964_v44 }
 0x12d   : > { %v1738_v0 = vadd.s32 1, %v6204_v49  ;;  %v1457_v21 = vsel %vm1453_vm7, %v1441_v29, %v1456_v54  ;;  %v7970_v57 = vmul.u32.u64.low %v1467_v11, %v1466_v18  ;;  %v7971_v61 = vmul.u32.u64.high %v1467_v11, %v1466_v18, %v7970_v57 }
 0x12e   : > { %v1455_v15 = vsel %vm1451_vm3, %v1435_v7, %v1438_v26  ;;  %v1195_v13 = vsel %vm1112_vm14, %v1194_v25, %v7897_v2  ;;  %v977_v35 = vshll.u32 %v7764_v60, %v7886_v19  ;;  %v978_v6 = vshrl.u32 %v960_v38, %v976_v56  ;;  %v742_v25 = vpop.permute.xlu0 %741  ;;  %v8012_v7 = vld [vmem:[%s9710_s3] ss:$0 sm:$0xff] }
 0x12f   : > { %vm1739_vm9 = vcmp.gt.s32.totalorder %v1738_v0, 0  ;;  %v982_v46 = vshll.u32 %v7932_v31, 23  ;;  %v1391_v27 = vor.u32 %v1390_v36, %v1389_v51  ;;  %v1395_v49 = vor.u32 4788187, %v1394_v58 }
 0x130   : > { %vm6187_vm10 = vcmp.lt.s32.totalorder %v6186_v42, 0  ;;  %v1458_v26 = vsel %vm1452_vm8, %v1455_v15, %v1457_v21  ;;  %v1477_v29 = vadd.s32 1, %v7965_v17  ;;  %v9746_v54 = vand.u32 2147483647, %v7903_v40 }
 0x131   : > { %v1740_v3 = vsel %vm1739_vm9, %v1738_v0, 0  ;;  %v9820_v2 = vxor.u32 2147483648, %v7884_v45  ;;  %v7992_v36 = vsel %vm7862_vm15, %v7418_v43, %v1195_v13  ;;  %v7995_v19 = vsub.s32 %v7924_v32, %v1585_v22 }
 0x132   : > { %vm1476_vm11 = vc.u32 %v7971_v61, %v7964_v44  ;;  %v7999_v38 = vor.u32 %v978_v6, %v977_v35  ;;  %v8001_v56 = vsel %vm6187_vm10, 0, %v6186_v42  ;;  %v8004_v23 = vor.u32 4788187, %v982_v46 }
 0x133   : > { %v7987_v60 = vsel %vm803_vm6, %v9820_v2, %v7884_v45  ;;  %v1478_v31 = vsel %vm1476_vm11, %v1477_v29, %v7965_v17  ;;  %v1742_v45 = vand.u32 31, %v1740_v3  ;;  %v1398_v51 = vcvt.s32.f32 %v1391_v27 }
 0x134   : > { %v1474_v58 = vmul.u32 %v1467_v11, %v1458_v26  ;;  %v1396_v33 = vand.u32 2147483647, %v1395_v49  ;;  %v1735_v32 = vand.u32 8388607, %v9746_v54  ;;  %v8015_v42 = vmul.f32 %v8012_v7, %v742_v25 }
 0x135   : > { %v1743_v22 = vsub.s32 32, %v1742_v45  ;;  %v1289_v17 = vsub.s32 4294967266, %v8001_v56  ;;  %v1588_v30 = vsub.s32 0, %v7995_v19  ;;  %v1745_v11 = vshll.u32 %v9819_v53, %v1742_v45 }
 0x136   : > { %v8019_v18 = vadd.s32 %v1478_v31, %v1474_v58  ;;  %v1748_v15 = vshll.u32 %v9815_v52, %v1742_v45  ;;  %v1741_v13 = vshrl.u32 %v1740_v3, 5  ;;  %v1751_v35 = vshll.u32 %v9816_v1, %v1742_v45 }
 0x137   : > { %v1746_v0 = vshrl.u32 %v9815_v52, %v1743_v22  ;;  %v1749_v21 = vshrl.u32 %v9816_v1, %v1743_v22  ;;  %v1752_v57 = vshrl.u32 %v9749_v9, %v1743_v22  ;;  %v1754_v6 = vshll.u32 %v9749_v9, %v1742_v45 }
 0x138   : > { %v1755_v46 = vshrl.u32 %v9752_v14, %v1743_v22  ;;  %v1736_v27 = vor.u32 8388608, %v1735_v32  ;;  %v9821_v29 = vmov 1326507024   ;;  %v986_v25 = vcvt.s32.f32 %v7999_v38 }
 0x139   : > { %v1747_v49 = vor.u32 %v1746_v0, %v1745_v11  ;;  %v1750_v26 = vor.u32 %v1749_v21, %v1748_v15  ;;  %v1758_v2 = vshrl.u32 %v9821_v29, %v1743_v22  ;;  %v1753_v31 = vor.u32 %v1752_v57, %v1751_v35 }
 0x13a   : > { %v1756_v58 = vor.u32 %v1755_v46, %v1754_v6  ;;  %v1757_v54 = vshll.u32 %v9752_v14, %v1742_v45  ;;  %v984_v59 = vand.u32 2147483647, %v8004_v23  ;;  %v1399_v3 = vmul.f32 %v1398_v51, %v1396_v33 }
 0x13b   : > { %v1285_v43 = vsub.s32 32, %v8001_v56  ;;  %v1480_v9 = vadd.s32 536870912, %v8019_v18  ;;  %v1290_v47 = vadd.s32 127, %v1289_v17  ;;  %v6197_v32 = vmin.u32 %v1588_v30, %v7995_v19 }
 0x13c   : > { %v1759_v11 = vor.u32 %v1758_v2, %v1757_v54  ;;  %vm1760_vm12 = vcmp.lt.s32.totalorder %v1741_v13, 1  ;;  %vm1763_vm13 = vcmp.lt.s32.totalorder %v1741_v13, 4  ;;  %v1776_v15 = vshll.u32 %v1736_v27, 8 }
 0x13d   : > { %v1768_v0 = vsel %vm1760_vm12, %v1747_v49, %v1750_v26  ;;  %v1628_v38 = vand.u32 2139095040, %v8015_v42  ;;  %vm1318_vm14 = vcmp.lt.s32.totalorder %v7576_v55, 0  ;;  %v1744_v45 = vshrl.u32 %v9819_v53, %v1743_v22 }
 0x13e   : > { %vm1762_vm15 = vcmp.lt.s32.totalorder %v1741_v13, 3  ;;  %v1765_v23 = vsel %vm1763_vm13, %v1753_v31, 2102212464  ;;  %v1769_v51 = vsel %vm1763_vm13, %v1756_v58, 920167782  ;;  %v8041_v33 = vshrl.u32 %v1480_v9, 30 }
 0x13f   : > { %vm1761_vm0 = vcmp.lt.s32.totalorder %v1741_v13, 2  ;;  %v1770_v17 = vsel %vm1762_vm15, %v1753_v31, %v1769_v51  ;;  %v1772_v54 = vsel %vm1760_vm12, %v1750_v26, %v1753_v31  ;;  %v1590_v30 = vclz %v6197_v32 }
 0x140   : > { %v1764_v21 = vsel %vm1760_vm12, %v1744_v45, %v1747_v49  ;;  %v1771_v57 = vsel %vm1761_vm0, %v1768_v0, %v1770_v17  ;;  %v1773_v35 = vsel %vm1763_vm13, %v1759_v11, 1326507024  ;;  %v1766_v6 = vsel %vm1762_vm15, %v1750_v26, %v1765_v23  ;;  %v757_v0 = vpop.permute.xlu1 %756 }
 0x141   : > { %v1774_v46 = vsel %vm1762_vm15, %v1756_v58, %v1773_v35  ;;  %v8045_v27 = vmul.u32.u64.low %v1776_v15, %v1771_v57  ;;  %v8046_v22 = vmul.u32.u64.high %v1776_v15, %v1771_v57, %v8045_v27  ;;  %v1269_v2 = vadd.s32 %v7770_v16, %v7786_v48 }
 0x142   : > { %v1291_v9 = vshll.u32 %v1290_v47, 23  ;;  %v1775_v14 = vsel %vm1761_vm0, %v1772_v54, %v1774_v46  ;;  %v1629_v51 = vshrl.u32 %v1628_v38, 23  ;;  %vm906_vm1 = vcmp.lt.s32.totalorder %v7432_v62, 0 }
 0x143   : > { %v987_v49 = vmul.f32 %v986_v25, %v984_v59  ;;  %v9822_v31 = vand.u32 2147483647, %v7576_v55  ;;  %v1482_v26 = vshll.u32 %v8041_v33, 30  ;;  %v1287_v16 = vshrl.u32 %v1269_v2, %v1285_v43 }
 0x144   : > { %v8060_v58 = vmul.u32.u64.low %v1776_v15, %v1775_v14  ;;  %v8061_v11 = vmul.u32.u64.high %v1776_v15, %v1775_v14, %v8060_v58  ;;  %v6198_v48 = vadd.s32 4294967294, %v1590_v30  ;;  %v1767_v47 = vsel %vm1761_vm0, %v1764_v21, %v1766_v6 }
 0x145   : > { %vm8055_vm4 = vcmp.le.f32.partialorder %v9822_v31, 0.7853982  ;;  %v6200_v38 = vadd.s32 4294967169, %v1629_v51  ;;  %7015 = vcosq.f32 %v7992_v36  ;;  %v1400_v59 = vxor.u32 2147483648, %v1399_v3 }
 0x146   : > { %vm1215_vm2 = vcmp.lt.s32.totalorder %v7687_v20, 0  ;;  %v1786_v25 = vadd.s32 1, %v8046_v22  ;;  %v1286_v45 = vshll.u32 %v7893_v8, %v8001_v56  ;;  %v1292_v23 = vor.u32 4788187, %v1291_v9 }
 0x147   : > { %v1635_v17 = vadd.s32 1, %v6200_v38  ;;  %v8070_v14 = vmul.f32 %v8012_v7, %v757_v0  ;;  %v9825_v43 = vsub.s32 4, %v7744_v28  ;;  %v8078_v54 = vsub.s32 %v8019_v18, %v1482_v26 }
 0x148   : > { %v1783_v30 = vmul.u32 %v1776_v15, %v1767_v47  ;;  %vm1785_vm3 = vc.u32 %v8061_v11, %v8045_v27  ;;  %v988_v21 = vxor.u32 2147483648, %v987_v49  ;;  %v1288_v8 = vor.u32 %v1287_v16, %v1286_v45 }
 0x149   : > { %v1403_v13 = vsel %vm1318_vm14, %v9825_v43, %v7744_v28  ;;  %vm6199_vm5 = vcmp.lt.s32.totalorder %v6198_v48, 0  ;;  %v1787_v56 = vsel %vm1785_vm3, %v1786_v25, %v8046_v22  ;;  %v1401_v57 = vsel %vm1318_vm14, %v1400_v59, %v1399_v3 }
 0x14a   : > { %v1299_v35 = vsub.s32 4, %v7841_v41  ;;  %v8086_v6 = vadd.s32 %v1787_v56, %v1783_v30  ;;  %vm1636_vm7 = vcmp.gt.s32.totalorder %v1635_v17, 0  ;;  %v1293_v28 = vand.u32 2147483647, %v1292_v23 }
 0x14b   : > { %v9754_v18 = vand.u32 2147483647, %v8015_v42  ;;  %v1637_v15 = vsel %vm1636_vm7, %v1635_v17, 0  ;;  %v1937_v46 = vand.u32 2139095040, %v8070_v14  ;;  %7017 = vsinq.f32 %v7992_v36 }
 0x14c   : > { %v8091_v2 = vsel %vm6199_vm5, 0, %v6198_v48  ;;  %v1485_v22 = vsub.s32 0, %v8078_v54  ;;  %v1639_v9 = vand.u32 31, %v1637_v15  ;;  %v8096_v3 = vsel %vm906_vm1, %v988_v21, %v987_v49 }
 0x14d   : > { %9826 = vst [vmem:[#allocation18_spill] sm:$0xff] %v8096_v3  ;;  %v8101_v51 = vsel %vm8055_vm4, %v7576_v55, %v1401_v57  ;;  %v8105_v31 = vsel %vm8055_vm4, 0, %v1403_v13  ;;  %v1295_v26 = vcvt.s32.f32 %v1288_v8  ;;  %v8110_v36 = vsel %vm1215_vm2, %v1299_v35, %v7841_v41 }
 0x14e   : > { %9827 = vst [vmem:[#allocation19_spill] sm:$0xff] %v8105_v31  ;;  %v1578_v58 = vadd.s32 %v7846_v39, %v7869_v63  ;;  %v1789_v49 = vadd.s32 536870912, %v8086_v6  ;;  %v1640_v0 = vsub.s32 32, %v1639_v9  ;;  %v1594_v48 = vsub.s32 32, %v8091_v2 }
 0x14f   : > { %v8115_v16 = vmul.f32 %v1295_v26, %v1293_v28  ;;  %v1632_v32 = vand.u32 8388607, %v9754_v18  ;;  %v1938_v47 = vshrl.u32 %v1937_v46, 23  ;;  %v1598_v38 = vsub.s32 4294967266, %v8091_v2 }
 0x150   : > { %v6193_v59 = vmin.u32 %v1485_v22, %v8078_v54  ;;  %v1642_v41 = vshll.u32 %v9819_v53, %v1639_v9  ;;  %v1643_v25 = vshrl.u32 %v9815_v52, %v1640_v0  ;;  %v1645_v39 = vshll.u32 %v9815_v52, %v1639_v9 }
 0x151   : > { %v1646_v63 = vshrl.u32 %v9816_v1, %v1640_v0  ;;  %v9828_v45 = vmov 2102212464   ;;  %v9829_v17 = vmov 920167782   ;;  %v8128_v13 = vshrl.u32 %v1789_v49, 30 }
 0x152   : > { %v1649_v23 = vshrl.u32 %v9828_v45, %v1640_v0  ;;  %v1652_v43 = vshrl.u32 %v9829_v17, %v1640_v0  ;;  %v1638_v30 = vshrl.u32 %v1637_v15, 5  ;;  %v1648_v21 = vshll.u32 %v9816_v1, %v1639_v9  ;;  %v8132_v56 = vpop.eup %7015 }
 0x153   : > { %v1651_v8 = vshll.u32 %v9828_v45, %v1639_v9  ;;  %9830 = vst [vmem:[#allocation20_spill] sm:$0xff] %v8132_v56  ;;  %v1633_v57 = vor.u32 8388608, %v1632_v32  ;;  %v1644_v35 = vor.u32 %v1643_v25, %v1642_v41  ;;  %v1647_v28 = vor.u32 %v1646_v63, %v1645_v39 }
 0x154   : > { %v6212_v46 = vadd.s32 4294967169, %v1938_v47  ;;  %v9831_v22 = vand.u32 2147483647, %v7687_v20  ;;  %v1650_v18 = vor.u32 %v1649_v23, %v1648_v21  ;;  %v1654_v15 = vshll.u32 %v9829_v17, %v1639_v9 }
 0x155   : > { %v1653_v49 = vor.u32 %v1652_v43, %v1651_v8  ;;  %v1655_v55 = vshrl.u32 %v9821_v29, %v1640_v0  ;;  %v1596_v31 = vshrl.u32 %v1578_v58, %v1594_v48  ;;  %v1599_v5 = vadd.s32 127, %v1598_v38 }
 0x156   : > { %vm8136_vm8 = vcmp.le.f32.partialorder %v9831_v22, 0.7853982  ;;  %v1487_v24 = vclz %v6193_v59  ;;  %v9760_v32 = vand.u32 2147483647, %v8070_v14  ;;  %v1791_v41 = vshll.u32 %v8128_v13, 30 }
 0x157   : > { %v1656_v47 = vor.u32 %v1655_v55, %v1654_v15  ;;  %vm1657_vm9 = vcmp.lt.s32.totalorder %v1638_v30, 1  ;;  %vm1660_vm10 = vcmp.lt.s32.totalorder %v1638_v30, 4  ;;  %vm1659_vm11 = vcmp.lt.s32.totalorder %v1638_v30, 3 }
 0x158   : > { %v1665_v25 = vsel %vm1657_vm9, %v1644_v35, %v1647_v28  ;;  %v1666_v39 = vsel %vm1660_vm10, %v1653_v49, 920167782  ;;  %v1944_v63 = vadd.s32 1, %v6212_v46  ;;  %v1641_v23 = vshrl.u32 %v9819_v53, %v1640_v0  ;;  %v8147_v48 = vpop.eup %7017 }
 0x159   : > { %vm1658_vm12 = vcmp.lt.s32.totalorder %v1638_v30, 2  ;;  %v1667_v9 = vsel %vm1659_vm11, %v1650_v18, %v1666_v39  ;;  %v1673_v58 = vshll.u32 %v1633_v57, 8  ;;  %9834 = vst [vmem:[#allocation21_spill] sm:$0xff] %v8147_v48  ;;  %v1662_v38 = vsel %vm1660_vm10, %v1650_v18, 2102212464  ;;  %v752_v39 = vpop.permute.xlu0 %751 }
 0x15a   : > { %v1668_v59 = vsel %vm1658_vm12, %v1665_v25, %v1667_v9  ;;  %v1669_v55 = vsel %vm1657_vm9, %v1647_v28, %v1650_v18  ;;  %v1670_v43 = vsel %vm1660_vm10, %v1656_v47, 1326507024  ;;  %v6194_v21 = vadd.s32 4294967294, %v1487_v24 }
 0x15b   : > { %v8152_v8 = vsub.s32 %v8086_v6, %v1791_v41  ;;  %v1661_v46 = vsel %vm1657_vm9, %v1641_v23, %v1644_v35  ;;  %v1671_v0 = vsel %vm1659_vm11, %v1653_v49, %v1670_v43  ;;  %vm1945_vm13 = vcmp.gt.s32.totalorder %v1944_v63, 0 }
 0x15c   : > { %v1672_v22 = vsel %vm1658_vm12, %v1669_v55, %v1671_v0  ;;  %v8157_v15 = vmul.u32.u64.low %v1673_v58, %v1668_v59  ;;  %v8158_v57 = vmul.u32.u64.high %v1673_v58, %v1668_v59, %v8157_v15  ;;  %v1663_v25 = vsel %vm1659_vm11, %v1647_v28, %v1662_v38 }
 0x15d   : > { %v8162_v18 = vmul.u32.u64.low %v1673_v58, %v1672_v22  ;;  %v8163_v47 = vmul.u32.u64.high %v1673_v58, %v1672_v22, %v8162_v18  ;;  %v1946_v24 = vsel %vm1945_vm13, %v1944_v63, 0  ;;  %7019 = vcosq.f32 %v8101_v51 }
 0x15e   : > { %v8169_v6 = vsel %vm8136_vm8, 0, %v8110_v36  ;;  %v1600_v35 = vshll.u32 %v1599_v5, 23  ;;  %v1948_v49 = vand.u32 31, %v1946_v24  ;;  %v1595_v41 = vshll.u32 %v7995_v19, %v8091_v2 }
 0x15f   : > { %9835 = vst [vmem:[#allocation22_spill] sm:$0xff] %v8169_v6  ;;  %v1794_v23 = vsub.s32 0, %v8152_v8  ;;  %v1941_v28 = vand.u32 8388607, %v9760_v32  ;;  %v8177_v9 = vmul.f32 %v8012_v7, %v752_v39  ;;  %vm6195_vm14 = vcmp.lt.s32.totalorder %v6194_v21, 0 }
 0x160   : > { %v1664_v63 = vsel %vm1658_vm12, %v1661_v46, %v1663_v25  ;;  %v1683_v38 = vadd.s32 1, %v8158_v57  ;;  %v1949_v36 = vsub.s32 32, %v1948_v49  ;;  %v1597_v59 = vor.u32 %v1596_v31, %v1595_v41 }
 0x161   : > { %vm1682_vm15 = vc.u32 %v8163_v47, %v8157_v15  ;;  %v1601_v19 = vor.u32 4788187, %v1600_v35  ;;  %v8188_v30 = vsel %vm6195_vm14, 0, %v6194_v21  ;;  %v6205_v46 = vmin.u32 %v1794_v23, %v8152_v8 }
 0x162   : > { %v1684_v2 = vsel %vm1682_vm15, %v1683_v38, %v8158_v57  ;;  %v1952_v43 = vshrl.u32 %v9815_v52, %v1949_v36  ;;  %v1955_v0 = vshrl.u32 %v9816_v1, %v1949_v36  ;;  %v1680_v22 = vmul.u32 %v1673_v58, %v1664_v63 }
 0x163   : > { %v1942_v39 = vor.u32 8388608, %v1941_v28  ;;  %v8191_v25 = vshrl.u32 %v1946_v24, 5  ;;  %v1951_v31 = vshll.u32 %v9819_v53, %v1948_v49  ;;  %v1954_v18 = vshll.u32 %v9815_v52, %v1948_v49 }
 0x164   : > { %v1958_v35 = vshrl.u32 %v9828_v45, %v1949_v36  ;;  %v8196_v41 = vadd.s32 %v1684_v2, %v1680_v22  ;;  %v1957_v57 = vshll.u32 %v9816_v1, %v1948_v49  ;;  %v1960_v38 = vshll.u32 %v9828_v45, %v1948_v49 }
 0x165   : > { %v1961_v21 = vshrl.u32 %v9829_v17, %v1949_v36  ;;  %v1953_v32 = vor.u32 %v1952_v43, %v1951_v31  ;;  %v1956_v23 = vor.u32 %v1955_v0, %v1954_v18  ;;  %v1963_v58 = vshll.u32 %v9829_v17, %v1948_v49 }
 0x166   : > { %v1964_v24 = vshrl.u32 %v9821_v29, %v1949_v36  ;;  %v1495_v28 = vsub.s32 4294967266, %v8188_v30  ;;  %v1796_v63 = vclz %v6205_v46  ;;  %v1959_v5 = vor.u32 %v1958_v35, %v1957_v57 }
 0x167   : > { %v1962_v55 = vor.u32 %v1961_v21, %v1960_v38  ;;  %vm1524_vm0 = vcmp.lt.s32.totalorder %v7708_v12, 0  ;;  %v1604_v2 = vcvt.s32.f32 %v1597_v59  ;;  %v1475_v22 = vadd.s32 %v7964_v44, %v7971_v61 }
 0x168   : > { %v1965_v6 = vor.u32 %v1964_v24, %v1963_v58  ;;  %v1834_v56 = vand.u32 2139095040, %v8177_v9  ;;  %v1602_v43 = vand.u32 2147483647, %v1601_v19  ;;  %v1686_v0 = vadd.s32 536870912, %v8196_v41 }
 0x169   : > { %vm1966_vm4 = vcmp.lt.s32.totalorder %v8191_v25, 1  ;;  %vm1969_vm3 = vcmp.lt.s32.totalorder %v8191_v25, 4  ;;  %v1491_v49 = vsub.s32 32, %v8188_v30  ;;  %v1982_v31 = vshll.u32 %v1942_v39, 8 }
 0x16a   : > { %v1974_v46 = vsel %vm1966_vm4, %v1953_v32, %v1956_v23  ;;  %v1975_v59 = vsel %vm1969_vm3, %v1962_v55, 920167782  ;;  %v8216_v44 = vpop.eup %7019  ;;  %v1496_v61 = vadd.s32 127, %v1495_v28  ;;  %v6206_v18 = vadd.s32 4294967294, %v1796_v63 }
 0x16b   : > { %9836 = vst [vmem:[#allocation23_spill] sm:$0xff] %v8216_v44  ;;  %vm1968_vm5 = vcmp.lt.s32.totalorder %v8191_v25, 3  ;;  %v1978_v19 = vsel %vm1966_vm4, %v1956_v23, %v1959_v5  ;;  %vm1967_vm7 = vcmp.lt.s32.totalorder %v8191_v25, 2  ;;  %v1979_v57 = vsel %vm1969_vm3, %v1965_v6, 1326507024 }
 0x16c   : > { %v1976_v35 = vsel %vm1968_vm5, %v1959_v5, %v1975_v59  ;;  %v1835_v38 = vshrl.u32 %v1834_v56, 23  ;;  %v9837_v39 = vand.u32 2147483647, %v7708_v12  ;;  %v8232_v58 = vshrl.u32 %v1686_v0, 30 }
 0x16d   : > { %v1971_v24 = vsel %vm1969_vm3, %v1959_v5, 2102212464  ;;  %v1977_v28 = vsel %vm1967_vm7, %v1974_v46, %v1976_v35  ;;  %v1980_v63 = vsel %vm1968_vm5, %v1962_v55, %v1979_v57  ;;  %vm1421_vm10 = vcmp.lt.s32.totalorder %v7797_v34, 0 }
 0x16e   : > { %vm8228_vm9 = vcmp.le.f32.partialorder %v9837_v39, 0.7853982  ;;  %v1950_v56 = vshrl.u32 %v9819_v53, %v1949_v36  ;;  %v1981_v6 = vsel %vm1967_vm7, %v1978_v19, %v1980_v63  ;;  %v1605_v0 = vmul.f32 %v1604_v2, %v1602_v43 }
 0x16f   : > { %v8244_v59 = vmul.u32.u64.low %v1982_v31, %v1977_v28  ;;  %v8245_v39 = vmul.u32.u64.high %v1982_v31, %v1977_v28, %v8244_v59  ;;  %v1493_v44 = vshrl.u32 %v1475_v22, %v1491_v49  ;;  %vm6207_vm11 = vcmp.lt.s32.totalorder %v6206_v18, 0 }
 0x170   : > { %v8248_v5 = vmul.u32.u64.low %v1982_v31, %v1981_v6  ;;  %v8249_v48 = vmul.u32.u64.high %v1982_v31, %v1981_v6, %v8248_v5  ;;  %v1970_v55 = vsel %vm1966_vm4, %v1950_v56, %v1953_v32  ;;  %v1972_v46 = vsel %vm1968_vm5, %v1956_v23, %v1971_v24  ;;  %v767_v24 = vpop.permute.xlu1 %766 }
 0x171   : > { %v6208_v36 = vadd.s32 4294967169, %v1835_v38  ;;  %7021 = vsinq.f32 %v8101_v51  ;;  %v9840_v19 = vsub.s32 4, %v7951_v10  ;;  %v1497_v22 = vshll.u32 %v1496_v61, 23 }
 0x172   : > { %v1688_v43 = vshll.u32 %v8232_v58, 30  ;;  %v1492_v49 = vshll.u32 %v8078_v54, %v8188_v30  ;;  %v1505_v32 = vsub.s32 4, %v8041_v33  ;;  %v1992_v35 = vadd.s32 1, %v8245_v39 }
 0x173   : > { %v1609_v2 = vsel %vm1524_vm0, %v9840_v19, %v7951_v10  ;;  %v1841_v23 = vadd.s32 1, %v6208_v36  ;;  %v1606_v57 = vxor.u32 2147483648, %v1605_v0  ;;  %v8266_v38 = vsel %vm6207_vm11, 0, %v6206_v18 }
 0x174   : > { %v1973_v51 = vsel %vm1967_vm7, %v1970_v55, %v1972_v46  ;;  %vm1991_vm12 = vc.u32 %v8249_v48, %v8244_v59  ;;  %v9841_v10 = vxor.u32 2147483648, %v8115_v16  ;;  %v1494_v30 = vor.u32 %v1493_v44, %v1492_v49 }
 0x175   : > { %v9765_v61 = vand.u32 2147483647, %v8177_v9  ;;  %vm1842_vm13 = vcmp.gt.s32.totalorder %v1841_v23, 0  ;;  %v1498_v28 = vor.u32 4788187, %v1497_v22  ;;  %v8279_v18 = vsub.s32 %v8196_v41, %v1688_v43 }
 0x176   : > { %v1298_v54 = vsel %vm1215_vm2, %v9841_v10, %v8115_v16  ;;  %v1993_v25 = vsel %vm1991_vm12, %v1992_v35, %v8245_v39  ;;  %v1843_v63 = vsel %vm1842_vm13, %v1841_v23, 0  ;;  %v8284_v56 = vsel %vm8228_vm9, 0, %v1609_v2 }
 0x177   : > { %9842 = vst [vmem:[#allocation24_spill] sm:$0xff] %v8284_v56  ;;  %v1804_v6 = vsub.s32 4294967266, %v8266_v38  ;;  %v1989_v5 = vmul.u32 %v1982_v31, %v1973_v51  ;;  %v1845_v16 = vand.u32 31, %v1843_v63  ;;  %v8290_v44 = vsel %vm8136_vm8, %v7687_v20, %v1298_v54 }
 0x178   : > { %v1607_v41 = vsel %vm1524_vm0, %v1606_v57, %v1605_v0  ;;  %v8297_v39 = vsel %vm1421_vm10, %v1505_v32, %v8041_v33  ;;  %v8300_v55 = vmul.f32 %v8012_v7, %v767_v24  ;;  %v1501_v46 = vcvt.s32.f32 %v1494_v30 }
 0x179   : > { %v1784_v31 = vadd.s32 %v8045_v27, %v8061_v11  ;;  %v8304_v36 = vadd.s32 %v1993_v25, %v1989_v5  ;;  %v1846_v26 = vsub.s32 32, %v1845_v16  ;;  %v1499_v19 = vand.u32 2147483647, %v1498_v28 }
 0x17a   : > { %v1800_v2 = vsub.s32 32, %v8266_v38  ;;  %v1691_v0 = vsub.s32 0, %v8279_v18  ;;  %v1838_v22 = vand.u32 8388607, %v9765_v61  ;;  %v1805_v33 = vadd.s32 127, %v1804_v6 }
 0x17b   : > { %v1849_v43 = vshrl.u32 %v9815_v52, %v1846_v26  ;;  %v1852_v49 = vshrl.u32 %v9816_v1, %v1846_v26  ;;  %v1855_v32 = vshrl.u32 %v9828_v45, %v1846_v26  ;;  %v8313_v35 = vshrl.u32 %v1843_v63, 5 }
 0x17c   : > { %v1848_v27 = vshll.u32 %v9819_v53, %v1845_v16  ;;  %v1851_v11 = vshll.u32 %v9815_v52, %v1845_v16  ;;  %v2143_v23 = vand.u32 2139095040, %v8300_v55  ;;  %v1995_v57 = vadd.s32 536870912, %v8304_v36 }
 0x17d   : > { %v1854_v51 = vshll.u32 %v9816_v1, %v1845_v16  ;;  %v1857_v10 = vshll.u32 %v9828_v45, %v1845_v16  ;;  %v1858_v54 = vshrl.u32 %v9829_v17, %v1846_v26  ;;  %v6201_v30 = vmin.u32 %v1691_v0, %v8279_v18 }
 0x17e   : > { %v1839_v24 = vor.u32 8388608, %v1838_v22  ;;  %v1850_v28 = vor.u32 %v1849_v43, %v1848_v27  ;;  %v1853_v25 = vor.u32 %v1852_v49, %v1851_v11  ;;  %v8323_v63 = vpop.eup %7021  ;;  %v1860_v61 = vshll.u32 %v9829_v17, %v1845_v16 }
 0x17f   : > { %9843 = vst [vmem:[#allocation25_spill] sm:$0xff] %v8323_v63  ;;  %v1856_v6 = vor.u32 %v1855_v32, %v1854_v51  ;;  %v1859_v5 = vor.u32 %v1858_v54, %v1857_v10  ;;  %v1861_v56 = vshrl.u32 %v9821_v29, %v1846_v26  ;;  %v8330_v20 = vsel %vm8228_vm9, %v7708_v12, %v1607_v41  ;;  %v6963_v51 = vld [vmem:[%s9713_s6 + $0x18] sm:$0xff]  }
 0x180   : > { %v8332_v3 = vmul.f32 %v1501_v46, %v1499_v19  ;;  %v1802_v4 = vshrl.u32 %v1784_v31, %v1800_v2  ;;  %v1806_v0 = vshll.u32 %v1805_v33, 23  ;;  %v9844_v22 = vand.u32 2147483647, %v7797_v34  ;;  %6587 = vmatprep.subr.bf16.mxu0 %v6963_v51 }
 0x181   : > { %v8340_v49 = vshrl.u32 %v1995_v57, 30  ;;  %v1862_v16 = vor.u32 %v1861_v56, %v1860_v61  ;;  %vm1863_vm8 = vcmp.lt.s32.totalorder %v8313_v35, 1  ;;  %v2144_v32 = vshrl.u32 %v2143_v23, 23  ;;  %6588 = vmatpush3.bf16.msra.mxu0 %v6963_v51  ;;  %v6970_v51 = vld [vmem:[%s9712_s5] sm:$0xff]  }
 0x182   : > { %vm8336_vm2 = vcmp.le.f32.partialorder %v9844_v22, 0.7853982  ;;  %v1693_v27 = vclz %v6201_v30  ;;  %vm1866_vm14 = vcmp.lt.s32.totalorder %v8313_v35, 4  ;;  %v1871_v21 = vsel %vm1863_vm8, %v1850_v28, %v1853_v25 }
 0x183   : > { %v8346_v41 = vshll.u32 %v1839_v24, 8  ;;  %vm1865_vm15 = vcmp.lt.s32.totalorder %v8313_v35, 3  ;;  %v1872_v46 = vsel %vm1866_vm14, %v1859_v5, 920167782  ;;  %v1875_v31 = vsel %vm1863_vm8, %v1853_v25, %v1856_v6 }
 0x184   : > { %v1876_v19 = vsel %vm1866_vm14, %v1862_v16, 1326507024  ;;  %v1847_v61 = vshrl.u32 %v9819_v53, %v1846_v26  ;;  %vm1864_vm0 = vcmp.lt.s32.totalorder %v8313_v35, 2  ;;  %v1868_v56 = vsel %vm1866_vm14, %v1856_v6, 2102212464  ;;  %v6964_v26 = vld [vmem:[%s9712_s5 + $0x18] sm:$0xff]  }
 0x185   : > { %v1873_v2 = vsel %vm1865_vm15, %v1856_v6, %v1872_v46  ;;  %v1997_v33 = vshll.u32 %v8340_v49, 30  ;;  %v1877_v23 = vsel %vm1865_vm15, %v1859_v5, %v1876_v19  ;;  %v6220_v57 = vadd.s32 4294967169, %v2144_v32  ;;  %6611 = vmatprep.subr.bf16.mxu1 %v6964_v26 }
 0x186   : > { %v1874_v11 = vsel %vm1864_vm0, %v1871_v21, %v1873_v2  ;;  %v1801_v10 = vshll.u32 %v8152_v8, %v8266_v38  ;;  %v6202_v54 = vadd.s32 4294967294, %v1693_v27  ;;  %v1867_v30 = vsel %vm1863_vm8, %v1847_v61, %v1850_v28  ;;  %6612 = vmatpush3.bf16.msra.mxu1 %v6964_v26 }
 0x187   : > { %v1878_v24 = vsel %vm1864_vm0, %v1875_v31, %v1877_v23  ;;  %v1869_v6 = vsel %vm1865_vm15, %v1853_v25, %v1868_v56  ;;  %v2150_v16 = vadd.s32 1, %v6220_v57  ;;  %v8380_v8 = vor.u32 4788187, %v1806_v0  ;;  %v6966_v0 = vld [vmem:[%s9712_s5 + $0x10] sm:$0xff]   ;;  %v6969_v57 = vld [vmem:[%s9713_s6] sm:$0xff]  }
 0x188   : > { %v8375_v5 = vmul.u32.u64.low %v8346_v41, %v1878_v24  ;;  %v8376_v22 = vmul.u32.u64.high %v8346_v41, %v1878_v24, %v8375_v5  ;;  %v8378_v32 = vor.u32 %v1802_v4, %v1801_v10  ;;  %7023 = vcosq.f32 %v8290_v44  ;;  %v6965_v4 = vld [vmem:[%s9713_s6 + $0x10] sm:$0xff]   ;;  %6613 = vmatprep.subr.bf16.mxu1 %v6966_v0 }
 0x189   : > { %v8383_v38 = vmul.u32.u64.low %v8346_v41, %v1874_v11  ;;  %v8384_v28 = vmul.u32.u64.high %v8346_v41, %v1874_v11, %v8383_v38  ;;  %v8389_v25 = vsub.s32 %v8304_v36, %v1997_v33  ;;  %v9771_v27 = vand.u32 2147483647, %v8300_v55  ;;  %6589 = vmatprep.subr.bf16.mxu0 %v6965_v4 }
 0x18a   : > { %vm2151_vm4 = vcmp.gt.s32.totalorder %v2150_v16, 0  ;;  %7025 = vsinq.f32 %v8290_v44  ;;  %v8402_v21 = vsel %vm8336_vm2, 0, %v8297_v39  ;;  %v1870_v36 = vsel %vm1864_vm0, %v1867_v30, %v1869_v6  ;;  %v6967_v44 = vld [vmem:[%s9713_s6 + $0x8] sm:$0xff]   ;;  %6590 = vmatpush3.bf16.msra.mxu0 %v6965_v4  ;;  %6614 = vmatpush3.bf16.msra.mxu1 %v6966_v0 }
 0x18b   : > { %9847 = vst [vmem:[#allocation26_spill] sm:$0xff] %v8402_v21  ;;  %v2152_v46 = vsel %vm2151_vm4, %v2150_v16, 0  ;;  %7027 = vcosq.f32 %v8330_v20  ;;  %vm6203_vm3 = vcmp.lt.s32.totalorder %v6202_v54, 0  ;;  %vm1888_vm5 = vc.u32 %v8376_v22, %v8383_v38  ;;  %v6968_v39 = vld [vmem:[%s9712_s5 + $0x8] sm:$0xff]   ;;  %6591 = vmatprep.subr.bf16.mxu0 %v6967_v44 }
 0x18c   : > { %v2154_v31 = vand.u32 31, %v2152_v46  ;;  %v1503_v35 = vxor.u32 2147483648, %v8332_v3  ;;  %v1808_v19 = vand.u32 2147483647, %v8380_v8  ;;  %v1810_v61 = vcvt.s32.f32 %v8378_v32  ;;  %6615 = vmatprep.subr.bf16.mxu1 %v6968_v39 }
 0x18d   : > { %v1889_v56 = vadd.s32 1, %v8384_v28  ;;  %v2000_v2 = vsub.s32 0, %v8389_v25  ;;  %v1886_v33 = vmul.u32 %v8346_v41, %v1870_v36  ;;  %v2147_v11 = vand.u32 8388607, %v9771_v27 }
 0x18e   : > { %v2155_v23 = vsub.s32 32, %v2154_v31  ;;  %v8430_v26 = vsel %vm6203_vm3, 0, %v6202_v54  ;;  %v2157_v10 = vshll.u32 %v9819_v53, %v2154_v31  ;;  %v2160_v30 = vshll.u32 %v9815_v52, %v2154_v31  ;;  %6592 = vmatpush3.bf16.msra.mxu0 %v6967_v44  ;;  %6616 = vmatpush3.bf16.msra.mxu1 %v6968_v39 }
 0x18f   : > { %v1890_v41 = vsel %vm1888_vm5, %v1889_v56, %v8384_v28  ;;  %v2163_v16 = vshll.u32 %v9816_v1, %v2154_v31  ;;  %v8441_v32 = vshrl.u32 %v2152_v46, 5  ;;  %v2166_v8 = vshll.u32 %v9828_v45, %v2154_v31  ;;  %v762_v28 = vpop.permute.xlu0 %761  ;;  %6593 = vmatprep.subr.bf16.mxu0 %v6969_v57  ;;  %6617 = vmatprep.subr.bf16.mxu1 %v6970_v51 }
 0x190   : > { %v1891_v24 = vadd.s32 %v1890_v41, %v1886_v33  ;;  %v2158_v6 = vshrl.u32 %v9815_v52, %v2155_v23  ;;  %v2161_v5 = vshrl.u32 %v9816_v1, %v2155_v23  ;;  %v2164_v54 = vshrl.u32 %v9828_v45, %v2155_v23 }
 0x191   : > { %v2167_v4 = vshrl.u32 %v9829_v17, %v2155_v23  ;;  %v6213_v0 = vmin.u32 %v2000_v2, %v8389_v25  ;;  %v2169_v46 = vshll.u32 %v9829_v17, %v2154_v31  ;;  %v2170_v12 = vshrl.u32 %v9821_v29, %v2155_v23 }
 0x192   : > { %v1892_v36 = vadd.s32 536870912, %v1891_v24  ;;  %v2159_v56 = vor.u32 %v2158_v6, %v2157_v10  ;;  %v2162_v33 = vor.u32 %v2161_v5, %v2160_v30  ;;  %v2165_v41 = vor.u32 %v2164_v54, %v2163_v16  ;;  %6594 = vmatpush3.bf16.msra.mxu0 %v6969_v57  ;;  %6618 = vmatpush3.bf16.msra.mxu1 %v6970_v51 }
 0x193   : > { %v2168_v27 = vor.u32 %v2167_v4, %v2166_v8  ;;  %v1504_v21 = vsel %vm1421_vm10, %v1503_v35, %v8332_v3  ;;  %v1811_v63 = vmul.f32 %v1810_v61, %v1808_v19  ;;  %v8455_v39 = vmul.f32 %v8012_v7, %v762_v28 }
 0x194   : > { %v8452_v44 = vshrl.u32 %v1892_v36, 30  ;;  %v1701_v2 = vsub.s32 4294967266, %v8430_v26  ;;  %v2148_v10 = vor.u32 8388608, %v2147_v11  ;;  %v2171_v30 = vor.u32 %v2170_v12, %v2169_v46 }
 0x195   : > { %vm2172_vm7 = vcmp.lt.s32.totalorder %v8441_v32, 1  ;;  %v1697_v31 = vsub.s32 32, %v8430_v26  ;;  %vm2175_vm9 = vcmp.lt.s32.totalorder %v8441_v32, 4  ;;  %v8464_v35 = vpop.eup %7023  ;;  %vm1730_vm10 = vcmp.lt.s32.totalorder %v7903_v40, 0 }
 0x196   : > { %v1894_v6 = vshll.u32 %v8452_v44, 30  ;;  %v2180_v3 = vsel %vm2172_vm7, %v2159_v56, %v2162_v33  ;;  %v2002_v19 = vclz %v6213_v0  ;;  %vm2174_vm11 = vcmp.lt.s32.totalorder %v8441_v32, 3  ;;  %v777_v0 = vpop.permute.xlu1 %776 }
 0x197   : > { %v2177_v12 = vsel %vm2175_vm9, %v2165_v41, 2102212464  ;;  %v2181_v61 = vsel %vm2175_vm9, %v2168_v27, 920167782  ;;  %v8472_v11 = vpop.eup %7025  ;;  %v2156_v57 = vshrl.u32 %v9819_v53, %v2155_v23  ;;  %vm2173_vm12 = vcmp.lt.s32.totalorder %v8441_v32, 2 }
 0x198   : > { %v2182_v51 = vsel %vm2174_vm11, %v2165_v41, %v2181_v61  ;;  %v2184_v5 = vsel %vm2172_vm7, %v2162_v33, %v2165_v41  ;;  %v8480_v16 = vpop.eup %7027  ;;  %v1702_v54 = vadd.s32 127, %v1701_v2  ;;  %v2185_v4 = vsel %vm2175_vm9, %v2171_v30, 1326507024 }
 0x199   : > { %9848 = vst [vmem:[#allocation27_spill] sm:$0xff] %v8480_v16  ;;  %v2183_v8 = vsel %vm2173_vm12, %v2180_v3, %v2182_v51  ;;  %v2188_v28 = vshll.u32 %v2148_v10, 8  ;;  %v8486_v23 = vsub.s32 %v1891_v24, %v1894_v6  ;;  %v2176_v36 = vsel %vm2172_vm7, %v2156_v57, %v2159_v56 }
 0x19a   : > { %v2178_v46 = vsel %vm2174_vm11, %v2162_v33, %v2177_v12  ;;  %v2186_v41 = vsel %vm2174_vm11, %v2168_v27, %v2185_v4  ;;  %v9849_v2 = vand.u32 2147483647, %v7903_v40  ;;  %vm1627_vm8 = vcmp.lt.s32.totalorder %v8015_v42, 0 }
 0x19b   : > { %v6214_v10 = vadd.s32 4294967294, %v2002_v19  ;;  %v2187_v24 = vsel %vm2173_vm12, %v2184_v5, %v2186_v41  ;;  %v8503_v30 = vmul.u32.u64.low %v2188_v28, %v2183_v8  ;;  %v8504_v56 = vmul.u32.u64.high %v2188_v28, %v2183_v8, %v8503_v30 }
 0x19c   : > { %vm8496_vm13 = vcmp.le.f32.partialorder %v9849_v2, 0.7853982  ;;  %v1812_v33 = vxor.u32 2147483648, %v1811_v63  ;;  %v8507_v6 = vmul.u32.u64.low %v2188_v28, %v2187_v24  ;;  %v8508_v12 = vmul.u32.u64.high %v2188_v28, %v2187_v24, %v8507_v6 }
 0x19d   : > { %v8511_v27 = vmul.f32 %v8012_v7, %v777_v0  ;;  %v1681_v61 = vadd.s32 %v8157_v15, %v8163_v47  ;;  %v1703_v57 = vshll.u32 %v1702_v54, 23  ;;  %v2179_v19 = vsel %vm2173_vm12, %v2176_v36, %v2178_v46 }
 0x19e   : > { %v2040_v51 = vand.u32 2139095040, %v8455_v39  ;;  %v1507_v5 = vsel %vm8336_vm2, %v7797_v34, %v1504_v21  ;;  %v1814_v8 = vsub.s32 4, %v8128_v13  ;;  %v1711_v4 = vsub.s32 4, %v8232_v58 }
 0x19f   : > { %v1897_v7 = vsub.s32 0, %v8486_v23  ;;  %v9852_v0 = vand.u32 2147483647, %v8015_v42  ;;  %v1699_v47 = vshrl.u32 %v1681_v61, %v1697_v31  ;;  %vm6215_vm15 = vcmp.lt.s32.totalorder %v6214_v10, 0 }
 0x1a0   : > { %v2198_v32 = vadd.s32 1, %v8504_v56  ;;  %v2041_v54 = vshrl.u32 %v2040_v51, 23  ;;  %v1813_v43 = vsel %vm1730_vm10, %v1812_v33, %v1811_v63  ;;  %v2195_v21 = vmul.u32 %v2188_v28, %v2179_v19 }
 0x1a1   : > { %vm8526_vm14 = vcmp.le.f32.partialorder %v9852_v0, 0.7853982  ;;  %vm2197_vm2 = vc.u32 %v8508_v12, %v8503_v30  ;;  %v2349_v36 = vand.u32 2139095040, %v8511_v27  ;;  %v1698_v46 = vshll.u32 %v8279_v18, %v8430_v26 }
 0x1a2   : > { %v1704_v41 = vor.u32 4788187, %v1703_v57  ;;  %v2199_v2 = vsel %vm2197_vm2, %v2198_v32, %v8504_v56  ;;  %v6216_v31 = vadd.s32 4294967169, %v2041_v54  ;;  %7029 = vsinq.f32 %v8330_v20 }
 0x1a3   : > { %v2005_v24 = vsel %vm6215_vm15, 0, %v6214_v10  ;;  %v6209_v6 = vmin.u32 %v1897_v7, %v8486_v23  ;;  %v2200_v61 = vadd.s32 %v2199_v2, %v2195_v21  ;;  %7031 = vcosq.f32 %v1507_v5 }
 0x1a4   : > { %v1815_v63 = vsel %vm1730_vm10, %v1814_v8, %v8128_v13  ;;  %v1700_v28 = vor.u32 %v1699_v47, %v1698_v46  ;;  %v2047_v33 = vadd.s32 1, %v6216_v31  ;;  %v8547_v18 = vsel %vm8496_vm13, %v7903_v40, %v1813_v43 }
 0x1a5   : > { %v1712_v20 = vsel %vm1627_vm8, %v1711_v4, %v8232_v58  ;;  %v2201_v26 = vadd.s32 536870912, %v2200_v61  ;;  %v2350_v10 = vshrl.u32 %v2349_v36, 23  ;;  %v1705_v56 = vand.u32 2147483647, %v1704_v41 }
 0x1a6   : > { %v2006_v57 = vsub.s32 32, %v2005_v24  ;;  %v2010_v19 = vsub.s32 4294967266, %v2005_v24  ;;  %vm2048_vm0 = vcmp.gt.s32.totalorder %v2047_v33, 0  ;;  %v1899_v51 = vclz %v6209_v6 }
 0x1a7   : > { %v8552_v7 = vshrl.u32 %v2201_v26, 30  ;;  %v9776_v13 = vand.u32 2147483647, %v8455_v39  ;;  %v2049_v8 = vsel %vm2048_vm0, %v2047_v33, 0  ;;  %7033 = vsinq.f32 %v1507_v5  ;;  %v772_v33 = vpop.permute.xlu0 %771 }
 0x1a8   : > { %v1707_v0 = vcvt.s32.f32 %v1700_v28  ;;  %v1990_v47 = vadd.s32 %v8244_v59, %v8249_v48  ;;  %v2051_v32 = vand.u32 31, %v2049_v8  ;;  %v8559_v58 = vsel %vm8496_vm13, 0, %v1815_v63 }
 0x1a9   : > { %9855 = vst [vmem:[#allocation28_spill] sm:$0xff] %v8559_v58  ;;  %7035 = vcosq.f32 %v8547_v18  ;;  %v8564_v4 = vsel %vm8526_vm14, 0, %v1712_v20  ;;  %v6228_v54 = vadd.s32 4294967169, %v2350_v10  ;;  %v2007_v5 = vshll.u32 %v8389_v25, %v2005_v24 }
 0x1aa   : > { %9856 = vst [vmem:[#allocation29_spill] sm:$0xff] %v8564_v4  ;;  %v8566_v43 = vmul.f32 %v1707_v0, %v1705_v56  ;;  %v2008_v21 = vshrl.u32 %v1990_v47, %v2006_v57  ;;  %v2052_v36 = vsub.s32 32, %v2051_v32  ;;  %v2011_v46 = vadd.s32 127, %v2010_v19 }
 0x1ab   : > { %v6210_v48 = vadd.s32 4294967294, %v1899_v51  ;;  %v2203_v59 = vshll.u32 %v8552_v7, 30  ;;  %v2044_v3 = vand.u32 8388607, %v9776_v13  ;;  %v2054_v41 = vshll.u32 %v9819_v53, %v2051_v32 }
 0x1ac   : > { %v2055_v2 = vshrl.u32 %v9815_v52, %v2052_v36  ;;  %v2057_v31 = vshll.u32 %v9815_v52, %v2051_v32  ;;  %v2058_v6 = vshrl.u32 %v9816_v1, %v2052_v36  ;;  %v2050_v63 = vshrl.u32 %v2049_v8, 5 }
 0x1ad   : > { %v2060_v25 = vshll.u32 %v9816_v1, %v2051_v32  ;;  %v2061_v24 = vshrl.u32 %v9828_v45, %v2052_v36  ;;  %v2356_v28 = vadd.s32 1, %v6228_v54  ;;  %v2063_v10 = vshll.u32 %v9828_v45, %v2051_v32 }
 0x1ae   : > { %v2056_v20 = vor.u32 %v2055_v2, %v2054_v41  ;;  %v2059_v26 = vor.u32 %v2058_v6, %v2057_v31  ;;  %v2064_v56 = vshrl.u32 %v9829_v17, %v2052_v36  ;;  %v8580_v57 = vsub.s32 %v2200_v61, %v2203_v59  ;;  %v7140_v41 = vld [vmem:[%s9710_s3] ss:$0 sm:$0xff] }
 0x1af   : > { %v2062_v19 = vor.u32 %v2061_v24, %v2060_v25  ;;  %v2066_v51 = vshll.u32 %v9829_v17, %v2051_v32  ;;  %v2067_v0 = vshrl.u32 %v9821_v29, %v2052_v36  ;;  %v8584_v8 = vpop.eup %7029  ;;  %v1709_v47 = vxor.u32 2147483648, %v8566_v43 }
 0x1b0   : > { %9857 = vst [vmem:[#allocation30_spill] sm:$0xff] %v8584_v8  ;;  %v2012_v13 = vshll.u32 %v2011_v46, 23  ;;  %v2065_v54 = vor.u32 %v2064_v56, %v2063_v10  ;;  %v8590_v2 = vmul.f32 %v7140_v41, %v772_v33  ;;  %v8592_v31 = vpop.eup %7031  ;;  %v8594_v61 = vor.u32 %v2008_v21, %v2007_v5 }
 0x1b1   : > { %9858 = vst [vmem:[#allocation31_spill] sm:$0xff] %v8592_v31  ;;  %v2068_v59 = vor.u32 %v2067_v0, %v2066_v51  ;;  %vm2069_vm4 = vcmp.lt.s32.totalorder %v2050_v63, 1  ;;  %vm2072_vm3 = vcmp.lt.s32.totalorder %v2050_v63, 4  ;;  %v2045_v32 = vor.u32 8388608, %v2044_v3 }
 0x1b2   : > { %vm2071_vm5 = vcmp.lt.s32.totalorder %v2050_v63, 3  ;;  %v2077_v6 = vsel %vm2069_vm4, %v2056_v20, %v2059_v26  ;;  %v2078_v46 = vsel %vm2072_vm3, %v2065_v54, 920167782  ;;  %vm6211_vm7 = vcmp.lt.s32.totalorder %v6210_v48, 0 }
 0x1b3   : > { %v2206_v25 = vsub.s32 0, %v8580_v57  ;;  %v2079_v24 = vsel %vm2071_vm5, %v2062_v19, %v2078_v46  ;;  %vm2357_vm9 = vcmp.gt.s32.totalorder %v2356_v28, 0  ;;  %v8600_v33 = vor.u32 4788187, %v2012_v13 }
 0x1b4   : > { %vm2070_vm10 = vcmp.lt.s32.totalorder %v2050_v63, 2  ;;  %v2074_v5 = vsel %vm2072_vm3, %v2062_v19, 2102212464  ;;  %v2081_v21 = vsel %vm2069_vm4, %v2059_v26, %v2062_v19  ;;  %v8604_v10 = vpop.eup %7033  ;;  %v2053_v3 = vshrl.u32 %v9819_v53, %v2052_v36 }
 0x1b5   : > { %9859 = vst [vmem:[#allocation32_spill] sm:$0xff] %v8604_v10  ;;  %v2080_v56 = vsel %vm2070_vm10, %v2077_v6, %v2079_v24  ;;  %v2082_v51 = vsel %vm2072_vm3, %v2068_v59, 1326507024  ;;  %v8612_v46 = vsel %vm6211_vm7, 0, %v6210_v48  ;;  %v2085_v40 = vshll.u32 %v2045_v32, 8 }
 0x1b6   : > { %v8610_v41 = vpop.eup %7035  ;;  %v2083_v13 = vsel %vm2071_vm5, %v2065_v54, %v2082_v51  ;;  %v2358_v58 = vsel %vm2357_vm9, %v2356_v28, 0  ;;  %v6221_v19 = vmin.u32 %v2206_v25, %v8580_v57  ;;  %v2073_v4 = vsel %vm2069_vm4, %v2053_v3, %v2056_v20 }
 0x1b7   : > { %9860 = vst [vmem:[#allocation33_spill] sm:$0xff] %v8610_v41  ;;  %v2075_v36 = vsel %vm2071_vm5, %v2059_v26, %v2074_v5  ;;  %v2084_v6 = vsel %vm2070_vm10, %v2081_v21, %v2083_v13  ;;  %v8622_v0 = vmul.u32.u64.low %v2085_v40, %v2080_v56  ;;  %v8623_v16 = vmul.u32.u64.high %v2085_v40, %v2080_v56, %v8622_v0 }
 0x1b8   : > { %v8619_v24 = vmul.u32.u64.low %v2085_v40, %v2084_v6  ;;  %v8620_v59 = vmul.u32.u64.high %v2085_v40, %v2084_v6, %v8619_v24  ;;  %7037 = vsinq.f32 %v8547_v18  ;;  %v1907_v28 = vsub.s32 4294967266, %v8612_v46 }
 0x1b9   : > { %v2360_v54 = vand.u32 31, %v2358_v58  ;;  %v8632_v20 = vsel %vm1627_vm8, %v1709_v47, %v8566_v43  ;;  %v1887_v32 = vadd.s32 %v8383_v38, %v8376_v22  ;;  %v2076_v25 = vsel %vm2070_vm10, %v2073_v4, %v2075_v36 }
 0x1ba   : > { %v2208_v18 = vclz %v6221_v19  ;;  %v9861_v21 = vand.u32 2147483647, %v8511_v27  ;;  %v1903_v51 = vsub.s32 32, %v8612_v46  ;;  %vm2094_vm11 = vc.u32 %v8620_v59, %v8622_v0 }
 0x1bb   : > { %v2361_v56 = vsub.s32 32, %v2360_v54  ;;  %v2095_v43 = vadd.s32 1, %v8623_v16  ;;  %v2246_v47 = vand.u32 2139095040, %v8590_v2  ;;  %v1908_v13 = vadd.s32 127, %v1907_v28 }
 0x1bc   : > { %v2353_v3 = vand.u32 8388607, %v9861_v21  ;;  %v2092_v22 = vmul.u32 %v2085_v40, %v2076_v25  ;;  %v2363_v38 = vshll.u32 %v9819_v53, %v2360_v54  ;;  %v2366_v19 = vshll.u32 %v9815_v52, %v2360_v54 }
 0x1bd   : > { %v2364_v4 = vshrl.u32 %v9815_v52, %v2361_v56  ;;  %v2096_v63 = vsel %vm2094_vm11, %v2095_v43, %v8623_v16  ;;  %v2367_v36 = vshrl.u32 %v9816_v1, %v2361_v56  ;;  %v2370_v6 = vshrl.u32 %v9828_v45, %v2361_v56 }
 0x1be   : > { %v6222_v24 = vadd.s32 4294967294, %v2208_v18  ;;  %v2097_v21 = vadd.s32 %v2096_v63, %v2092_v22  ;;  %v2359_v48 = vshrl.u32 %v2358_v58, 5  ;;  %v2369_v26 = vshll.u32 %v9816_v1, %v2360_v54 }
 0x1bf   : > { %v2365_v5 = vor.u32 %v2364_v4, %v2363_v38  ;;  %v2368_v28 = vor.u32 %v2367_v36, %v2366_v19  ;;  %v2372_v40 = vshll.u32 %v9828_v45, %v2360_v54  ;;  %v2373_v25 = vshrl.u32 %v9829_v17, %v2361_v56 }
 0x1c0   : > { %v2098_v41 = vadd.s32 536870912, %v2097_v21  ;;  %v2371_v8 = vor.u32 %v2370_v6, %v2369_v26  ;;  %v2375_v16 = vshll.u32 %v9829_v17, %v2360_v54  ;;  %v2376_v43 = vshrl.u32 %v9821_v29, %v2361_v56 }
 0x1c1   : > { %v1905_v31 = vshrl.u32 %v1887_v32, %v1903_v51  ;;  %v1909_v10 = vshll.u32 %v1908_v13, 23  ;;  %v2354_v34 = vor.u32 8388608, %v2353_v3  ;;  %v2374_v18 = vor.u32 %v2373_v25, %v2372_v40 }
 0x1c2   : > { %v8657_v22 = vshrl.u32 %v2098_v41, 30  ;;  %v2377_v58 = vor.u32 %v2376_v43, %v2375_v16  ;;  %vm2378_vm12 = vcmp.lt.s32.totalorder %v2359_v48, 1  ;;  %vm2381_vm13 = vcmp.lt.s32.totalorder %v2359_v48, 4 }
 0x1c3   : > { %vm6223_vm8 = vcmp.lt.s32.totalorder %v6222_v24, 0  ;;  %v2386_v38 = vsel %vm2378_vm12, %v2365_v5, %v2368_v28  ;;  %v2387_v4 = vsel %vm2381_vm13, %v2374_v18, 920167782  ;;  %v2247_v63 = vshrl.u32 %v2246_v47, 23 }
 0x1c4   : > { %v2100_v26 = vshll.u32 %v8657_v22, 30  ;;  %v2362_v54 = vshrl.u32 %v9819_v53, %v2361_v56  ;;  %vm2380_vm15 = vcmp.lt.s32.totalorder %v2359_v48, 3  ;;  %v2383_v19 = vsel %vm2381_vm13, %v2371_v8, 2102212464 }
 0x1c5   : > { %v8662_v32 = vpop.eup %7037  ;;  %vm2379_vm2 = vcmp.lt.s32.totalorder %v2359_v48, 2  ;;  %v2388_v3 = vsel %vm2380_vm15, %v2371_v8, %v2387_v4  ;;  %v2390_v41 = vsel %vm2378_vm12, %v2368_v28, %v2371_v8  ;;  %v2391_v51 = vsel %vm2381_vm13, %v2377_v58, 1326507024 }
 0x1c6   : > { %9862 = vst [vmem:[#allocation34_spill] sm:$0xff] %v8662_v32  ;;  %vm1936_vm0 = vcmp.lt.s32.totalorder %v8070_v14, 0  ;;  %v2211_v13 = vsel %vm6223_vm8, 0, %v6222_v24  ;;  %v8666_v36 = vsub.s32 %v2097_v21, %v2100_v26  ;;  %v2389_v47 = vsel %vm2379_vm2, %v2386_v38, %v2388_v3 }
 0x1c7   : > { %v2394_v6 = vshll.u32 %v2354_v34, 8  ;;  %v1910_v40 = vor.u32 4788187, %v1909_v10  ;;  %v2382_v56 = vsel %vm2378_vm12, %v2362_v54, %v2365_v5  ;;  %v2384_v25 = vsel %vm2380_vm15, %v2368_v28, %v2383_v19 }
 0x1c8   : > { %v2392_v16 = vsel %vm2380_vm15, %v2374_v18, %v2391_v51  ;;  %v2103_v43 = vsub.s32 0, %v8666_v36  ;;  %v2216_v58 = vsub.s32 4294967266, %v2211_v13  ;;  %v6224_v26 = vadd.s32 4294967169, %v2247_v63 }
 0x1c9   : > { %v2393_v4 = vsel %vm2379_vm2, %v2390_v41, %v2392_v16  ;;  %v8672_v32 = vmul.u32.u64.low %v2394_v6, %v2389_v47  ;;  %v8673_v8 = vmul.u32.u64.high %v2394_v6, %v2389_v47, %v8672_v32  ;;  %v1904_v34 = vshll.u32 %v8486_v23, %v8612_v46 }
 0x1ca   : > { %v8676_v24 = vmul.u32.u64.low %v2394_v6, %v2393_v4  ;;  %v8677_v21 = vmul.u32.u64.high %v2394_v6, %v2393_v4, %v8676_v24  ;;  %v2212_v10 = vsub.s32 32, %v2211_v13  ;;  %v6217_v5 = vmin.u32 %v2103_v43, %v8666_v36 }
 0x1cb   : > { %v2385_v28 = vsel %vm2379_vm2, %v2382_v56, %v2384_v25  ;;  %v9863_v18 = vand.u32 2147483647, %v8600_v33  ;;  %v9864_v38 = vcvt.s32.f32 %v8594_v61  ;;  %v2196_v19 = vadd.s32 %v8503_v30, %v8508_v12 }
 0x1cc   : > { %v2243_v3 = vand.u32 2147483647, %v8590_v2  ;;  %v2253_v63 = vadd.s32 1, %v6224_v26  ;;  %v1906_v41 = vor.u32 %v1905_v31, %v1904_v34  ;;  %v1911_v51 = vand.u32 2147483647, %v1910_v40 }
 0x1cd   : > { %v8687_v54 = vmul.f32 %v9864_v38, %v9863_v18  ;;  %v2105_v23 = vclz %v6217_v5  ;;  %v2404_v46 = vadd.s32 1, %v8673_v8  ;;  %v2217_v47 = vadd.s32 127, %v2216_v58 }
 0x1ce   : > { %v2401_v48 = vmul.u32 %v2394_v6, %v2385_v28  ;;  %vm2403_vm4 = vc.u32 %v8677_v21, %v8672_v32  ;;  %vm2254_vm3 = vcmp.gt.s32.totalorder %v2253_v63, 0  ;;  %v2214_v61 = vshrl.u32 %v2196_v19, %v2212_v10 }
 0x1cf   : > { %v6218_v33 = vadd.s32 4294967294, %v2105_v23  ;;  %v2405_v56 = vsel %vm2403_vm4, %v2404_v46, %v8673_v8  ;;  %v2255_v25 = vsel %vm2254_vm3, %v2253_v63, 0  ;;  %v8700_v30 = vsel %vm8526_vm14, %v8015_v42, %v8632_v20 }
 0x1d0   : > { %v9865_v12 = vsub.s32 4, %v8340_v49  ;;  %v2406_v6 = vadd.s32 %v2405_v56, %v2401_v48  ;;  %v2257_v40 = vand.u32 31, %v2255_v25  ;;  %v1913_v16 = vcvt.s32.f32 %v1906_v41 }
 0x1d1   : > { %v2213_v43 = vshll.u32 %v8580_v57, %v2211_v13  ;;  %vm6219_vm5 = vcmp.lt.s32.totalorder %v6218_v33, 0  ;;  %v2250_v4 = vand.u32 8388607, %v2243_v3  ;;  %v2218_v8 = vshll.u32 %v2217_v47, 23 }
 0x1d2   : > { %v8707_v31 = vsel %vm1936_vm0, %v9865_v12, %v8340_v49  ;;  %v8712_v15 = vsel %vm6219_vm5, 0, %v6218_v33  ;;  %v2407_v20 = vadd.s32 536870912, %v2406_v6  ;;  %v2258_v58 = vsub.s32 32, %v2257_v40 }
 0x1d3   : > { %v2018_v24 = vxor.u32 2147483648, %v8687_v54  ;;  %v8715_v26 = vmul.f32 %v1913_v16, %v1911_v51  ;;  %v1917_v49 = vsub.s32 4, %v8452_v44  ;;  %v2215_v34 = vor.u32 %v2214_v61, %v2213_v43 }
 0x1d4   : > { %v2093_v10 = vadd.s32 %v8622_v0, %v8620_v59  ;;  %v8720_v57 = vshrl.u32 %v2407_v20, 30  ;;  %v2261_v13 = vshrl.u32 %v9815_v52, %v2258_v58  ;;  %v2264_v5 = vshrl.u32 %v9816_v1, %v2258_v58 }
 0x1d5   : > { %v2113_v28 = vsub.s32 4294967266, %v8712_v15  ;;  %v2260_v18 = vshll.u32 %v9819_v53, %v2257_v40  ;;  %v2263_v38 = vshll.u32 %v9815_v52, %v2257_v40  ;;  %v2267_v19 = vshrl.u32 %v9828_v45, %v2258_v58 }
 0x1d6   : > { %v2219_v63 = vor.u32 4788187, %v2218_v8  ;;  %v2409_v41 = vshll.u32 %v8720_v57, 30  ;;  %v2251_v51 = vor.u32 8388608, %v2250_v4  ;;  %v2266_v0 = vshll.u32 %v9816_v1, %v2257_v40 }
 0x1d7   : > { %v2109_v59 = vsub.s32 32, %v8712_v15  ;;  %v2256_v23 = vshrl.u32 %v2255_v25, 5  ;;  %v2262_v46 = vor.u32 %v2261_v13, %v2260_v18  ;;  %v2265_v47 = vor.u32 %v2264_v5, %v2263_v38 }
 0x1d8   : > { %v8731_v48 = vsub.s32 %v2406_v6, %v2409_v41  ;;  %v2268_v61 = vor.u32 %v2267_v19, %v2266_v0  ;;  %v2269_v33 = vshll.u32 %v9828_v45, %v2257_v40  ;;  %v2270_v52 = vshrl.u32 %v9829_v17, %v2258_v58 }
 0x1d9   : > { %v9866_v56 = vand.u32 2147483647, %v8070_v14  ;;  %v2222_v16 = vcvt.s32.f32 %v2215_v34  ;;  %v2114_v1 = vadd.s32 127, %v2113_v28  ;;  %v2272_v43 = vshll.u32 %v9829_v17, %v2257_v40 }
 0x1da   : > { %v2273_v25 = vshrl.u32 %v9821_v29, %v2258_v58  ;;  %v2220_v4 = vand.u32 2147483647, %v2219_v63  ;;  %v2412_v6 = vsub.s32 0, %v8731_v48  ;;  %v2271_v8 = vor.u32 %v2270_v52, %v2269_v33 }
 0x1db   : > { %vm8737_vm14 = vcmp.le.f32.partialorder %v9866_v56, 0.7853982  ;;  %v2291_v20 = vshll.u32 %v2251_v51, 8  ;;  %v2259_v45 = vshrl.u32 %v9819_v53, %v2258_v58  ;;  %vm2275_vm7 = vcmp.lt.s32.totalorder %v2256_v23, 1 }
 0x1dc   : > { %v2274_v13 = vor.u32 %v2273_v25, %v2272_v43  ;;  %vm2278_vm9 = vcmp.lt.s32.totalorder %v2256_v23, 4  ;;  %vm1833_vm10 = vcmp.lt.s32.totalorder %v8177_v9, 0  ;;  %v2111_v5 = vshrl.u32 %v2093_v10, %v2109_v59 }
 0x1dd   : > { %v6229_v34 = vmin.u32 %v2412_v6, %v8731_v48  ;;  %v2280_v28 = vsel %vm2278_vm9, %v2268_v61, 2102212464  ;;  %v2283_v18 = vsel %vm2275_vm7, %v2262_v46, %v2265_v47  ;;  %v2115_v17 = vshll.u32 %v2114_v1, 23 }
 0x1de   : > { %vm2277_vm11 = vcmp.lt.s32.totalorder %v2256_v23, 3  ;;  %v2284_v29 = vsel %vm2278_vm9, %v2271_v8, 920167782  ;;  %v2287_v40 = vsel %vm2275_vm7, %v2265_v47, %v2268_v61  ;;  %vm2276_vm12 = vcmp.lt.s32.totalorder %v2256_v23, 2 }
 0x1df   : > { %v2414_v38 = vclz %v6229_v34  ;;  %v2285_v19 = vsel %vm2277_vm11, %v2268_v61, %v2284_v29  ;;  %v2288_v63 = vsel %vm2278_vm9, %v2274_v13, 1326507024  ;;  %v2279_v41 = vsel %vm2275_vm7, %v2259_v45, %v2262_v46 }
 0x1e0   : > { %v2281_v53 = vsel %vm2277_vm11, %v2265_v47, %v2280_v28  ;;  %v2286_v58 = vsel %vm2276_vm12, %v2283_v18, %v2285_v19  ;;  %v2289_v51 = vsel %vm2277_vm11, %v2271_v8, %v2288_v63  ;;  %v9869_v0 = vand.u32 2147483647, %v8177_v9 }
 0x1e1   : > { %v6230_v59 = vadd.s32 4294967294, %v2414_v38  ;;  %v2290_v33 = vsel %vm2276_vm12, %v2287_v40, %v2289_v51  ;;  %v8755_v52 = vmul.u32.u64.low %v2291_v20, %v2286_v58  ;;  %v8756_v56 = vmul.u32.u64.high %v2291_v20, %v2286_v58, %v8755_v52 }
 0x1e2   : > { %vm8750_vm13 = vcmp.le.f32.partialorder %v9869_v0, 0.7853982  ;;  %vm2142_vm8 = vcmp.lt.s32.totalorder %v8300_v55, 0  ;;  %v2110_v46 = vshll.u32 %v8666_v36, %v8712_v15  ;;  %v2116_v47 = vor.u32 4788187, %v2115_v17 }
 0x1e3   : > { %v8762_v61 = vmul.u32.u64.low %v2291_v20, %v2290_v33  ;;  %v8763_v1 = vmul.u32.u64.high %v2291_v20, %v2290_v33, %v8762_v61  ;;  %7039 = vcosq.f32 %v8700_v30  ;;  %v8769_v43 = vsel %vm8737_vm14, 0, %v8707_v31 }
 0x1e4   : > { %v2223_v25 = vmul.f32 %v2222_v16, %v2220_v4  ;;  %vm6231_vm15 = vcmp.lt.s32.totalorder %v6230_v59, 0  ;;  %v2019_v6 = vsel %vm1936_vm0, %v2018_v24, %v8687_v54  ;;  %v2112_v36 = vor.u32 %v2111_v5, %v2110_v46 }
 0x1e5   : > { %v2417_v15 = vsel %vm6231_vm15, 0, %v6230_v59  ;;  %v2282_v8 = vsel %vm2276_vm12, %v2279_v41, %v2281_v53  ;;  %v1915_v45 = vxor.u32 2147483648, %v8715_v26  ;;  %v9872_v13 = vand.u32 2147483647, %v8300_v55 }
 0x1e6   : > { %v2402_v31 = vadd.s32 %v8672_v32, %v8677_v21  ;;  %v2418_v16 = vsub.s32 32, %v2417_v15  ;;  %v2422_v4 = vsub.s32 4294967266, %v2417_v15  ;;  %v1918_v54 = vsel %vm1833_vm10, %v1917_v49, %v8452_v44 }
 0x1e7   : > { %vm8780_vm2 = vcmp.le.f32.partialorder %v9872_v13, 0.7853982  ;;  %v2117_v24 = vand.u32 2147483647, %v2116_v47  ;;  %vm2300_vm0 = vc.u32 %v8763_v1, %v8755_v52  ;;  %v2301_v23 = vadd.s32 1, %v8756_v56 }
 0x1e8   : > { %v2224_v5 = vxor.u32 2147483648, %v2223_v25  ;;  %v2420_v28 = vshrl.u32 %v2402_v31, %v2418_v16  ;;  %v2423_v18 = vadd.s32 127, %v2422_v4  ;;  %v2298_v17 = vmul.u32 %v2291_v20, %v2282_v8 }
 0x1e9   : > { %v2022_v32 = vsel %vm8737_vm14, %v8070_v14, %v2019_v6  ;;  %v2119_v21 = vcvt.s32.f32 %v2112_v36  ;;  %v2419_v29 = vshll.u32 %v8731_v48, %v2417_v15  ;;  %v2302_v40 = vsel %vm2300_vm0, %v2301_v23, %v8756_v56 }
 0x1ea   : > { %v1916_v44 = vsel %vm1833_vm10, %v1915_v45, %v8715_v26  ;;  %v2226_v49 = vsub.s32 4, %v8552_v7  ;;  %v2424_v38 = vshll.u32 %v2423_v18, 23  ;;  %v2303_v19 = vadd.s32 %v2302_v40, %v2298_v17 }
 0x1eb   : > { %7041 = vsinq.f32 %v8700_v30  ;;  %v8806_v20 = vsel %vm8750_vm13, 0, %v1918_v54  ;;  %v2120_v12 = vmul.f32 %v2119_v21, %v2117_v24  ;;  %v2421_v63 = vor.u32 %v2420_v28, %v2419_v29 }
 0x1ec   : > { %7043 = vcosq.f32 %v2022_v32  ;;  %v2225_v48 = vsel %vm2142_vm8, %v2224_v5, %v2223_v25  ;;  %v2425_v41 = vor.u32 4788187, %v2424_v38  ;;  %v2304_v53 = vadd.s32 536870912, %v2303_v19  ;;  %v9887_v5 = vld [vmem:[#allocation11_spill] sm:$0xff] }
 0x1ed   : > { %7045 = vsinq.f32 %v2022_v32  ;;  %v1919_v26 = vsel %vm8750_vm13, %v8177_v9, %v1916_v44  ;;  %vm2039_vm4 = vcmp.lt.s32.totalorder %v8455_v39, 0  ;;  %v887_v30 = vsub.s32 4, %v7569_v50  ;;  %v9888_v32 = vld [vmem:[#allocation18_spill] sm:$0xff] }
 0x1ee   : > { %v2227_v58 = vsel %vm2142_vm8, %v2226_v49, %v8552_v7  ;;  %v9875_v51 = vand.u32 2147483647, %v8455_v39  ;;  %v2123_v59 = vsub.s32 4, %v8657_v22  ;;  %vm2348_vm5 = vcmp.lt.s32.totalorder %v8511_v27, 0 }
 0x1ef   : > { %v2426_v10 = vand.u32 2147483647, %v2425_v41  ;;  %v2305_v33 = vshrl.u32 %v2304_v53, 30  ;;  %v2228_v56 = vsel %vm8780_vm2, %v8300_v55, %v2225_v48  ;;  %v2121_v46 = vxor.u32 2147483648, %v2120_v12 }
 0x1f0   : > { %vm8820_vm3 = vcmp.le.f32.partialorder %v9875_v51, 0.7853982  ;;  %v2428_v47 = vcvt.s32.f32 %v2421_v63  ;;  %v9878_v7 = vand.u32 2147483647, %v7412_v37  ;;  %7047 = vcosq.f32 %v1919_v26  ;;  %v8840_v36 = vpop.eup %7039 }
 0x1f1   : > { %vm9789_vm7 = vcmp.lt.s32.totalorder %v8590_v2, 0  ;;  %v2306_v25 = vshll.u32 %v2305_v33, 30  ;;  %7049 = vsinq.f32 %v1919_v26  ;;  %v8844_v15 = vsel %vm8780_vm2, 0, %v2227_v58 }
 0x1f2   : > { %vm8831_vm14 = vcmp.le.f32.partialorder %v9878_v7, 0.7853982  ;;  %v9881_v8 = vand.u32 2147483647, %v8511_v27  ;;  %v2429_v13 = vmul.f32 %v2428_v47, %v2426_v10  ;;  %v888_v31 = vsel %vm803_vm6, %v887_v30, %v7569_v50 }
 0x1f3   : > { %v889_v6 = vsel %vm8831_vm14, %v7412_v37, %v7987_v60  ;;  %7051 = vcosq.f32 %v2228_v56  ;;  %v2124_v60 = vsel %vm2039_vm4, %v2123_v59, %v8657_v22  ;;  %v8858_v16 = vsub.s32 %v2303_v19, %v2306_v25 }
 0x1f4   : > { %vm8848_vm9 = vcmp.le.f32.partialorder %v9881_v8, 0.7853982  ;;  %v4699_v34 = vlaneseq  ;;  %v2122_v4 = vsel %vm2039_vm4, %v2121_v46, %v2120_v12  ;;  %v2432_v54 = vsub.s32 4, %v8720_v57  ;;  %v9889_v8 = vld [vmem:[#allocation17_spill] sm:$0xff] }
 0x1f5   : > { %vm8865_vm10 = vcmp.le.f32.partialorder %v2243_v3, 0.7853982  ;;  %v890_v50 = vsel %vm8831_vm14, 0, %v888_v31  ;;  %7053 = vcosq.f32 %v889_v6  ;;  %v2309_v22 = vsub.s32 0, %v8858_v16 }
 0x1f6   : > { %7055 = vsinq.f32 %v889_v6  ;;  %v9886_v23 = vand.u32 2147483647, %v7432_v62  ;;  %v990_v28 = vsub.s32 4, %v9887_v5  ;;  %v2430_v18 = vxor.u32 2147483648, %v2429_v13 }
 0x1f7   : > { %v2329_v17 = vsub.s32 4, %v2305_v33  ;;  %v2542_v21 = vadd.s32 3, %v890_v50  ;;  %7057 = vsinq.f32 %v2228_v56  ;;  %v6225_v29 = vmin.u32 %v2309_v22, %v8858_v16 }
 0x1f8   : > { %vm905_vm6 = vcmp.le.f32.partialorder %v9886_v23, 0.7853982  ;;  %v991_v40 = vsel %vm906_vm1, %v990_v28, %v9887_v5  ;;  %v2125_v44 = vsel %vm8820_vm3, %v8455_v39, %v2122_v4  ;;  %v8886_v49 = vsel %vm8820_vm3, 0, %v2124_v60  ;;  %v8891_v12 = vpop.eup %7041  ;;  %v9891_v60 = vld [vmem:[#allocation14_spill] sm:$0xff]  ;;  %v9892_v4 = vld [vmem:[#allocation15_spill] sm:$0xff]  ;;  %v9893_v28 = vld [vmem:[#allocation21_spill] sm:$0xff] }
 0x1f9   : > { %v992_v3 = vsel %vm905_vm6, %v7432_v62, %v9888_v32  ;;  %v2433_v38 = vsel %vm2348_vm5, %v2432_v54, %v8720_v57  ;;  %v993_v19 = vsel %vm905_vm6, 0, %v991_v40  ;;  %v2311_v63 = vclz %v6225_v29  ;;  %v8895_v53 = vpop.eup %7043 }
 0x1fa   : > { %7059 = vcosq.f32 %v992_v3  ;;  %v8893_v48 = vand.u32 3, %v2542_v21  ;;  %v2646_v41 = vadd.s32 3, %v993_v19  ;;  %v2431_v26 = vsel %vm2348_vm5, %v2430_v18, %v2429_v13  ;;  %v8903_v57 = vpop.eup %7045  ;;  %v9890_v13 = vld [vmem:[#allocation16_spill] sm:$0xff] }
 0x1fb   : > { %v2330_v30 = vsel %vm9789_vm7, %v2329_v17, %v2305_v33  ;;  %7061 = vsinq.f32 %v992_v3  ;;  %v8901_v58 = vand.u32 3, %v890_v50  ;;  %v8907_v51 = vsel %vm8848_vm9, 0, %v2433_v38  ;;  %v9894_v3 = vld [vmem:[#allocation20_spill] sm:$0xff] }
 0x1fc   : > { %7063 = vcosq.f32 %v2125_v44  ;;  %v6226_v0 = vadd.s32 4294967294, %v2311_v63  ;;  %v8909_v59 = vand.u32 127, %v4699_v34  ;;  %v2299_v10 = vadd.s32 %v8755_v52, %v8763_v1 }
 0x1fd   : > { %7065 = vsinq.f32 %v2125_v44  ;;  %v8913_v56 = vand.u32 3, %v2646_v41  ;;  %v8915_v33 = vand.u32 3, %v993_v19  ;;  %v8920_v46 = vsel %vm8848_vm9, %v8511_v27, %v2431_v26  ;;  %v8927_v7 = vpop.eup %7047 }
 0x1fe   : > { %vm6227_vm1 = vcmp.lt.s32.totalorder %v6226_v0, 0  ;;  %v8924_v47 = vsel %vm8865_vm10, 0, %v2330_v30  ;;  %vm2544_vm11 = vcmp.lt.s32.totalorder %v8893_v48, 2  ;;  %vm893_vm12 = vweird.f32 %v7412_v37  ;;  %v8933_v52 = vpop.eup %7049 }
 0x1ff   : > { %v2314_v61 = vsel %vm6227_vm1, 0, %v6226_v0  ;;  %vm2545_vm13 = vcmp.eq.s32.totalorder %v8893_v48, 0  ;;  %vm2548_vm8 = vcmp.eq.s32.totalorder %v8893_v48, 2  ;;  %vm895_vm15 = vcmp.lt.s32.totalorder %v8901_v58, 2 }
 0x200   : > { %v2315_v1 = vsub.s32 32, %v2314_v61  ;;  %v2319_v25 = vsub.s32 4294967266, %v2314_v61  ;;  %vm896_vm2 = vcmp.eq.s32.totalorder %v8901_v58, 0  ;;  %vm899_vm0 = vcmp.eq.s32.totalorder %v8901_v58, 2  ;;  %v8937_v6 = vpop.eup %7051 }
 0x201   : > { %vm2652_vm4 = vcmp.eq.s32.totalorder %v8913_v56, 2  ;;  %vm1002_vm3 = vcmp.eq.s32.totalorder %v8915_v33, 2  ;;  %v1103_v45 = vxor.u32 2147483648, %v9889_v8  ;;  %v1106_v31 = vxor.u32 2147483648, %v9890_v13 }
 0x202   : > { %v2750_v34 = vadd.s32 3, %v9891_v60  ;;  %v2854_v54 = vadd.s32 3, %v9892_v4  ;;  %v7054_v50 = vpop.eup %7053  ;;  %v2316_v22 = vshll.u32 %v8858_v16, %v2314_v61  ;;  %v2317_v23 = vshrl.u32 %v2299_v10, %v2315_v1  ;;  %v9895_v1 = vld [vmem:[#allocation6_spill] sm:$0xff] }
 0x203   : > { %v2320_v5 = vadd.s32 127, %v2319_v25  ;;  %vm2649_vm5 = vcmp.eq.s32.totalorder %v8913_v56, 0  ;;  %v1206_v18 = vxor.u32 2147483648, %v9893_v28  ;;  %v7056_v17 = vpop.eup %7055  ;;  %v900_v32 = vxor.u32 2147483648, %v7054_v50  ;;  %v9896_v25 = vld [vmem:[#allocation7_spill] sm:$0xff] }
 0x204   : > { %v1209_v21 = vxor.u32 2147483648, %v9894_v3  ;;  %v2751_v29 = vand.u32 3, %v2750_v34  ;;  %v8953_v40 = vand.u32 3, %v9891_v60  ;;  %v2318_v16 = vor.u32 %v2317_v23, %v2316_v22  ;;  %v8959_v63 = vpop.eup %7057 }
 0x205   : > { %v2321_v44 = vshll.u32 %v2320_v5, 23  ;;  %v897_v38 = vxor.u32 2147483648, %v7056_v17  ;;  %v8957_v19 = vand.u32 3, %v9892_v4  ;;  %v2550_v41 = vsel %vm2548_vm8, %v900_v32, %v7056_v17 }
 0x206   : > { %vm4169_vm7 = vcmask 523264   ;;  %v901_v26 = vsel %vm899_vm0, %v900_v32, %v7056_v17  ;;  %vm2752_vm6 = vcmp.lt.s32.totalorder %v2751_v29, 2  ;;  %v2855_v30 = vand.u32 3, %v2854_v54 }
 0x207   : > { %v2322_v0 = vor.u32 4788187, %v2321_v44  ;;  %v2547_v10 = vsel %vm2545_vm13, %v7054_v50, %v897_v38  ;;  %v898_v61 = vsel %vm896_vm2, %v7054_v50, %v897_v38  ;;  %vm1099_vm1 = vweird.f32 %v9895_v1  ;;  %v7060_v60 = vpop.eup %7059  ;;  %v9907_v1 = vld [vmem:[#allocation25_spill] sm:$0xff] }
 0x208   : > { %vm1202_vm9 = vweird.f32 %v9896_v25  ;;  %vm2753_vm14 = vcmp.eq.s32.totalorder %v2751_v29, 0  ;;  %v2325_v34 = vcvt.s32.f32 %v2318_v16  ;;  %v2551_v4 = vsel %vm2544_vm11, %v2547_v10, %v2550_v41  ;;  %v7062_v23 = vpop.eup %7061 }
 0x209   : > { %v902_v54 = vsel %vm895_vm15, %v898_v61, %v901_v26  ;;  %v2755_v22 = vsel %vm2753_vm14, %v9890_v13, %v1103_v45  ;;  %v2323_v5 = vand.u32 2147483647, %v2322_v0  ;;  %v1003_v50 = vxor.u32 2147483648, %v7060_v60  ;;  %v8980_v32 = vpop.eup %7063 }
 0x20a   : > { %v2552_v17 = vsel %vm893_vm12, nan, %v2551_v4  ;;  %vm2756_vm13 = vcmp.eq.s32.totalorder %v2751_v29, 2  ;;  %v1000_v16 = vxor.u32 2147483648, %v7062_v23  ;;  %v903_v48 = vsel %vm893_vm12, nan, %v902_v54  ;;  %v8987_v44 = vpop.eup %7065 }
 0x20b   : > { %v2758_v58 = vsel %vm2756_vm13, %v1106_v31, %v9889_v8  ;;  %vm2856_vm11 = vcmp.lt.s32.totalorder %v2855_v30, 2  ;;  %v2326_v38 = vmul.f32 %v2325_v34, %v2323_v5  ;;  %v2654_v41 = vsel %vm2652_vm4, %v1003_v50, %v7062_v23 }
 0x20c   : > { %v1004_v26 = vsel %vm1002_vm3, %v1003_v50, %v7062_v23  ;;  %vm2857_vm8 = vcmp.eq.s32.totalorder %v2855_v30, 0  ;;  %v2651_v0 = vsel %vm2649_vm5, %v7060_v60, %v1000_v16  ;;  %vm9897_vm12 = vcmp.eq.s32.totalorder %v8915_v33, 0 }
 0x20d   : > { %v1001_v37 = vsel %vm9897_vm12, %v7060_v60, %v1000_v16  ;;  %v2759_v10 = vsel %vm2752_vm6, %v2755_v22, %v2758_v58  ;;  %v2859_v61 = vsel %vm2857_vm8, %v9894_v3, %v1206_v18  ;;  %v2327_v34 = vxor.u32 2147483648, %v2326_v38 }
 0x20e   : > { %vm9898_vm15 = vcmp.lt.s32.totalorder %v8913_v56, 2  ;;  %vm9899_vm2 = vcmp.lt.s32.totalorder %v8915_v33, 2  ;;  %vm2860_vm0 = vcmp.eq.s32.totalorder %v2855_v30, 2  ;;  %vm9900_vm4 = vweird.f32 %v7432_v62 }
 0x20f   : > { %v2655_v4 = vsel %vm9898_vm15, %v2651_v0, %v2654_v41  ;;  %v1005_v54 = vsel %vm9899_vm2, %v1001_v37, %v1004_v26  ;;  %vm9901_vm3 = vmmov %vm9900_vm4  ;;  %v2862_v29 = vsel %vm2860_vm0, %v1209_v21, %v9893_v28  ;;  %vm1102_vm5 = vcmp.eq.s32.totalorder %v8953_v40, 0  ;;  %v9908_v37 = vld [vmem:[#allocation23_spill] sm:$0xff] }
 0x210   : > { %v2656_v23 = vsel %vm9900_vm4, nan, %v2655_v4  ;;  %v1006_v60 = vsel %vm9901_vm3, nan, %v1005_v54  ;;  %vm9902_vm14 = vcmp.lt.s32.totalorder %v8590_v2, 0  ;;  %v2863_v33 = vsel %vm2856_vm11, %v2859_v61, %v2862_v29 }
 0x211   : > { %v2328_v56 = vsel %vm9902_vm14, %v2327_v34, %v2326_v38  ;;  %v4129_v22 = vpack.c.bf16 %v2656_v23, %v2552_v17  ;;  %v4113_v5 = vpack.c.bf16 %v1006_v60, %v903_v48  ;;  %v2760_v50 = vsel %vm1099_vm1, nan, %v2759_v10  ;;  %v9904_v48 = vld [vmem:[#allocation22_spill] sm:$0xff] }
 0x212   : > { %v2864_v62 = vsel %vm1202_vm9, nan, %v2863_v33  ;;  %v1104_v16 = vsel %vm1102_vm5, %v9890_v13, %v1103_v45  ;;  %vm1105_vm6 = vcmp.eq.s32.totalorder %v8953_v40, 2  ;;  %v9027_v58 = vsel %vm8865_vm10, %v8590_v2, %v2328_v56 }
 0x213   : > { %6595 = vmatprep.mubr.msk.bf16.mxu0 %vm4169_vm7, %v4129_v22  ;;  %6619 = vmatprep.mubr.msk.bf16.mxu1 %vm4169_vm7, %v4113_v5  ;;  %v4130_v30 = vpack.c.bf16 %v2864_v62, %v2760_v50  ;;  %vm1101_vm13 = vcmp.lt.s32.totalorder %v8953_v40, 2  ;;  %v1107_v17 = vsel %vm1105_vm6, %v1106_v31, %v9889_v8  ;;  %7067 = vcosq.f32 %v8920_v46  ;;  %v9903_v40 = vld [vmem:[#allocation9_spill] sm:$0xff] }
 0x214   : > { %v1108_v45 = vsel %vm1101_vm13, %v1104_v16, %v1107_v17  ;;  %vm1205_vm11 = vcmp.eq.s32.totalorder %v8957_v19, 0  ;;  %vm1208_vm8 = vcmp.eq.s32.totalorder %v8957_v19, 2  ;;  %7069 = vsinq.f32 %v8920_v46 }
 0x215   : > { %6596 = vmatmul.mubr.msk.bf16.vlgmr.msra.gmra.mxu0 %vm4169_vm7, %v4130_v30  ;;  %vm1204_vm10 = vcmp.lt.s32.totalorder %v8957_v19, 2  ;;  %v1207_v24 = vsel %vm1205_vm11, %v9894_v3, %v1206_v18  ;;  %v1210_v8 = vsel %vm1208_vm8, %v1209_v21, %v9893_v28  ;;  %7071 = vcosq.f32 %v9027_v58  ;;  %v9905_v18 = vld [vmem:[#allocation19_spill] sm:$0xff]  ;;  %v9906_v3 = vld [vmem:[#allocation8_spill] sm:$0xff] }
 0x216   : > { %v1109_v13 = vsel %vm1099_vm1, nan, %v1108_v45  ;;  %v1211_v31 = vsel %vm1204_vm10, %v1207_v24, %v1210_v8  ;;  %vm1305_vm12 = vweird.f32 %v9903_v40  ;;  %v1309_v19 = vxor.u32 2147483648, %v8472_v11  ;;  %v9909_v30 = vld [vmem:[#allocation12_spill] sm:$0xff] }
 0x217   : > { %v1212_v46 = vsel %vm1202_vm9, nan, %v1211_v31  ;;  %v2958_v38 = vadd.s32 3, %v9904_v48  ;;  %v3062_v41 = vadd.s32 3, %v9905_v18  ;;  %v1312_v28 = vxor.u32 2147483648, %v8464_v35  ;;  %v9910_v8 = vld [vmem:[#allocation32_spill] sm:$0xff]  ;;  %v9911_v31 = vld [vmem:[#allocation31_spill] sm:$0xff] }
 0x218   : > { %v4114_v26 = vpack.c.bf16 %v1212_v46, %v1109_v13  ;;  %vm1408_vm15 = vweird.f32 %v9906_v3  ;;  %v1306_v21 = vand.u32 3, %v9904_v48  ;;  %v1412_v0 = vxor.u32 2147483648, %v9907_v1 }
 0x219   : > { %v1415_v10 = vxor.u32 2147483648, %v9908_v37  ;;  %v2959_v61 = vand.u32 3, %v2958_v38  ;;  %v3063_v25 = vand.u32 3, %v3062_v41  ;;  %v1409_v34 = vand.u32 3, %v9905_v18  ;;  %v9913_v18 = vld [vmem:[#allocation10_spill] sm:$0xff]  ;;  %v9914_v41 = vld [vmem:[#allocation24_spill] sm:$0xff] }
 0x21a   : > { %6620 = vmatmul.mubr.msk.bf16.vlgmr.msra.gmra.mxu1 %vm4169_vm7, %v4114_v26  ;;  %vm1307_vm9 = vcmp.lt.s32.totalorder %v1306_v21, 2  ;;  %vm1308_vm1 = vcmp.eq.s32.totalorder %v1306_v21, 0  ;;  %vm1311_vm2 = vcmp.eq.s32.totalorder %v1306_v21, 2  ;;  %vm1511_vm8 = vweird.f32 %v9909_v30 }
 0x21b   : > { %vm2960_vm0 = vcmp.lt.s32.totalorder %v2959_v61, 2  ;;  %vm2961_vm4 = vcmp.eq.s32.totalorder %v2959_v61, 0  ;;  %vm2964_vm3 = vcmp.eq.s32.totalorder %v2959_v61, 2  ;;  %vm3064_vm5 = vcmp.lt.s32.totalorder %v3063_v25, 2 }
 0x21c   : > { %v2963_v4 = vsel %vm2961_vm4, %v8464_v35, %v1309_v19  ;;  %v2966_v54 = vsel %vm2964_vm3, %v1312_v28, %v8472_v11  ;;  %vm3065_vm14 = vcmp.eq.s32.totalorder %v3063_v25, 0  ;;  %vm3068_vm6 = vcmp.eq.s32.totalorder %v3063_v25, 2 }
 0x21d   : > { %v2967_v23 = vsel %vm2960_vm0, %v2963_v4, %v2966_v54  ;;  %v3067_v60 = vsel %vm3065_vm14, %v9908_v37, %v1412_v0  ;;  %v3070_v29 = vsel %vm3068_vm6, %v1415_v10, %v9907_v1  ;;  %v1310_v56 = vsel %vm1308_vm1, %v8464_v35, %v1309_v19  ;;  %v9912_v19 = vld [vmem:[#allocation26_spill] sm:$0xff] }
 0x21e   : > { %v2968_v22 = vsel %vm1305_vm12, nan, %v2967_v23  ;;  %v3071_v5 = vsel %vm3064_vm5, %v3067_v60, %v3070_v29  ;;  %v1313_v33 = vsel %vm1311_vm2, %v1312_v28, %v8472_v11  ;;  %vm1411_vm13 = vcmp.eq.s32.totalorder %v1409_v34, 0 }
 0x21f   : > { %v3072_v50 = vsel %vm1408_vm15, nan, %v3071_v5  ;;  %v1314_v62 = vsel %vm1307_vm9, %v1310_v56, %v1313_v33  ;;  %v1413_v16 = vsel %vm1411_vm13, %v9908_v37, %v1412_v0  ;;  %vm1414_vm11 = vcmp.eq.s32.totalorder %v1409_v34, 2  ;;  %v9915_v0 = vld [vmem:[#allocation30_spill] sm:$0xff] }
 0x220   : > { %v4131_v17 = vpack.c.bf16 %v3072_v50, %v2968_v22  ;;  %v1315_v35 = vsel %vm1305_vm12, nan, %v1314_v62  ;;  %vm1410_vm10 = vcmp.lt.s32.totalorder %v1409_v34, 2  ;;  %v1416_v45 = vsel %vm1414_vm11, %v1415_v10, %v9907_v1  ;;  %v9080_v24 = vpop.eup %7067  ;;  %v9916_v10 = vld [vmem:[#allocation27_spill] sm:$0xff] }
 0x221   : > { %v1417_v11 = vsel %vm1410_vm10, %v1413_v16, %v1416_v45  ;;  %v1515_v13 = vxor.u32 2147483648, %v9910_v8  ;;  %v1518_v46 = vxor.u32 2147483648, %v9911_v31  ;;  %v3166_v48 = vadd.s32 3, %v9912_v19  ;;  %v9085_v38 = vpop.eup %7069 }
 0x222   : > { %6599 = vmatprep.mubr.msk.bf16.mxu0 %vm4169_vm7, %v4131_v17  ;;  %v1418_v40 = vsel %vm1408_vm15, nan, %v1417_v11  ;;  %vm1614_vm12 = vweird.f32 %v9913_v18  ;;  %v3270_v26 = vadd.s32 3, %v9914_v41  ;;  %v1512_v28 = vand.u32 3, %v9912_v19  ;;  %v9093_v21 = vpop.eup %7071  ;;  %v9918_v19 = vld [vmem:[#allocation28_spill] sm:$0xff] }
 0x223   : > { %v4115_v1 = vpack.c.bf16 %v1418_v40, %v1315_v35  ;;  %v1618_v37 = vxor.u32 2147483648, %v9915_v0  ;;  %v1621_v61 = vxor.u32 2147483648, %v9916_v10  ;;  %v3167_v25 = vand.u32 3, %v3166_v48 }
 0x224   : > { %v3271_v34 = vand.u32 3, %v3270_v26  ;;  %vm1513_vm9 = vcmp.lt.s32.totalorder %v1512_v28, 2  ;;  %vm1514_vm1 = vcmp.eq.s32.totalorder %v1512_v28, 0  ;;  %v1615_v3 = vand.u32 3, %v9914_v41  ;;  %v9919_v41 = vld [vmem:[#allocation13_spill] sm:$0xff]  ;;  %v9920_v26 = vld [vmem:[#allocation34_spill] sm:$0xff] }
 0x225   : > { %6623 = vmatprep.mubr.msk.bf16.mxu1 %vm4169_vm7, %v4115_v1  ;;  %vm3169_vm15 = vcmp.eq.s32.totalorder %v3167_v25, 0  ;;  %vm3172_vm2 = vcmp.eq.s32.totalorder %v3167_v25, 2  ;;  %v1516_v4 = vsel %vm1514_vm1, %v9911_v31, %v1515_v13  ;;  %vm1517_vm0 = vcmp.eq.s32.totalorder %v1512_v28, 2  ;;  %v9921_v1 = vld [vmem:[#allocation33_spill] sm:$0xff] }
 0x226   : > { %vm3168_vm4 = vcmp.lt.s32.totalorder %v3167_v25, 2  ;;  %v3171_v54 = vsel %vm3169_vm15, %v9911_v31, %v1515_v13  ;;  %v3174_v23 = vsel %vm3172_vm2, %v1518_v46, %v9910_v8  ;;  %vm3273_vm3 = vcmp.eq.s32.totalorder %v3271_v34, 0  ;;  %v9917_v31 = vld [vmem:[#allocation29_spill] sm:$0xff] }
 0x227   : > { %v3175_v60 = vsel %vm3168_vm4, %v3171_v54, %v3174_v23  ;;  %v3275_v29 = vsel %vm3273_vm3, %v9916_v10, %v1618_v37  ;;  %vm3276_vm5 = vcmp.eq.s32.totalorder %v3271_v34, 2  ;;  %v1519_v56 = vsel %vm1517_vm0, %v1518_v46, %v9910_v8 }
 0x228   : > { %v3176_v22 = vsel %vm1511_vm8, nan, %v3175_v60  ;;  %vm3272_vm14 = vcmp.lt.s32.totalorder %v3271_v34, 2  ;;  %v3278_v5 = vsel %vm3276_vm5, %v1621_v61, %v9915_v0  ;;  %v1520_v33 = vsel %vm1513_vm9, %v1516_v4, %v1519_v56 }
 0x229   : > { %v3279_v50 = vsel %vm3272_vm14, %v3275_v29, %v3278_v5  ;;  %vm1616_vm6 = vcmp.lt.s32.totalorder %v1615_v3, 2  ;;  %vm1617_vm13 = vcmp.eq.s32.totalorder %v1615_v3, 0  ;;  %vm1620_vm11 = vcmp.eq.s32.totalorder %v1615_v3, 2 }
 0x22a   : > { %v3280_v62 = vsel %vm1614_vm12, nan, %v3279_v50  ;;  %v1521_v16 = vsel %vm1511_vm8, nan, %v1520_v33  ;;  %v1619_v17 = vsel %vm1617_vm13, %v9916_v10, %v1618_v37  ;;  %v1622_v35 = vsel %vm1620_vm11, %v1621_v61, %v9915_v0 }
 0x22b   : > { %7073 = vsinq.f32 %v9027_v58  ;;  %v4132_v45 = vpack.c.bf16 %v3280_v62, %v3176_v22  ;;  %v1623_v11 = vsel %vm1616_vm6, %v1619_v17, %v1622_v35  ;;  %vm1717_vm10 = vweird.f32 %v8015_v42 }
 0x22c   : > { %v1624_v8 = vsel %vm1614_vm12, nan, %v1623_v11  ;;  %v1721_v13 = vxor.u32 2147483648, %v8891_v12  ;;  %v3374_v46 = vadd.s32 3, %v9917_v31  ;;  %v3478_v30 = vadd.s32 3, %v9918_v19 }
 0x22d   : > { %6600 = vmatmul.mubr.msk.bf16.gmra.mxu0 %vm4169_vm7, %v4132_v45  ;;  %v4116_v48 = vpack.c.bf16 %v1624_v8, %v1521_v16  ;;  %v1724_v40 = vxor.u32 2147483648, %v8840_v36  ;;  %vm1820_vm8 = vweird.f32 %v9919_v41  ;;  %v1718_v58 = vand.u32 3, %v9917_v31 }
 0x22e   : > { %v1824_v28 = vxor.u32 2147483648, %v9920_v26  ;;  %v1827_v18 = vxor.u32 2147483648, %v9921_v1  ;;  %v3375_v0 = vand.u32 3, %v3374_v46  ;;  %v3479_v37 = vand.u32 3, %v3478_v30 }
 0x22f   : > { %6624 = vmatmul.mubr.msk.bf16.gmra.mxu1 %vm4169_vm7, %v4116_v48  ;;  %vm1719_vm12 = vcmp.lt.s32.totalorder %v1718_v58, 2  ;;  %vm1720_vm9 = vcmp.eq.s32.totalorder %v1718_v58, 0  ;;  %vm1723_vm1 = vcmp.eq.s32.totalorder %v1718_v58, 2  ;;  %v1821_v10 = vand.u32 3, %v9918_v19 }
 0x230   : > { %vm3376_vm15 = vcmp.lt.s32.totalorder %v3375_v0, 2  ;;  %vm3377_vm2 = vcmp.eq.s32.totalorder %v3375_v0, 0  ;;  %vm3380_vm0 = vcmp.eq.s32.totalorder %v3375_v0, 2  ;;  %vm3480_vm4 = vcmp.lt.s32.totalorder %v3479_v37, 2 }
 0x231   : > { %v3379_v61 = vsel %vm3377_vm2, %v8840_v36, %v1721_v13  ;;  %v3382_v25 = vsel %vm3380_vm0, %v1724_v40, %v8891_v12  ;;  %vm3481_vm3 = vcmp.eq.s32.totalorder %v3479_v37, 0  ;;  %vm3484_vm5 = vcmp.eq.s32.totalorder %v3479_v37, 2 }
 0x232   : > { %v3383_v34 = vsel %vm3376_vm15, %v3379_v61, %v3382_v25  ;;  %v3483_v3 = vsel %vm3481_vm3, %v9921_v1, %v1824_v28  ;;  %v3486_v4 = vsel %vm3484_vm5, %v1827_v18, %v9920_v26  ;;  %v1722_v54 = vsel %vm1720_vm9, %v8840_v36, %v1721_v13 }
 0x233   : > { %v3384_v23 = vsel %vm1717_vm10, nan, %v3383_v34  ;;  %v3487_v60 = vsel %vm3480_vm4, %v3483_v3, %v3486_v4  ;;  %v1725_v29 = vsel %vm1723_vm1, %v1724_v40, %v8891_v12  ;;  %vm1823_vm14 = vcmp.eq.s32.totalorder %v1821_v10, 0 }
 0x234   : > { %v3488_v56 = vsel %vm1820_vm8, nan, %v3487_v60  ;;  %v1726_v22 = vsel %vm1719_vm12, %v1722_v54, %v1725_v29  ;;  %v1825_v5 = vsel %vm1823_vm14, %v9921_v1, %v1824_v28  ;;  %vm1826_vm6 = vcmp.eq.s32.totalorder %v1821_v10, 2  ;;  %v9188_v60 = vpop.permute.xlu1 %4721  ;;  %v9190_v29 = vpop.permute.xlu0 %4718 }
 0x235   : > { %vm1923_vm13 = vweird.f32 %v8177_v9  ;;  %v4133_v33 = vpack.c.bf16 %v3488_v56, %v3384_v23  ;;  %v1727_v36 = vsel %vm1717_vm10, nan, %v1726_v22  ;;  %vm1822_vm11 = vcmp.lt.s32.totalorder %v1821_v10, 2 }
 0x236   : > { %v1828_v50 = vsel %vm1826_vm6, %v1827_v18, %v9920_v26  ;;  %v1927_v12 = vxor.u32 2147483648, %v8933_v52  ;;  %v1930_v16 = vxor.u32 2147483648, %v8927_v7  ;;  %v3582_v17 = vadd.s32 3, %v8806_v20 }
 0x237   : > { %v1829_v62 = vsel %vm1822_vm11, %v1825_v5, %v1828_v50  ;;  %6603 = vmatprep.mubr.msk.bf16.mxu0 %vm4169_vm7, %v4133_v33  ;;  %vm2026_vm12 = vweird.f32 %v8070_v14  ;;  %v3686_v42 = vadd.s32 3, %v8769_v43  ;;  %v1924_v45 = vand.u32 3, %v8806_v20 }
 0x238   : > { %v1830_v35 = vsel %vm1820_vm8, nan, %v1829_v62  ;;  %v9155_v11 = vpop.eup %7073  ;;  %v2030_v13 = vxor.u32 2147483648, %v8903_v57  ;;  %v2033_v31 = vxor.u32 2147483648, %v8895_v53  ;;  %v3583_v46 = vand.u32 3, %v3582_v17 }
 0x239   : > { %v4117_v8 = vpack.c.bf16 %v1830_v35, %v1727_v36  ;;  %v3687_v19 = vand.u32 3, %v3686_v42  ;;  %vm1925_vm10 = vcmp.lt.s32.totalorder %v1924_v45, 2  ;;  %vm1926_vm9 = vcmp.eq.s32.totalorder %v1924_v45, 0  ;;  %v9205_v42 = vpop.permute.xlu1 %4727 }
 0x23a   : > { %v2027_v30 = vand.u32 3, %v8769_v43  ;;  %vm3585_vm8 = vcmp.eq.s32.totalorder %v3583_v46, 0  ;;  %vm3588_vm1 = vcmp.eq.s32.totalorder %v3583_v46, 2  ;;  %v1928_v48 = vsel %vm1926_vm9, %v8927_v7, %v1927_v12 }
 0x23b   : > { %6627 = vmatprep.mubr.msk.bf16.mxu1 %vm4169_vm7, %v4117_v8  ;;  %vm1929_vm15 = vcmp.eq.s32.totalorder %v1924_v45, 2  ;;  %vm3584_vm2 = vcmp.lt.s32.totalorder %v3583_v46, 2  ;;  %v3587_v20 = vsel %vm3585_vm8, %v8927_v7, %v1927_v12  ;;  %v3590_v40 = vsel %vm3588_vm1, %v1930_v16, %v8933_v52  ;;  %v9207_v45 = vpop.permute.xlu0 %4724 }
 0x23c   : > { %vm3689_vm0 = vcmp.eq.s32.totalorder %v3687_v19, 0  ;;  %v3591_v41 = vsel %vm3584_vm2, %v3587_v20, %v3590_v40  ;;  %vm3692_vm4 = vcmp.eq.s32.totalorder %v3687_v19, 2  ;;  %v1931_v26 = vsel %vm1929_vm15, %v1930_v16, %v8933_v52 }
 0x23d   : > { %v3691_v58 = vsel %vm3689_vm0, %v8895_v53, %v2030_v13  ;;  %v3592_v43 = vsel %vm1923_vm13, nan, %v3591_v41  ;;  %vm3688_vm3 = vcmp.lt.s32.totalorder %v3687_v19, 2  ;;  %v3694_v28 = vsel %vm3692_vm4, %v2033_v31, %v8903_v57 }
 0x23e   : > { %v1932_v1 = vsel %vm1925_vm10, %v1928_v48, %v1931_v26  ;;  %v3695_v18 = vsel %vm3688_vm3, %v3691_v58, %v3694_v28  ;;  %vm2028_vm5 = vcmp.lt.s32.totalorder %v2027_v30, 2  ;;  %vm2029_vm14 = vcmp.eq.s32.totalorder %v2027_v30, 0  ;;  %v4805_v48 = vld [vmem:[%s9711_s4] sm:$0xf]  ;;  %v4734_v28 = vpop.permute.xlu1 %4733 }
 0x23f   : > { %vm2032_vm6 = vcmp.eq.s32.totalorder %v2027_v30, 2  ;;  %v3696_v7 = vsel %vm2026_vm12, nan, %v3695_v18  ;;  %v1933_v0 = vsel %vm1923_vm13, nan, %v1932_v1  ;;  %v2031_v52 = vsel %vm2029_vm14, %v8895_v53, %v2030_v13 }
 0x240   : > { %v2034_v37 = vsel %vm2032_vm6, %v2033_v31, %v8903_v57  ;;  %vm2129_vm11 = vweird.f32 %v8455_v39  ;;  %v4134_v10 = vpack.c.bf16 %v3696_v7, %v3592_v43  ;;  %v2133_v25 = vxor.u32 2147483648, %v8987_v44 }
 0x241   : > { %v2035_v61 = vsel %vm2028_vm5, %v2031_v52, %v2034_v37  ;;  %v2136_v34 = vxor.u32 2147483648, %v8980_v32  ;;  %vm2232_vm10 = vweird.f32 %v8300_v55  ;;  %v3790_v9 = vadd.s32 3, %v8886_v49  ;;  %v4731_v55 = vpop.permute.xlu0 %4730 }
 0x242   : > { %v2036_v3 = vsel %vm2026_vm12, nan, %v2035_v61  ;;  %v3894_v4 = vadd.s32 3, %v8844_v15  ;;  %6604 = vmatmul.mubr.msk.bf16.gmra.mxu0 %vm4169_vm7, %v4134_v10  ;;  %v2236_v57 = vxor.u32 2147483648, %v8959_v63  ;;  %v2239_v54 = vxor.u32 2147483648, %v8937_v6 }
 0x243   : > { %v4118_v53 = vpack.c.bf16 %v2036_v3, %v1933_v0  ;;  %v2130_v23 = vand.u32 3, %v8886_v49  ;;  %v3791_v14 = vand.u32 3, %v3790_v9  ;;  %v2233_v22 = vand.u32 3, %v8844_v15 }
 0x244   : > { %v3895_v56 = vand.u32 3, %v3894_v4  ;;  %v2339_v5 = vxor.u32 2147483648, %v9155_v11  ;;  %v2342_v33 = vxor.u32 2147483648, %v9093_v21  ;;  %vm2335_vm14 = vweird.f32 %v8590_v2 }
 0x245   : > { %6628 = vmatmul.mubr.msk.bf16.gmra.mxu1 %vm4169_vm7, %v4118_v53  ;;  %vm2131_vm13 = vcmp.lt.s32.totalorder %v2130_v23, 2  ;;  %vm2132_vm12 = vcmp.eq.s32.totalorder %v2130_v23, 0  ;;  %vm2135_vm9 = vcmp.eq.s32.totalorder %v2130_v23, 2  ;;  %vm3792_vm8 = vcmp.lt.s32.totalorder %v3791_v14, 2  ;;  %v4740_v53 = vpop.permute.xlu1 %4739 }
 0x246   : > { %vm3793_vm1 = vcmp.eq.s32.totalorder %v3791_v14, 0  ;;  %vm3796_vm15 = vcmp.eq.s32.totalorder %v3791_v14, 2  ;;  %vm3896_vm2 = vcmp.lt.s32.totalorder %v3895_v56, 2  ;;  %vm3897_vm0 = vcmp.eq.s32.totalorder %v3895_v56, 0 }
 0x247   : > { %v3795_v49 = vsel %vm3793_vm1, %v8980_v32, %v2133_v25  ;;  %v3798_v36 = vsel %vm3796_vm15, %v2136_v34, %v8987_v44  ;;  %vm3900_vm4 = vcmp.eq.s32.totalorder %v3895_v56, 2  ;;  %v3899_v50 = vsel %vm3897_vm0, %v8937_v6, %v2236_v57 }
 0x248   : > { %v3799_v15 = vsel %vm3792_vm8, %v3795_v49, %v3798_v36  ;;  %v3902_v62 = vsel %vm3900_vm4, %v2239_v54, %v8959_v63  ;;  %v2134_v12 = vsel %vm2132_vm12, %v8980_v32, %v2133_v25  ;;  %v2137_v35 = vsel %vm2135_vm9, %v2136_v34, %v8987_v44 }
 0x249   : > { %v3800_v16 = vsel %vm2129_vm11, nan, %v3799_v15  ;;  %v3903_v17 = vsel %vm3896_vm2, %v3899_v50, %v3902_v62  ;;  %vm2235_vm3 = vcmp.eq.s32.totalorder %v2233_v22, 0  ;;  %v2138_v13 = vsel %vm2131_vm13, %v2134_v12, %v2137_v35 }
 0x24a   : > { %v3904_v8 = vsel %vm2232_vm10, nan, %v3903_v17  ;;  %v2237_v31 = vsel %vm2235_vm3, %v8937_v6, %v2236_v57  ;;  %vm2238_vm5 = vcmp.eq.s32.totalorder %v2233_v22, 2  ;;  %vm4766_vm6 = vcmp.eq.s32.totalorder %v9188_v60, %v8909_v59  ;;  %v4737_v57 = vpop.permute.xlu0 %4736 }
 0x24b   : > { %vm4765_vm12 = vcmp.eq.s32.totalorder %v9190_v29, %v8909_v59  ;;  %v4135_v32 = vpack.c.bf16 %v3904_v8, %v3800_v16  ;;  %v2139_v44 = vsel %vm2129_vm11, nan, %v2138_v13  ;;  %vm2234_vm9 = vcmp.lt.s32.totalorder %v2233_v22, 2 }
 0x24c   : > { %v2240_v46 = vsel %vm2238_vm5, %v2239_v54, %v8959_v63  ;;  %vm2438_vm13 = vweird.f32 %v8511_v27  ;;  %v2442_v6 = vxor.u32 2147483648, %v9085_v38  ;;  %v3998_v30 = vadd.s32 3, %v8924_v47  ;;  %v4746_v27 = vpop.permute.xlu1 %4745 }
 0x24d   : > { %v2241_v19 = vsel %vm2234_vm9, %v2237_v31, %v2240_v46  ;;  %6607 = vmatprep.mubr.msk.bf16.mxu0 %vm4169_vm7, %v4135_v32  ;;  %v2445_v20 = vxor.u32 2147483648, %v9080_v24  ;;  %v4102_v63 = vadd.s32 3, %v8907_v51  ;;  %v2336_v40 = vand.u32 3, %v8924_v47 }
 0x24e   : > { %v2242_v39 = vsel %vm2232_vm10, nan, %v2241_v19  ;;  %v3999_v58 = vand.u32 3, %v3998_v30  ;;  %v2439_v26 = vand.u32 3, %v8907_v51  ;;  %vm4831_vm11 = vcmask 1043456   ;;  %v4743_v60 = vpop.permute.xlu0 %4742  ;;  %v6971_v30 = vld [vmem:[%s9715_s8 + $0x38] sm:$0xff]  }
 0x24f   : > { %v4119_v41 = vpack.c.bf16 %v2242_v39, %v2139_v44  ;;  %v4103_v43 = vand.u32 3, %v4102_v63  ;;  %vm2337_vm8 = vcmp.lt.s32.totalorder %v2336_v40, 2  ;;  %vm2338_vm1 = vcmp.eq.s32.totalorder %v2336_v40, 0  ;;  %6799 = vmatprep.subr.msk.bf16.mxu1 %vm4831_vm11, %v4805_v48  ;;  %6635 = vmatprep.subr.bf16.mxu0 %v6971_v30  ;;  %v6972_v63 = vld [vmem:[%s9715_s8 + $0x30] sm:$0xff]  }
 0x250   : > { %vm2341_vm15 = vcmp.eq.s32.totalorder %v2336_v40, 2  ;;  %vm4000_vm10 = vcmp.lt.s32.totalorder %v3999_v58, 2  ;;  %vm4001_vm2 = vcmp.eq.s32.totalorder %v3999_v58, 0  ;;  %vm4004_vm0 = vcmp.eq.s32.totalorder %v3999_v58, 2  ;;  %v4752_v36 = vpop.permute.xlu1 %4751  ;;  %6636 = vmatpush3.bf16.msra.mxu0 %v6971_v30  ;;  %v6974_v40 = vld [vmem:[%s9715_s8 + $0x20] sm:$0xff]   ;;  %v6976_v58 = vld [vmem:[%s9715_s8 + $0x10] sm:$0xff]  }
 0x251   : > { %6631 = vmatprep.mubr.msk.bf16.mxu1 %vm4169_vm7, %v4119_v41  ;;  %v2340_v47 = vsel %vm2338_vm1, %v9093_v21, %v2339_v5  ;;  %v4003_v1 = vsel %vm4001_vm2, %v9093_v21, %v2339_v5  ;;  %v4006_v51 = vsel %vm4004_vm0, %v2342_v33, %v9155_v11  ;;  %vm4104_vm4 = vcmp.lt.s32.totalorder %v4103_v43, 2  ;;  %6637 = vmatprep.subr.bf16.mxu0 %v6972_v63  ;;  %v6975_v41 = vld [vmem:[%s9715_s8 + $0x18] sm:$0xff]  }
 0x252   : > { %vm4105_vm3 = vcmp.eq.s32.totalorder %v4103_v43, 0  ;;  %v4007_v18 = vsel %vm4000_vm10, %v4003_v1, %v4006_v51  ;;  %vm4108_vm5 = vcmp.eq.s32.totalorder %v4103_v43, 2  ;;  %v2343_v0 = vsel %vm2341_vm15, %v2342_v33, %v9155_v11  ;;  %v4749_v15 = vpop.permute.xlu0 %4748  ;;  %v6978_v43 = vld [vmem:[%s9715_s8] sm:$0xff]  }
 0x253   : > { %v4107_v7 = vsel %vm4105_vm3, %v9080_v24, %v2442_v6  ;;  %v4008_v52 = vsel %vm2335_vm14, nan, %v4007_v18  ;;  %v4110_v37 = vsel %vm4108_vm5, %v2445_v20, %v9085_v38  ;;  %v2344_v10 = vsel %vm2337_vm8, %v2340_v47, %v2343_v0  ;;  %v9341_v51 = vld [vmem:[%s9714_s7] ss:$0 sm:$0xff] }
 0x254   : > { %vm2440_vm9 = vcmp.lt.s32.totalorder %v2439_v26, 2  ;;  %v4111_v61 = vsel %vm4104_vm4, %v4107_v7, %v4110_v37  ;;  %v2345_v25 = vsel %vm2335_vm14, nan, %v2344_v10  ;;  %vm2441_vm1 = vcmp.eq.s32.totalorder %v2439_v26, 0  ;;  %v4758_v35 = vpop.permute.xlu1 %4757  ;;  %6638 = vmatpush3.bf16.msra.mxu0 %v6972_v63 }
 0x255   : > { %vm2444_vm10 = vcmp.eq.s32.totalorder %v2439_v26, 2  ;;  %v4112_v34 = vsel %vm2438_vm13, nan, %v4111_v61  ;;  %v2443_v21 = vsel %vm2441_vm1, %v9080_v24, %v2442_v6  ;;  %v4833_v3 = vsel %vm4831_vm11, %v4805_v48, 0  ;;  %v6977_v26 = vld [vmem:[%s9715_s8 + $0x8] sm:$0xff]  }
 0x256   : > { %v2446_v11 = vsel %vm2444_vm10, %v2445_v20, %v9085_v38  ;;  %v7236_v9 = vmov 0.0   ;;  %v4136_v54 = vpack.c.bf16 %v4112_v34, %v4008_v52  ;;  %6668 = vmatpush3.bf16.msra.mxu1 %v4833_v3  ;;  %vm4806_vm14 = vcmask 64512  }
 0x257   : > { %v4782_v4 = vsel %vm4766_vm6, 1.0, %v7236_v9  ;;  %v4781_v2 = vsel %vm4765_vm12, 1.0, %v7236_v9  ;;  %v2447_v23 = vsel %vm2440_vm9, %v2443_v21, %v2446_v11  ;;  %vm4768_vm6 = vcmp.eq.s32.totalorder %v9205_v42, %v8909_v59  ;;  %v4755_v42 = vpop.permute.xlu0 %4754 }
 0x258   : > { %v2448_v24 = vsel %vm2438_vm13, nan, %v2447_v23  ;;  %6608 = vmatmul.mubr.msk.bf16.gmra.mxu0 %vm4169_vm7, %v4136_v54  ;;  %v4797_v14 = vpack.c.bf16 %v4782_v4, %v4781_v2  ;;  %vm4767_vm8 = vcmp.eq.s32.totalorder %v9207_v45, %v8909_v59  ;;  %vm4770_vm12 = vcmp.eq.s32.totalorder %v4734_v28, %v8909_v59  ;;  %v4764_v44 = vpop.permute.xlu1 %4763  ;;  %v9334_v28 = vld [vmem:[%s9717_s10] sm:$0xf] }
 0x259   : > { %v4120_v38 = vpack.c.bf16 %v2448_v24, %v2345_v25  ;;  %vm4769_vm15 = vcmp.eq.s32.totalorder %v4731_v55, %v8909_v59  ;;  %v4784_v29 = vsel %vm4768_vm6, 1.0, %v7236_v9  ;;  %v4783_v56 = vsel %vm4767_vm8, 1.0, %v7236_v9 }
 0x25a   : > { %v4786_v22 = vsel %vm4770_vm12, 1.0, %v7236_v9  ;;  %v4785_v5 = vsel %vm4769_vm15, 1.0, %v7236_v9  ;;  %v4798_v33 = vpack.c.bf16 %v4784_v29, %v4783_v56  ;;  %vm4771_vm13 = vcmp.eq.s32.totalorder %v4737_v57, %v8909_v59 }
 0x25b   : > { %6632 = vmatmul.mubr.msk.bf16.gmra.mxu1 %vm4169_vm7, %v4120_v38  ;;  %v4799_v49 = vpack.c.bf16 %v4786_v22, %v4785_v5  ;;  %vm4772_vm7 = vcmp.eq.s32.totalorder %v4740_v53, %v8909_v59  ;;  %vm4774_vm2 = vcmp.eq.s32.totalorder %v4746_v27, %v8909_v59  ;;  %vm4773_vm0 = vcmp.eq.s32.totalorder %v4743_v60, %v8909_v59  ;;  %v4761_v46 = vpop.permute.xlu0 %4760 }
 0x25c   : > { %6669 = vmatprep.mubr.msk.bf16.mxu1 %vm4806_vm14, %v4797_v14  ;;  %v4788_v50 = vsel %vm4772_vm7, 1.0, %v7236_v9  ;;  %v4787_v62 = vsel %vm4771_vm13, 1.0, %v7236_v9  ;;  %v4790_v12 = vsel %vm4774_vm2, 1.0, %v7236_v9  ;;  %v4789_v16 = vsel %vm4773_vm0, 1.0, %v7236_v9 }
 0x25d   : > { %v4800_v17 = vpack.c.bf16 %v4788_v50, %v4787_v62  ;;  %v4801_v45 = vpack.c.bf16 %v4790_v12, %v4789_v16  ;;  %vm4776_vm4 = vcmp.eq.s32.totalorder %v4752_v36, %v8909_v59  ;;  %vm4775_vm3 = vcmp.eq.s32.totalorder %v4749_v15, %v8909_v59 }
 0x25e   : > { %vm4778_vm5 = vcmp.eq.s32.totalorder %v4758_v35, %v8909_v59  ;;  %vm4777_vm9 = vcmp.eq.s32.totalorder %v4755_v42, %v8909_v59  ;;  %v4792_v8 = vsel %vm4776_vm4, 1.0, %v7236_v9  ;;  %v4791_v13 = vsel %vm4775_vm3, 1.0, %v7236_v9 }
 0x25f   : > { %v4794_v31 = vsel %vm4778_vm5, 1.0, %v7236_v9  ;;  %v4793_v32 = vsel %vm4777_vm9, 1.0, %v7236_v9  ;;  %v4802_v19 = vpack.c.bf16 %v4792_v8, %v4791_v13  ;;  %vm4780_vm1 = vcmp.eq.s32.totalorder %v4764_v44, %v8909_v59 }
 0x260   : > { %v4803_v6 = vpack.c.bf16 %v4794_v31, %v4793_v32  ;;  %vm4779_vm10 = vcmp.eq.s32.totalorder %v4761_v46, %v8909_v59  ;;  %v4796_v48 = vsel %vm4780_vm1, 1.0, %v7236_v9  ;;  %v6973_v59 = vld [vmem:[%s9715_s8 + $0x28] sm:$0xff]  }
 0x261   : > { %v4795_v39 = vsel %vm4779_vm10, 1.0, %v7236_v9  ;;  %6639 = vmatprep.subr.bf16.mxu0 %v6973_v59 }
 0x262   : > { %v4804_v20 = vpack.c.bf16 %v4796_v48, %v4795_v39  ;;  %6640 = vmatpush3.bf16.msra.mxu0 %v6973_v59 }
 0x263   : > { %6670 = vmatmul.mubr.msk.bf16.vlgmr.msra.gmra.mxu1 %vm4806_vm14, %v4798_v33  ;;  %6641 = vmatprep.subr.bf16.mxu0 %v6974_v40 }
 0x264   : > { %6673 = vmatprep.mubr.msk.bf16.mxu1 %vm4806_vm14, %v4799_v49 }
 0x266   : > { %6642 = vmatpush3.bf16.msra.mxu0 %v6974_v40 }
 0x267   : > { %6643 = vmatprep.subr.bf16.mxu0 %v6975_v41 }
 0x26a   : > { %6644 = vmatpush3.bf16.msra.mxu0 %v6975_v41 }
 0x26b   : > { %6674 = vmatmul.mubr.msk.bf16.gmra.mxu1 %vm4806_vm14, %v4800_v17  ;;  %6645 = vmatprep.subr.bf16.mxu0 %v6976_v58 }
 0x26c   : > { %6677 = vmatprep.mubr.msk.bf16.mxu1 %vm4806_vm14, %v4801_v45 }
 0x26e   : > { %6646 = vmatpush3.bf16.msra.mxu0 %v6976_v58 }
 0x26f   : > { %6647 = vmatprep.subr.bf16.mxu0 %v6977_v26 }
 0x272   : > { %6648 = vmatpush3.bf16.msra.mxu0 %v6977_v26 }
 0x273   : > { %6678 = vmatmul.mubr.msk.bf16.gmra.mxu1 %vm4806_vm14, %v4802_v19  ;;  %6649 = vmatprep.subr.bf16.mxu0 %v6978_v43 }
 0x274   : > { %6681 = vmatprep.mubr.msk.bf16.mxu1 %vm4806_vm14, %v4803_v6 }
 0x276   : > { %6650 = vmatpush3.bf16.msra.mxu0 %v6978_v43 }
 0x277   : > { %6800 = vmatprep.subr.msk.bf16.mxu0 %vm4831_vm11, %v9334_v28 }
 0x27b   : > { %6682 = vmatmul.mubr.msk.bf16.gmra.mxu1 %vm4806_vm14, %v4804_v20  ;;  %v5101_v20 = vsel %vm4831_vm11, %v9334_v28, 0 }
 0x2d5   : > { %v6597_v55 = vpop.f32.mrf.mxu0 }
 0x2d7   : > { %v4228_v47 = vpop.f32.mrf.mxu0 }
 0x2d9   : > { %v6598_v18 = vpop.f32.mrf.mxu0 }
 0x2da   : > { %v6621_v1 = vpop.f32.mrf.mxu1 }
 0x2db   : > { %v4382_v7 = vadd.f32 %v6621_v1, %v6597_v55  ;;  %v4231_v61 = vpop.f32.mrf.mxu0 }
 0x2dc   : > { %v4373_v0 = vpop.f32.mrf.mxu1 }
 0x2dd   : > { %v4445_v52 = vadd.f32 %v9341_v51, %v4382_v7  ;;  %v4374_v37 = vadd.f32 %v4373_v0, %v4228_v47 }
 0x2de   : > { %v6622_v10 = vpop.f32.mrf.mxu1 }
 0x2df   : > { %v4443_v25 = vadd.f32 %v9341_v51, %v4374_v37  ;;  %v4385_v34 = vadd.f32 %v6622_v10, %v6598_v18  ;;  %v4461_v21 = vmul.f32 0.5, %v4445_v52 }
 0x2e0   : > { %v4376_v11 = vpop.f32.mrf.mxu1 }
 0x2e1   : > { %v4459_v3 = vmul.f32 0.5, %v4443_v25  ;;  %v4446_v9 = vadd.f32 %v9341_v51, %v4385_v34  ;;  %v4377_v4 = vadd.f32 %v4376_v11, %v4231_v61 }
 0x2e3   : > { %7075 = vtanh.f32 %v4459_v3  ;;  %v4462_v2 = vmul.f32 0.5, %v4446_v9  ;;  %v4444_v53 = vadd.f32 %v9341_v51, %v4377_v4 }
 0x2e4   : > { %7077 = vtanh.f32 %v4461_v21 }
 0x2e5   : > { %7079 = vtanh.f32 %v4462_v2  ;;  %v4460_v57 = vmul.f32 0.5, %v4444_v53 }
 0x2e7   : > { %7081 = vtanh.f32 %v4460_v57 }
 0x2ed   : > { %v6601_v54 = vpop.f32.mrf.mxu0 }
 0x2ef   : > { %v6625_v23 = vpop.f32.mrf.mxu1  ;;  %v4244_v24 = vpop.f32.mrf.mxu0 }
 0x2f0   : > { %v7076_v38 = vpop.eup %7075  ;;  %v4398_v14 = vadd.f32 %v6625_v23, %v6601_v54 }
 0x2f1   : > { %v7078_v27 = vpop.eup %7077  ;;  %v4389_v60 = vpop.f32.mrf.mxu1  ;;  %v4491_v33 = vadd.f32 1.0, %v7076_v38 }
 0x2f2   : > { %v6602_v29 = vpop.f32.mrf.mxu0  ;;  %v7080_v56 = vpop.eup %7079  ;;  %v4449_v22 = vadd.f32 %v9341_v51, %v4398_v14  ;;  %v4390_v5 = vadd.f32 %v4389_v60, %v4244_v24  ;;  %v4493_v62 = vadd.f32 1.0, %v7078_v27 }
 0x2f3   : > { %v4494_v49 = vadd.f32 1.0, %v7080_v56  ;;  %v6626_v36 = vpop.f32.mrf.mxu1  ;;  %v4507_v32 = vmul.f32 %v4491_v33, %v4459_v3 }
 0x2f4   : > { %v4247_v15 = vpop.f32.mrf.mxu0  ;;  %v7082_v50 = vpop.eup %7081  ;;  %v4447_v12 = vadd.f32 %v9341_v51, %v4390_v5  ;;  %v4401_v16 = vadd.f32 %v6626_v36, %v6602_v29  ;;  %v4465_v35 = vmul.f32 0.5, %v4449_v22  ;;  %v4509_v46 = vmul.f32 %v4493_v62, %v4461_v21 }
 0x2f5   : > { %v4492_v17 = vadd.f32 1.0, %v7082_v50  ;;  %v4392_v42 = vpop.f32.mrf.mxu1  ;;  %v4510_v45 = vmul.f32 %v4494_v49, %v4462_v2 }
 0x2f6   : > { %v4463_v8 = vmul.f32 0.5, %v4447_v12  ;;  %v4450_v13 = vadd.f32 %v9341_v51, %v4401_v16  ;;  %v4393_v31 = vadd.f32 %v4392_v42, %v4247_v15 }
 0x2f7   : > { %v4508_v44 = vmul.f32 %v4492_v17, %v4460_v57  ;;  %v4524_v48 = vpack.c.bf16 %v4510_v45, %v4509_v46 }
 0x2f8   : > { %7083 = vtanh.f32 %v4463_v8  ;;  %v4466_v19 = vmul.f32 0.5, %v4450_v13  ;;  %v4448_v6 = vadd.f32 %v9341_v51, %v4393_v31 }
 0x2f9   : > { %7085 = vtanh.f32 %v4465_v35  ;;  %v4523_v30 = vpack.c.bf16 %v4508_v44, %v4507_v32 }
 0x2fa   : > { %7087 = vtanh.f32 %v4466_v19  ;;  %v4464_v39 = vmul.f32 0.5, %v4448_v6 }
 0x2fb   : > { %6651 = vmatprep.mubr.bf16.mxu0 %v4523_v30 }
 0x2fc   : > { %7089 = vtanh.f32 %v4464_v39  ;;  %6652 = vmatmul.mubr.bf16.vlgmr.msra.gmra.mxu0 %v4524_v48 }
 0x2fd   : > { %6686 = vmatpush3.bf16.msra.mxu0 %v5101_v20 }
 0x302   : > { %v6605_v63 = vpop.f32.mrf.mxu0 }
 0x304   : > { %v4260_v40 = vpop.f32.mrf.mxu0 }
 0x305   : > { %v6629_v59 = vpop.f32.mrf.mxu1  ;;  %v7084_v41 = vpop.eup %7083 }
 0x306   : > { %v4414_v58 = vadd.f32 %v6629_v59, %v6605_v63  ;;  %v7086_v26 = vpop.eup %7085  ;;  %v6606_v55 = vpop.f32.mrf.mxu0  ;;  %v4495_v7 = vadd.f32 1.0, %v7084_v41 }
 0x307   : > { %v4405_v43 = vpop.f32.mrf.mxu1  ;;  %v7088_v47 = vpop.eup %7087  ;;  %v4497_v10 = vadd.f32 1.0, %v7086_v26 }
 0x308   : > { %v4453_v1 = vadd.f32 %v9341_v51, %v4414_v58  ;;  %v4406_v18 = vadd.f32 %v4405_v43, %v4260_v40  ;;  %v4498_v0 = vadd.f32 1.0, %v7088_v47  ;;  %v4263_v28 = vpop.f32.mrf.mxu0  ;;  %v4511_v53 = vmul.f32 %v4495_v7, %v4463_v8 }
 0x309   : > { %v6630_v52 = vpop.f32.mrf.mxu1  ;;  %v7090_v37 = vpop.eup %7089  ;;  %v4513_v54 = vmul.f32 %v4497_v10, %v4465_v35 }
 0x30a   : > { %v4451_v61 = vadd.f32 %v9341_v51, %v4406_v18  ;;  %v4417_v25 = vadd.f32 %v6630_v52, %v6606_v55  ;;  %v4496_v34 = vadd.f32 1.0, %v7090_v37  ;;  %v4469_v21 = vmul.f32 0.5, %v4453_v1 }
 0x30b   : > { %v4408_v11 = vpop.f32.mrf.mxu1  ;;  %v4514_v3 = vmul.f32 %v4498_v0, %v4466_v19 }
 0x30c   : > { %v4467_v9 = vmul.f32 0.5, %v4451_v61  ;;  %v4454_v4 = vadd.f32 %v9341_v51, %v4417_v25  ;;  %v4409_v2 = vadd.f32 %v4408_v11, %v4263_v28  ;;  %v4512_v57 = vmul.f32 %v4496_v34, %v4464_v39  ;;  %v6979_v61 = vld [vmem:[%s7378_s26] sm:$0xff]   ;;  %v6980_v34 = vld [vmem:[%s7378_s26 + $0x8] sm:$0xff]   ;;  %v6982_v11 = vld [vmem:[%s7378_s26 + $0x18] sm:$0xff]  }
 0x30d   : > { %v4526_v27 = vpack.c.bf16 %v4514_v3, %v4513_v54  ;;  %v6983_v3 = vld [vmem:[%s7378_s26 + $0x20] sm:$0xff]   ;;  %v6989_v54 = vld [vmem:[%s9719_s12 + $0x28] sm:$0xff]  }
 0x30e   : > { %7091 = vtanh.f32 %v4467_v9  ;;  %v4470_v23 = vmul.f32 0.5, %v4454_v4  ;;  %v4452_v24 = vadd.f32 %v9341_v51, %v4409_v2  ;;  %v4525_v38 = vpack.c.bf16 %v4512_v57, %v4511_v53  ;;  %v6985_v4 = vld [vmem:[%s7378_s26 + $0x30] sm:$0xff]   ;;  %v6986_v2 = vld [vmem:[%s7378_s26 + $0x38] sm:$0xff]  }
 0x30f   : > { %7093 = vtanh.f32 %v4469_v21  ;;  %v6987_v53 = vld [vmem:[%s9719_s12 + $0x38] sm:$0xff]   ;;  %v6988_v57 = vld [vmem:[%s9719_s12 + $0x30] sm:$0xff]  }
 0x310   : > { %7095 = vtanh.f32 %v4470_v23  ;;  %v4468_v14 = vmul.f32 0.5, %v4452_v24  ;;  %6655 = vmatprep.mubr.bf16.mxu0 %v4525_v38  ;;  %6703 = vmatprep.subr.bf16.mxu1 %v6987_v53  ;;  %v6991_v24 = vld [vmem:[%s9719_s12 + $0x18] sm:$0xff]   ;;  %v6992_v38 = vld [vmem:[%s9719_s12 + $0x10] sm:$0xff]  }
 0x311   : > { %6656 = vmatmul.mubr.bf16.gmra.mxu0 %v4526_v27  ;;  %6704 = vmatpush3.bf16.msra.mxu1 %v6987_v53  ;;  %v6994_v27 = vld [vmem:[%s9719_s12] sm:$0xff]  }
 0x312   : > { %7097 = vtanh.f32 %v4468_v14  ;;  %6705 = vmatprep.subr.bf16.mxu1 %v6988_v57 }
 0x315   : > { %6706 = vmatpush3.bf16.msra.mxu1 %v6988_v57  ;;  %v9472_v57 = vld [vmem:[%s9716_s9] ss:$0 sm:$0xff] }
 0x316   : > { %6707 = vmatprep.subr.bf16.mxu1 %v6989_v54 }
 0x318   : > { %v6609_v60 = vpop.f32.mrf.mxu0 }
 0x319   : > { %6708 = vmatpush3.bf16.msra.mxu1 %v6989_v54 }
 0x31a   : > { %v4276_v56 = vpop.f32.mrf.mxu0 }
 0x31b   : > { %v6633_v29 = vpop.f32.mrf.mxu1  ;;  %v7092_v22 = vpop.eup %7091 }
 0x31c   : > { %v4430_v5 = vadd.f32 %v6633_v29, %v6609_v60  ;;  %v7094_v33 = vpop.eup %7093  ;;  %v6610_v36 = vpop.f32.mrf.mxu0  ;;  %v4499_v12 = vadd.f32 1.0, %v7092_v22  ;;  %v6995_v60 = vld [vmem:[%s9721_s14 + $0x38] sm:$0xff]   ;;  %v6996_v29 = vld [vmem:[%s9721_s14 + $0x30] sm:$0xff]   ;;  %v6998_v22 = vld [vmem:[%s9721_s14 + $0x20] sm:$0xff]  }
 0x31d   : > { %v4421_v49 = vpop.f32.mrf.mxu1  ;;  %v7096_v15 = vpop.eup %7095  ;;  %v4501_v45 = vadd.f32 1.0, %v7094_v33  ;;  %6735 = vmatprep.subr.bf16.mxu0 %v6995_v60 }
 0x31e   : > { %v4457_v50 = vadd.f32 %v9341_v51, %v4430_v5  ;;  %v4422_v62 = vadd.f32 %v4421_v49, %v4276_v56  ;;  %v4502_v16 = vadd.f32 1.0, %v7096_v15  ;;  %v4279_v35 = vpop.f32.mrf.mxu0  ;;  %v4515_v48 = vmul.f32 %v4499_v12, %v4467_v9  ;;  %v6984_v9 = vld [vmem:[%s7378_s26 + $0x28] sm:$0xff]   ;;  %v6999_v5 = vld [vmem:[%s9721_s14 + $0x18] sm:$0xff]  }
 0x31f   : > { %v6634_v17 = vpop.f32.mrf.mxu1  ;;  %v7098_v42 = vpop.eup %7097  ;;  %v4517_v20 = vmul.f32 %v4501_v45, %v4469_v21  ;;  %v6981_v21 = vld [vmem:[%s7378_s26 + $0x10] sm:$0xff]   ;;  %v6997_v56 = vld [vmem:[%s9721_s14 + $0x28] sm:$0xff]  }
 0x320   : > { %v4473_v8 = vmul.f32 0.5, %v4457_v50  ;;  %v4455_v13 = vadd.f32 %v9341_v51, %v4422_v62  ;;  %v4433_v31 = vadd.f32 %v6634_v17, %v6610_v36  ;;  %v4500_v32 = vadd.f32 1.0, %v7098_v42 }
 0x321   : > { %v4424_v44 = vpop.f32.mrf.mxu1  ;;  %v4518_v46 = vmul.f32 %v4502_v16, %v4470_v23  ;;  %v6990_v23 = vld [vmem:[%s9719_s12 + $0x20] sm:$0xff]  }
 0x322   : > { %v4471_v19 = vmul.f32 0.5, %v4455_v13  ;;  %v4458_v6 = vadd.f32 %v9341_v51, %v4433_v31  ;;  %v4425_v30 = vadd.f32 %v4424_v44, %v4279_v35  ;;  %v4516_v39 = vmul.f32 %v4500_v32, %v4468_v14  ;;  %6709 = vmatprep.subr.bf16.mxu1 %v6990_v23  ;;  %v6993_v14 = vld [vmem:[%s9719_s12 + $0x8] sm:$0xff]  }
 0x323   : > { %7099 = vtanh.f32 %v4473_v8  ;;  %v4528_v58 = vpack.c.bf16 %v4518_v46, %v4517_v20  ;;  %6710 = vmatpush3.bf16.msra.mxu1 %v6990_v23  ;;  %v6671_v33 = vpop.f32.mrf.mxu1 }
 0x324   : > { %v4474_v63 = vmul.f32 0.5, %v4458_v6  ;;  %v4456_v59 = vadd.f32 %v9341_v51, %v4425_v30  ;;  %7101 = vtanh.f32 %v4471_v19  ;;  %v4527_v40 = vpack.c.bf16 %v4516_v39, %v4515_v48  ;;  %6711 = vmatprep.subr.bf16.mxu1 %v6991_v24 }
 0x325   : > { %v4869_v36 = vpop.f32.mrf.mxu1 }
 0x326   : > { %7103 = vtanh.f32 %v4474_v63  ;;  %v4472_v41 = vmul.f32 0.5, %v4456_v59  ;;  %6659 = vmatprep.mubr.bf16.mxu0 %v4527_v40  ;;  %v4932_v30 = vmul.f32 0.5, %v4869_v36 }
 0x327   : > { %6660 = vmatmul.mubr.bf16.gmra.mxu0 %v4528_v58  ;;  %6712 = vmatpush3.bf16.msra.mxu1 %v6991_v24  ;;  %v6672_v50 = vpop.f32.mrf.mxu1 }
 0x328   : > { %7105 = vtanh.f32 %v4472_v41  ;;  %6713 = vmatprep.subr.bf16.mxu1 %v6992_v38  ;;  %v4935_v48 = vmul.f32 0.5, %v6672_v50 }
 0x329   : > { %v4872_v12 = vpop.f32.mrf.mxu1 }
 0x32a   : > { %v4933_v20 = vmul.f32 0.5, %v4872_v12 }
 0x32b   : > { %6714 = vmatpush3.bf16.msra.mxu1 %v6992_v38  ;;  %v6675_v17 = vpop.f32.mrf.mxu1 }
 0x32c   : > { %6715 = vmatprep.subr.bf16.mxu1 %v6993_v14 }
 0x32d   : > { %v4885_v42 = vpop.f32.mrf.mxu1 }
 0x32e   : > { %v9436_v40 = vmul.f32 0.5, %v4885_v42 }
 0x32f   : > { %6716 = vmatpush3.bf16.msra.mxu1 %v6993_v14 }
 0x330   : > { %v7100_v26 = vpop.eup %7099  ;;  %6717 = vmatprep.subr.bf16.mxu1 %v6994_v27 }
 0x331   : > { %v7102_v43 = vpop.eup %7101  ;;  %v4505_v7 = vadd.f32 1.0, %v7100_v26 }
 0x332   : > { %v4503_v18 = vadd.f32 1.0, %v7102_v43 }
 0x333   : > { %v7104_v55 = vpop.eup %7103  ;;  %v4521_v37 = vmul.f32 %v4505_v7, %v4473_v8  ;;  %6718 = vmatpush3.bf16.msra.mxu1 %v6994_v27  ;;  %v6676_v8 = vpop.f32.mrf.mxu1 }
 0x334   : > { %v4506_v47 = vadd.f32 1.0, %v7104_v55  ;;  %v4519_v28 = vmul.f32 %v4503_v18, %v4471_v19  ;;  %v4934_v19 = vmul.f32 0.5, %v6671_v33  ;;  %v9438_v58 = vmul.f32 0.5, %v6676_v8 }
 0x335   : > { %v7106_v1 = vpop.eup %7105  ;;  %v4888_v31 = vpop.f32.mrf.mxu1  ;;  %v9444_v55 = vmul.f32 0.5, %v6675_v17 }
 0x336   : > { %v4504_v51 = vadd.f32 1.0, %v7106_v1  ;;  %v4522_v0 = vmul.f32 %v4506_v47, %v4474_v63  ;;  %7107 = vtanh.f32 %v4934_v19  ;;  %v9442_v43 = vmul.f32 0.5, %v4888_v31 }
 0x337   : > { %v6679_v44 = vpop.f32.mrf.mxu1  ;;  %7109 = vtanh.f32 %v4932_v30 }
 0x338   : > { %v4520_v52 = vmul.f32 %v4504_v51, %v4472_v41  ;;  %v4530_v25 = vpack.c.bf16 %v4522_v0, %v4521_v37  ;;  %7111 = vtanh.f32 %v4935_v48 }
 0x339   : > { %v4901_v6 = vpop.f32.mrf.mxu1  ;;  %7113 = vtanh.f32 %v4933_v20 }
 0x33a   : > { %v4529_v10 = vpack.c.bf16 %v4520_v52, %v4519_v28  ;;  %7115 = vtanh.f32 %v9436_v40  ;;  %v9454_v0 = vmul.f32 0.5, %v4901_v6 }
 0x33b   : > { %v6680_v63 = vpop.f32.mrf.mxu1  ;;  %7117 = vtanh.f32 %v9438_v58 }
 0x33c   : > { %6663 = vmatprep.mubr.bf16.mxu0 %v4529_v10  ;;  %7119 = vtanh.f32 %v9442_v43  ;;  %v9456_v28 = vmul.f32 0.5, %v6680_v63 }
 0x33d   : > { %6664 = vmatmul.mubr.bf16.gmra.mxu0 %v4530_v25  ;;  %v4904_v41 = vpop.f32.mrf.mxu1  ;;  %7121 = vtanh.f32 %v9444_v55 }
 0x33e   : > { %6687 = vmatprep.mubr.msk.bf16.mxu0 %vm4806_vm14, %v6979_v61  ;;  %v9460_v61 = vmul.f32 0.5, %v4904_v41  ;;  %7123 = vtanh.f32 %v9454_v0 }
 0x33f   : > { %v6683_v47 = vpop.f32.mrf.mxu1  ;;  %7125 = vtanh.f32 %v9456_v28 }
 0x340   : > { %7127 = vtanh.f32 %v9460_v61  ;;  %v9495_v31 = vmul.f32 0.5, %v6683_v47 }
 0x341   : > { %v4917_v18 = vpop.f32.mrf.mxu1 }
 0x342   : > { %v9476_v27 = vmul.f32 0.5, %v4917_v18 }
 0x343   : > { %v7108_v51 = vpop.eup %7107 }
 0x344   : > { %v7110_v52 = vpop.eup %7109 }
 0x345   : > { %6688 = vmatmul.mubr.msk.bf16.vlgmr.msra.gmra.mxu0 %vm4806_vm14, %v6980_v34  ;;  %v7112_v10 = vpop.eup %7111  ;;  %v9462_v34 = vmul.f32 0.5, %v6679_v44 }
 0x346   : > { %6691 = vmatprep.mubr.msk.bf16.mxu0 %vm4806_vm14, %v6981_v21  ;;  %6736 = vmatpush3.bf16.msra.mxu0 %v6995_v60  ;;  %v7114_v25 = vpop.eup %7113  ;;  %v6684_v21 = vpop.f32.mrf.mxu1 }
 0x347   : > { %6737 = vmatprep.subr.bf16.mxu0 %v6996_v29  ;;  %v4965_v53 = vadd.f32 1.0, %v7114_v25  ;;  %7129 = vtanh.f32 %v9462_v34  ;;  %v7116_v38 = vpop.eup %7115  ;;  %v9487_v33 = vmul.f32 0.5, %v6684_v21 }
 0x348   : > { %v4920_v54 = vpop.f32.mrf.mxu1  ;;  %v4968_v8 = vadd.f32 1.0, %v7116_v38  ;;  %7131 = vtanh.f32 %v9476_v27 }
 0x349   : > { %v4981_v12 = vmul.f32 %v4965_v53, %v4933_v20  ;;  %v9491_v17 = vmul.f32 0.5, %v4920_v54  ;;  %7133 = vtanh.f32 %v9487_v33 }
 0x34a   : > { %6738 = vmatpush3.bf16.msra.mxu0 %v6996_v29 }
 0x34b   : > { %6739 = vmatprep.subr.bf16.mxu0 %v6997_v56  ;;  %7135 = vtanh.f32 %v9491_v17 }
 0x34c   : > { %7137 = vtanh.f32 %v9495_v31 }
 0x34d   : > { %6692 = vmatmul.mubr.msk.bf16.gmra.mxu0 %vm4806_vm14, %v6982_v11 }
 0x34e   : > { %6695 = vmatprep.mubr.msk.bf16.mxu0 %vm4806_vm14, %v6983_v3  ;;  %6740 = vmatpush3.bf16.msra.mxu0 %v6997_v56  ;;  %v4966_v3 = vadd.f32 1.0, %v7108_v51  ;;  %v9485_v56 = vld [vmem:[%s9718_s11] ss:$0 sm:$0xff] }
 0x34f   : > { %6741 = vmatprep.subr.bf16.mxu0 %v6998_v22 }
 0x350   : > { %v4982_v14 = vmul.f32 %v4966_v3, %v4934_v19 }
 0x352   : > { %6742 = vmatpush3.bf16.msra.mxu0 %v6998_v22 }
 0x353   : > { %6743 = vmatprep.subr.bf16.mxu0 %v6999_v5 }
 0x355   : > { %6696 = vmatmul.mubr.msk.bf16.gmra.mxu0 %vm4806_vm14, %v6984_v9  ;;  %v4964_v9 = vadd.f32 1.0, %v7110_v52 }
 0x356   : > { %6699 = vmatprep.mubr.msk.bf16.mxu0 %vm4806_vm14, %v6985_v4  ;;  %6744 = vmatpush3.bf16.msra.mxu0 %v6999_v5  ;;  %v4967_v4 = vadd.f32 1.0, %v7112_v10 }
 0x357   : > { %v4980_v22 = vmul.f32 %v4964_v9, %v4932_v30 }
 0x358   : > { %v4983_v5 = vmul.f32 %v4967_v4, %v4935_v48 }
 0x35d   : > { %6700 = vmatmul.mubr.msk.bf16.gmra.mxu0 %vm4806_vm14, %v6986_v2 }
 0x3bc   : > { %v9416_v49 = vpop.f32.mrf.mxu0 }
 0x3bd   : > { %v4645_v36 = vadd.f32 %v9416_v49, %v9472_v57 }
 0x3be   : > { %v9418_v15 = vpop.f32.mrf.mxu0 }
 0x3bf   : > { %v4637_v60 = vadd.f32 %v9472_v57, %v9418_v15  ;;  %v4998_v41 = vadd.f32 %v4982_v14, %v4645_v36 }
 0x3c0   : > { %v6654_v62 = vpop.f32.mrf.mxu0 }
 0x3c1   : > { %v4648_v23 = vadd.f32 %v6654_v62, %v9472_v57  ;;  %v7118_v62 = vpop.eup %7117  ;;  %v4996_v49 = vadd.f32 %v4980_v22, %v4637_v60 }
 0x3c2   : > { %v9420_v16 = vpop.f32.mrf.mxu0  ;;  %v7120_v42 = vpop.eup %7119  ;;  %v4971_v63 = vadd.f32 1.0, %v7118_v62 }
 0x3c3   : > { %v4640_v29 = vadd.f32 %v9472_v57, %v9420_v16  ;;  %v4999_v44 = vadd.f32 %v4983_v5, %v4648_v23  ;;  %v7122_v30 = vpop.eup %7121  ;;  %v4969_v52 = vadd.f32 1.0, %v7120_v42 }
 0x3c4   : > { %v4970_v25 = vadd.f32 1.0, %v7122_v30  ;;  %v7124_v54 = vpop.eup %7123  ;;  %v4987_v23 = vmul.f32 %v4971_v63, %v9438_v58 }
 0x3c5   : > { %v4997_v48 = vadd.f32 %v4981_v12, %v4640_v29  ;;  %v7126_v60 = vpop.eup %7125  ;;  %v4985_v29 = vmul.f32 %v4969_v52, %v9442_v43 }
 0x3c6   : > { %v4986_v5 = vmul.f32 %v4970_v25, %v9444_v55 }
 0x3d1   : > { %v9422_v35 = vpop.f32.mrf.mxu0 }
 0x3d3   : > { %v9424_v45 = vpop.f32.mrf.mxu0 }
 0x3d4   : > { %v4653_v4 = vadd.f32 %v9472_v57, %v9424_v45 }
 0x3d5   : > { %v9426_v13 = vpop.f32.mrf.mxu0 }
 0x3d6   : > { %v4664_v21 = vadd.f32 %v9426_v13, %v9472_v57  ;;  %v4984_v13 = vmul.f32 %v4968_v8, %v9436_v40  ;;  %v4972_v8 = vadd.f32 1.0, %v7124_v54 }
 0x3d7   : > { %v9428_v32 = vpop.f32.mrf.mxu0 }
 0x3d8   : > { %v5003_v36 = vadd.f32 %v4987_v23, %v4664_v21  ;;  %v5000_v62 = vadd.f32 %v4984_v13, %v4653_v4 }
 0x3e7   : > { %v9430_v46 = vpop.f32.mrf.mxu0 }
 0x3e8   : > { %v4677_v52 = vadd.f32 %v9430_v46, %v9472_v57 }
 0x3e9   : > { %v9432_v39 = vpop.f32.mrf.mxu0 }
 0x3eb   : > { %v9434_v59 = vpop.f32.mrf.mxu0 }
 0x3ec   : > { %v4680_v55 = vadd.f32 %v9434_v59, %v9472_v57  ;;  %v4988_v59 = vmul.f32 %v4972_v8, %v9454_v0 }
 0x3ed   : > { %v9440_v26 = vpop.f32.mrf.mxu0 }
 0x3ee   : > { %v4672_v63 = vadd.f32 %v9472_v57, %v9440_v26 }
 0x3fd   : > { %v9448_v1 = vpop.f32.mrf.mxu0 }
 0x3ff   : > { %v9452_v7 = vpop.f32.mrf.mxu0 }
 0x401   : > { %v9458_v37 = vpop.f32.mrf.mxu0 }
 0x403   : > { %v9464_v11 = vpop.f32.mrf.mxu0 }
 0x405   : > { %v6689_v2 = vpop.f32.mrf.mxu0 }
 0x406   : > { %v5146_v19 = vadd.f32 %v6689_v2, %v9485_v56  ;;  %v4656_v2 = vadd.f32 %v9472_v57, %v9428_v32  ;;  %v7128_v32 = vpop.eup %7127 }
 0x407   : > { %v5137_v24 = vpop.f32.mrf.mxu0 }
 0x408   : > { %v5138_v15 = vadd.f32 %v9485_v56, %v5137_v24  ;;  %v5202_v3 = vadd.f32 %v5146_v19, %v4998_v41  ;;  %v4661_v24 = vadd.f32 %v9422_v35, %v9472_v57  ;;  %v7130_v35 = vpop.eup %7129  ;;  %v5001_v12 = vadd.f32 %v4985_v29, %v4656_v2 }
 0x409   : > { %v6690_v50 = vpop.f32.mrf.mxu0  ;;  %v4974_v30 = vadd.f32 1.0, %v7130_v35  ;;  %v4693_v35 = vadd.f32 %v9448_v1, %v9472_v57 }
 0x40a   : > { %v5149_v16 = vadd.f32 %v6690_v50, %v9485_v56  ;;  %v5200_v47 = vadd.f32 %v5138_v15, %v4996_v49  ;;  %v4975_v15 = vadd.f32 1.0, %v7126_v60  ;;  %v5002_v43 = vadd.f32 %v4986_v5, %v4661_v24 }
 0x40b   : > { %v5140_v6 = vpop.f32.mrf.mxu0  ;;  %v4685_v5 = vadd.f32 %v9472_v57, %v9452_v7 }
 0x40c   : > { %v5141_v20 = vadd.f32 %v9485_v56, %v5140_v6  ;;  %v5203_v18 = vadd.f32 %v5149_v16, %v4999_v44  ;;  %v4973_v44 = vadd.f32 1.0, %v7128_v32 }
 0x40d   : > { %v6693_v51 = vpop.f32.mrf.mxu0 }
 0x40e   : > { %v5201_v10 = vadd.f32 %v5141_v20, %v4997_v48  ;;  %v5217_v38 = vpack.c.bf16 %v5203_v18, %v5202_v3  ;;  %v5162_v58 = vadd.f32 %v6693_v51, %v9485_v56  ;;  %v4669_v20 = vadd.f32 %v9472_v57, %v9432_v39  ;;  %v7132_v18 = vpop.eup %7131 }
 0x40f   : > { %v5153_v9 = vpop.f32.mrf.mxu0  ;;  %v4991_v51 = vmul.f32 %v4975_v15, %v9456_v28  ;;  %v7134_v25 = vpop.eup %7133  ;;  %v4989_v21 = vmul.f32 %v4973_v44, %v9460_v61 }
 0x410   : > { %v5216_v53 = vpack.c.bf16 %v5201_v10, %v5200_v47  ;;  %v5154_v22 = vadd.f32 %v9485_v56, %v5153_v9  ;;  %v5206_v49 = vadd.f32 %v5162_v58, %v5002_v43  ;;  %v7136_v26 = vpop.eup %7135  ;;  %v4990_v9 = vmul.f32 %v4974_v30, %v9462_v34 }
 0x411   : > { %v6694_v14 = vpop.f32.mrf.mxu0  ;;  %v5007_v4 = vadd.f32 %v4991_v51, %v4680_v55  ;;  %v7138_v46 = vpop.eup %7137  ;;  %v5005_v54 = vadd.f32 %v4989_v21, %v4672_v63  ;;  %v4979_v23 = vadd.f32 1.0, %v7134_v25  ;;  %v4977_v60 = vadd.f32 1.0, %v7136_v26  ;;  %v7001_v55 = vld [vmem:[%s9721_s14 + $0x8] sm:$0xff]   ;;  %v7006_v63 = vld [vmem:[%s9723_s16 + $0x20] sm:$0xff]  }
 0x412   : > { %v5165_v45 = vadd.f32 %v6694_v14, %v9485_v56  ;;  %6719 = vmatprep.mubr.bf16.mxu1 %v5216_v53  ;;  %v5204_v19 = vadd.f32 %v5154_v22, %v5000_v62  ;;  %v5004_v53 = vadd.f32 %v4988_v59, %v4669_v20  ;;  %v5006_v61 = vadd.f32 %v4990_v9, %v4677_v52  ;;  %v7005_v20 = vld [vmem:[%s9723_s16 + $0x28] sm:$0xff]   ;;  %v6355_v52 = vld [vmem:[%s9720_s13] ss:$0 sm:$0xff] }
 0x413   : > { %v5156_v50 = vpop.f32.mrf.mxu0  ;;  %6720 = vmatmul.mubr.bf16.vlgmr.msra.gmra.mxu1 %v5217_v38  ;;  %v4976_v14 = vadd.f32 1.0, %v7132_v18  ;;  %v4978_v22 = vadd.f32 1.0, %v7138_v46  ;;  %v4696_v34 = vadd.f32 %v9458_v37, %v9472_v57  ;;  %v4993_v37 = vmul.f32 %v4977_v60, %v9491_v17 }
 0x414   : > { %v5157_v40 = vadd.f32 %v9485_v56, %v5156_v50  ;;  %v5207_v16 = vadd.f32 %v5165_v45, %v5003_v36  ;;  %v4688_v36 = vadd.f32 %v9472_v57, %v9464_v11  ;;  %v4995_v50 = vmul.f32 %v4979_v23, %v9487_v33 }
 0x415   : > { %v6697_v42 = vpop.f32.mrf.mxu0  ;;  %v4994_v7 = vmul.f32 %v4978_v22, %v9495_v31  ;;  %v7000_v31 = vld [vmem:[%s9721_s14 + $0x10] sm:$0xff]  }
 0x416   : > { %v5205_v6 = vadd.f32 %v5157_v40, %v5001_v12  ;;  %v5219_v10 = vpack.c.bf16 %v5207_v16, %v5206_v49  ;;  %v5178_v28 = vadd.f32 %v6697_v42, %v9485_v56  ;;  %v4992_v40 = vmul.f32 %v4976_v14, %v9476_v27  ;;  %6745 = vmatprep.subr.bf16.mxu0 %v7000_v31  ;;  %v7003_v49 = vld [vmem:[%s9723_s16 + $0x38] sm:$0xff]  }
 0x417   : > { %v5169_v48 = vpop.f32.mrf.mxu0  ;;  %v5011_v11 = vadd.f32 %v4995_v50, %v4696_v34  ;;  %v5009_v1 = vadd.f32 %v4993_v37, %v4688_v36  ;;  %v5010_v8 = vadd.f32 %v4994_v7, %v4693_v35  ;;  %6746 = vmatpush3.bf16.msra.mxu0 %v7000_v31  ;;  %6767 = vmatprep.subr.bf16.mxu1 %v7003_v49 }
 0x418   : > { %v5218_v41 = vpack.c.bf16 %v5205_v6, %v5204_v19  ;;  %v5170_v3 = vadd.f32 %v9485_v56, %v5169_v48  ;;  %v5210_v45 = vadd.f32 %v5178_v28, %v5006_v61  ;;  %v5008_v42 = vadd.f32 %v4992_v40, %v4685_v5  ;;  %6747 = vmatprep.subr.bf16.mxu0 %v7001_v55  ;;  %v7004_v48 = vld [vmem:[%s9723_s16 + $0x30] sm:$0xff]  }
 0x419   : > { %v6698_v47 = vpop.f32.mrf.mxu0  ;;  %6768 = vmatpush3.bf16.msra.mxu1 %v7003_v49  ;;  %v7010_v49 = vld [vmem:[%s9723_s16] sm:$0xff]  }
 0x41a   : > { %v5181_v39 = vadd.f32 %v6698_v47, %v9485_v56  ;;  %6723 = vmatprep.mubr.bf16.mxu1 %v5218_v41  ;;  %v5208_v13 = vadd.f32 %v5170_v3, %v5004_v53  ;;  %6769 = vmatprep.subr.bf16.mxu1 %v7004_v48  ;;  %v7007_v41 = vld [vmem:[%s9723_s16 + $0x18] sm:$0xff]  }
 0x41b   : > { %v5172_v2 = vpop.f32.mrf.mxu0  ;;  %6724 = vmatmul.mubr.bf16.gmra.mxu1 %v5219_v10  ;;  %6748 = vmatpush3.bf16.msra.mxu0 %v7001_v55  ;;  %v7008_v55 = vld [vmem:[%s9723_s16 + $0x10] sm:$0xff]  }
 0x41c   : > { %v5173_v0 = vadd.f32 %v9485_v56, %v5172_v2  ;;  %v5211_v24 = vadd.f32 %v5181_v39, %v5007_v4 }
 0x41d   : > { %v6701_v38 = vpop.f32.mrf.mxu0  ;;  %6770 = vmatpush3.bf16.msra.mxu1 %v7004_v48 }
 0x41e   : > { %v5209_v29 = vadd.f32 %v5173_v0, %v5005_v54  ;;  %v5221_v12 = vpack.c.bf16 %v5211_v24, %v5210_v45  ;;  %v5194_v16 = vadd.f32 %v6701_v38, %v9485_v56  ;;  %6771 = vmatprep.subr.bf16.mxu1 %v7005_v20 }
 0x41f   : > { %v5185_v32 = vpop.f32.mrf.mxu0 }
 0x420   : > { %v5220_v58 = vpack.c.bf16 %v5209_v29, %v5208_v13  ;;  %v5186_v15 = vadd.f32 %v9485_v56, %v5185_v32  ;;  %v5214_v19 = vadd.f32 %v5194_v16, %v5010_v8 }
 0x421   : > { %v6702_v62 = vpop.f32.mrf.mxu0  ;;  %6772 = vmatpush3.bf16.msra.mxu1 %v7005_v20 }
 0x422   : > { %v5197_v43 = vadd.f32 %v6702_v62, %v9485_v56  ;;  %6727 = vmatprep.mubr.bf16.mxu1 %v5220_v58  ;;  %v5212_v44 = vadd.f32 %v5186_v15, %v5008_v42  ;;  %6773 = vmatprep.subr.bf16.mxu1 %v7006_v63 }
 0x423   : > { %v5188_v33 = vpop.f32.mrf.mxu0  ;;  %6728 = vmatmul.mubr.bf16.gmra.mxu1 %v5221_v12 }
 0x424   : > { %v5189_v57 = vadd.f32 %v9485_v56, %v5188_v33  ;;  %v5215_v27 = vadd.f32 %v5197_v43, %v5011_v11  ;;  %v7002_v56 = vld [vmem:[%s9721_s14] sm:$0xff]  }
 0x425   : > { %6749 = vmatprep.subr.bf16.mxu0 %v7002_v56  ;;  %6774 = vmatpush3.bf16.msra.mxu1 %v7006_v63  ;;  %v6364_v63 = vld [vmem:[%s9722_s15] ss:$0 sm:$0xff] }
 0x426   : > { %v5213_v17 = vadd.f32 %v5189_v57, %v5009_v1  ;;  %v5223_v30 = vpack.c.bf16 %v5215_v27, %v5214_v19  ;;  %6750 = vmatpush3.bf16.msra.mxu0 %v7002_v56  ;;  %6775 = vmatprep.subr.bf16.mxu1 %v7007_v41  ;;  %v7009_v56 = vld [vmem:[%s9723_s16 + $0x8] sm:$0xff]  }
 0x428   : > { %v5222_v6 = vpack.c.bf16 %v5213_v17, %v5212_v44 }
 0x429   : > { %6776 = vmatpush3.bf16.msra.mxu1 %v7007_v41 }
 0x42a   : > { %6731 = vmatprep.mubr.bf16.mxu1 %v5222_v6  ;;  %6777 = vmatprep.subr.bf16.mxu1 %v7008_v55 }
 0x42b   : > { %6732 = vmatmul.mubr.bf16.gmra.mxu1 %v5223_v30 }
 0x42d   : > { %6778 = vmatpush3.bf16.msra.mxu1 %v7008_v55 }
 0x42e   : > { %6779 = vmatprep.subr.bf16.mxu1 %v7009_v56 }
 0x431   : > { %6780 = vmatpush3.bf16.msra.mxu1 %v7009_v56 }
 0x432   : > { %6781 = vmatprep.subr.bf16.mxu1 %v7010_v49 }
 0x435   : > { %6782 = vmatpush3.bf16.msra.mxu1 %v7010_v49 }
 0x4d3   : > { %v6721_v18 = vpop.f32.mrf.mxu1 }
 0x4d4   : > { %v5338_v59 = vadd.f32 %v6721_v18, %v6355_v52 }
 0x4d5   : > { %v5329_v51 = vpop.f32.mrf.mxu1 }
 0x4d6   : > { %v5330_v10 = vadd.f32 %v6355_v52, %v5329_v51  ;;  %v5394_v28 = vmax.f32 %v5338_v59, 0.0 }
 0x4d7   : > { %v6722_v47 = vpop.f32.mrf.mxu1 }
 0x4d8   : > { %v5341_v25 = vadd.f32 %v6722_v47, %v6355_v52  ;;  %v5392_v9 = vmax.f32 %v5330_v10, 0.0 }
 0x4d9   : > { %v5332_v21 = vpop.f32.mrf.mxu1 }
 0x4da   : > { %v5333_v3 = vadd.f32 %v6355_v52, %v5332_v21  ;;  %v5395_v39 = vmax.f32 %v5341_v25, 0.0 }
 0x4db   : > { %v6725_v26 = vpop.f32.mrf.mxu1 }
 0x4dc   : > { %v5393_v4 = vmax.f32 %v5333_v3, 0.0  ;;  %v5409_v53 = vpack.c.bf16 %v5395_v39, %v5394_v28  ;;  %v5354_v61 = vadd.f32 %v6725_v26, %v6355_v52 }
 0x4dd   : > { %v5345_v2 = vpop.f32.mrf.mxu1 }
 0x4de   : > { %v5408_v46 = vpack.c.bf16 %v5393_v4, %v5392_v9  ;;  %v5346_v0 = vadd.f32 %v6355_v52, %v5345_v2  ;;  %v5398_v22 = vmax.f32 %v5354_v61, 0.0 }
 0x4df   : > { %v6726_v54 = vpop.f32.mrf.mxu1 }
 0x4e0   : > { %v5357_v23 = vadd.f32 %v6726_v54, %v6355_v52  ;;  %6751 = vmatprep.mubr.bf16.mxu0 %v5408_v46  ;;  %v5396_v13 = vmax.f32 %v5346_v0, 0.0 }
 0x4e1   : > { %v5348_v24 = vpop.f32.mrf.mxu1  ;;  %6752 = vmatmul.mubr.bf16.vlgmr.msra.gmra.mxu0 %v5409_v53 }
 0x4e2   : > { %v5349_v38 = vadd.f32 %v6355_v52, %v5348_v24  ;;  %v5399_v14 = vmax.f32 %v5357_v23, 0.0 }
 0x4e3   : > { %v6729_v60 = vpop.f32.mrf.mxu1 }
 0x4e4   : > { %v5397_v29 = vmax.f32 %v5349_v38, 0.0  ;;  %v5411_v32 = vpack.c.bf16 %v5399_v14, %v5398_v22  ;;  %v5370_v50 = vadd.f32 %v6729_v60, %v6355_v52 }
 0x4e5   : > { %v5361_v34 = vpop.f32.mrf.mxu1 }
 0x4e6   : > { %v5410_v45 = vpack.c.bf16 %v5397_v29, %v5396_v13  ;;  %v5362_v36 = vadd.f32 %v6355_v52, %v5361_v34  ;;  %v5402_v43 = vmax.f32 %v5370_v50, 0.0 }
 0x4e7   : > { %v6730_v5 = vpop.f32.mrf.mxu1 }
 0x4e8   : > { %v5373_v58 = vadd.f32 %v6730_v5, %v6355_v52  ;;  %6755 = vmatprep.mubr.bf16.mxu0 %v5410_v45  ;;  %v5400_v37 = vmax.f32 %v5362_v36, 0.0 }
 0x4e9   : > { %v5364_v35 = vpop.f32.mrf.mxu1  ;;  %6756 = vmatmul.mubr.bf16.gmra.mxu0 %v5411_v32 }
 0x4ea   : > { %v5365_v62 = vadd.f32 %v6355_v52, %v5364_v35  ;;  %v5403_v12 = vmax.f32 %v5373_v58, 0.0 }
 0x4eb   : > { %v6733_v40 = vpop.f32.mrf.mxu1 }
 0x4ec   : > { %v5401_v15 = vmax.f32 %v5365_v62, 0.0  ;;  %v5413_v16 = vpack.c.bf16 %v5403_v12, %v5402_v43  ;;  %v5386_v57 = vadd.f32 %v6733_v40, %v6355_v52 }
 0x4ed   : > { %v5377_v7 = vpop.f32.mrf.mxu1 }
 0x4ee   : > { %v5412_v11 = vpack.c.bf16 %v5401_v15, %v5400_v37  ;;  %v5378_v42 = vadd.f32 %v6355_v52, %v5377_v7  ;;  %v5406_v6 = vmax.f32 %v5386_v57, 0.0 }
 0x4ef   : > { %v6734_v33 = vpop.f32.mrf.mxu1 }
 0x4f0   : > { %v5389_v1 = vadd.f32 %v6734_v33, %v6355_v52  ;;  %6759 = vmatprep.mubr.bf16.mxu0 %v5412_v11  ;;  %v5404_v17 = vmax.f32 %v5378_v42, 0.0 }
 0x4f1   : > { %v5380_v8 = vpop.f32.mrf.mxu1  ;;  %6760 = vmatmul.mubr.bf16.gmra.mxu0 %v5413_v16 }
 0x4f2   : > { %v5381_v27 = vadd.f32 %v6355_v52, %v5380_v8  ;;  %v5407_v44 = vmax.f32 %v5389_v1, 0.0 }
 0x4f4   : > { %v5405_v19 = vmax.f32 %v5381_v27, 0.0  ;;  %v5415_v31 = vpack.c.bf16 %v5407_v44, %v5406_v6  ;;  %v6373_v6 = vld [vmem:[%s9724_s17] ss:$0 sm:$0xff] }
 0x4f6   : > { %v5414_v30 = vpack.c.bf16 %v5405_v19, %v5404_v17 }
 0x4f8   : > { %6763 = vmatprep.mubr.bf16.mxu0 %v5414_v30 }
 0x4f9   : > { %6764 = vmatmul.mubr.bf16.gmra.mxu0 %v5415_v31 }
 0x5a1   : > { %v6753_v48 = vpop.f32.mrf.mxu0 }
 0x5a2   : > { %v5530_v52 = vadd.f32 %v6753_v48, %v6364_v63 }
 0x5a3   : > { %v5521_v20 = vpop.f32.mrf.mxu0 }
 0x5a4   : > { %v5522_v18 = vadd.f32 %v6364_v63, %v5521_v20  ;;  %v5586_v39 = vmax.f32 %v5530_v52, 0.0 }
 0x5a5   : > { %v6754_v41 = vpop.f32.mrf.mxu0 }
 0x5a6   : > { %v5533_v51 = vadd.f32 %v6754_v41, %v6364_v63  ;;  %v5584_v21 = vmax.f32 %v5522_v18, 0.0 }
 0x5a7   : > { %v5524_v47 = vpop.f32.mrf.mxu0 }
 0x5a8   : > { %v5525_v10 = vadd.f32 %v6364_v63, %v5524_v47  ;;  %v5587_v25 = vmax.f32 %v5533_v51, 0.0 }
 0x5a9   : > { %v6757_v59 = vpop.f32.mrf.mxu0 }
 0x5aa   : > { %v5585_v3 = vmax.f32 %v5525_v10, 0.0  ;;  %v5601_v4 = vpack.c.bf16 %v5587_v25, %v5586_v39  ;;  %v5546_v53 = vadd.f32 %v6757_v59, %v6364_v63 }
 0x5ab   : > { %v5537_v26 = vpop.f32.mrf.mxu0 }
 0x5ac   : > { %v5600_v9 = vpack.c.bf16 %v5585_v3, %v5584_v21  ;;  %v5538_v2 = vadd.f32 %v6364_v63, %v5537_v26  ;;  %v5590_v14 = vmax.f32 %v5546_v53, 0.0 }
 0x5ad   : > { %v6758_v28 = vpop.f32.mrf.mxu0 }
 0x5ae   : > { %v5549_v46 = vadd.f32 %v6758_v28, %v6364_v63  ;;  %6783 = vmatprep.mubr.bf16.mxu1 %v5600_v9  ;;  %v5588_v24 = vmax.f32 %v5538_v2, 0.0 }
 0x5af   : > { %v5540_v54 = vpop.f32.mrf.mxu0  ;;  %6784 = vmatmul.mubr.bf16.vlgmr.msra.gmra.mxu1 %v5601_v4 }
 0x5b0   : > { %v5541_v0 = vadd.f32 %v6364_v63, %v5540_v54  ;;  %v5591_v23 = vmax.f32 %v5549_v46, 0.0 }
 0x5b1   : > { %v6761_v61 = vpop.f32.mrf.mxu0 }
 0x5b2   : > { %v5589_v38 = vmax.f32 %v5541_v0, 0.0  ;;  %v5603_v29 = vpack.c.bf16 %v5591_v23, %v5590_v14  ;;  %v5562_v32 = vadd.f32 %v6761_v61, %v6364_v63 }
 0x5b3   : > { %v5553_v60 = vpop.f32.mrf.mxu0 }
 0x5b4   : > { %v5602_v13 = vpack.c.bf16 %v5589_v38, %v5588_v24  ;;  %v5554_v34 = vadd.f32 %v6364_v63, %v5553_v60  ;;  %v5594_v12 = vmax.f32 %v5562_v32, 0.0 }
 0x5b5   : > { %v6762_v22 = vpop.f32.mrf.mxu0 }
 0x5b6   : > { %v5565_v45 = vadd.f32 %v6762_v22, %v6364_v63  ;;  %6787 = vmatprep.mubr.bf16.mxu1 %v5602_v13  ;;  %v5592_v35 = vmax.f32 %v5554_v34, 0.0 }
 0x5b7   : > { %v5556_v5 = vpop.f32.mrf.mxu0  ;;  %6788 = vmatmul.mubr.bf16.gmra.mxu1 %v5603_v29 }
 0x5b8   : > { %v5557_v36 = vadd.f32 %v6364_v63, %v5556_v5  ;;  %v5595_v58 = vmax.f32 %v5565_v45, 0.0 }
 0x5b9   : > { %v6765_v50 = vpop.f32.mrf.mxu0 }
 0x5ba   : > { %v5593_v62 = vmax.f32 %v5557_v36, 0.0  ;;  %v5605_v15 = vpack.c.bf16 %v5595_v58, %v5594_v12  ;;  %v5578_v16 = vadd.f32 %v6765_v50, %v6364_v63 }
 0x5bb   : > { %v5569_v40 = vpop.f32.mrf.mxu0 }
 0x5bc   : > { %v5604_v37 = vpack.c.bf16 %v5593_v62, %v5592_v35  ;;  %v5570_v7 = vadd.f32 %v6364_v63, %v5569_v40  ;;  %v5598_v27 = vmax.f32 %v5578_v16, 0.0 }
 0x5bd   : > { %v6766_v43 = vpop.f32.mrf.mxu0 }
 0x5be   : > { %v5581_v11 = vadd.f32 %v6766_v43, %v6364_v63  ;;  %6791 = vmatprep.mubr.bf16.mxu1 %v5604_v37  ;;  %v5596_v57 = vmax.f32 %v5570_v7, 0.0 }
 0x5bf   : > { %v5572_v33 = vpop.f32.mrf.mxu0  ;;  %6792 = vmatmul.mubr.bf16.gmra.mxu1 %v5605_v15 }
 0x5c0   : > { %v5573_v42 = vadd.f32 %v6364_v63, %v5572_v33  ;;  %v5599_v1 = vmax.f32 %v5581_v11, 0.0 }
 0x5c2   : > { %v5597_v8 = vmax.f32 %v5573_v42, 0.0  ;;  %v5607_v17 = vpack.c.bf16 %v5599_v1, %v5598_v27 }
 0x5c4   : > { %v5606_v44 = vpack.c.bf16 %v5597_v8, %v5596_v57 }
 0x5c6   : > { %6795 = vmatprep.mubr.bf16.mxu1 %v5606_v44 }
 0x5c7   : > { %6796 = vmatmul.mubr.bf16.gmra.mxu1 %v5607_v17 }
 0x66f   : > { %v6785_v19 = vpop.f32.mrf.mxu1 }
 0x670   : > { %v5722_v55 = vadd.f32 %v6785_v19, %v6373_v6 }
 0x671   : > { %v5713_v30 = vpop.f32.mrf.mxu1 }
 0x672   : > { %v5714_v48 = vadd.f32 %v6373_v6, %v5713_v30 }
 0x673   : > { %v6786_v31 = vpop.f32.mrf.mxu1 }
 0x674   : > { %v5725_v56 = vadd.f32 %v6786_v31, %v6373_v6 }
 0x675   : > { %v5716_v49 = vpop.f32.mrf.mxu1 }
 0x676   : > { %v6442_v20 = vpack.c.bf16 %v5725_v56, %v5722_v55  ;;  %v5717_v63 = vadd.f32 %v6373_v6, %v5716_v49 }
 0x677   : > { %v6789_v41 = vpop.f32.mrf.mxu1 }
 0x678   : > { %6474 = vst [vmem:[%s9594_s28 + $0x8] sm:$0xff] %v6442_v20   ;;  %v6437_v18 = vpack.c.bf16 %v5717_v63, %v5714_v48  ;;  %v5738_v47 = vadd.f32 %v6789_v41, %v6373_v6 }
 0x679   : > { %v5729_v51 = vpop.f32.mrf.mxu1 }
 0x67a   : > { %6438 = vst [vmem:[%s9594_s28] sm:$0xff] %v6437_v18   ;;  %v5730_v59 = vadd.f32 %v6373_v6, %v5729_v51 }
 0x67b   : > { %v6790_v52 = vpop.f32.mrf.mxu1 }
 0x67c   : > { %v5741_v10 = vadd.f32 %v6790_v52, %v6373_v6 }
 0x67d   : > { %v5732_v25 = vpop.f32.mrf.mxu1 }
 0x67e   : > { %v6452_v21 = vpack.c.bf16 %v5741_v10, %v5738_v47  ;;  %v5733_v3 = vadd.f32 %v6373_v6, %v5732_v25 }
 0x67f   : > { %v6793_v39 = vpop.f32.mrf.mxu1 }
 0x680   : > { %6476 = vst [vmem:[%s9594_s28 + $0x18] sm:$0xff] %v6452_v21   ;;  %v6447_v26 = vpack.c.bf16 %v5733_v3, %v5730_v59  ;;  %v5754_v28 = vadd.f32 %v6793_v39, %v6373_v6 }
 0x681   : > { %v5745_v9 = vpop.f32.mrf.mxu1 }
 0x682   : > { %6475 = vst [vmem:[%s9594_s28 + $0x10] sm:$0xff] %v6447_v26   ;;  %v5746_v53 = vadd.f32 %v6373_v6, %v5745_v9 }
 0x683   : > { %v6794_v4 = vpop.f32.mrf.mxu1 }
 0x684   : > { %v5757_v2 = vadd.f32 %v6794_v4, %v6373_v6 }
 0x685   : > { %v5748_v46 = vpop.f32.mrf.mxu1 }
 0x686   : > { %v6462_v54 = vpack.c.bf16 %v5757_v2, %v5754_v28  ;;  %v5749_v0 = vadd.f32 %v6373_v6, %v5748_v46 }
 0x687   : > { %v6797_v23 = vpop.f32.mrf.mxu1 }
 0x688   : > { %6478 = vst [vmem:[%s9594_s28 + $0x28] sm:$0xff] %v6462_v54   ;;  %v6457_v61 = vpack.c.bf16 %v5749_v0, %v5746_v53  ;;  %v5770_v14 = vadd.f32 %v6797_v23, %v6373_v6 }
 0x689   : > { %v5761_v24 = vpop.f32.mrf.mxu1 }
 0x68a   : > { %6477 = vst [vmem:[%s9594_s28 + $0x20] sm:$0xff] %v6457_v61   ;;  %v5762_v29 = vadd.f32 %v6373_v6, %v5761_v24 }
 0x68b   : > { %v6798_v38 = vpop.f32.mrf.mxu1 }
 0x68c   : > { %v5773_v60 = vadd.f32 %v6798_v38, %v6373_v6 }
 0x68d   : > { %v5764_v13 = vpop.f32.mrf.mxu1 }
 0x68e   : > { %v6472_v22 = vpack.c.bf16 %v5773_v60, %v5770_v14  ;;  %v5765_v34 = vadd.f32 %v6373_v6, %v5764_v13  ;;  %5862 = sbr.rel (!%p7357_p4) target bundleno = 1732 (0x6c4), region = 96 }
 0x690   : > { %6480 = vst [vmem:[%s9594_s28 + $0x38] sm:$0xff] %v6472_v22   ;;  %v6467_v45 = vpack.c.bf16 %v5765_v34, %v5762_v29 }
 0x692   : > { %6479 = vst [vmem:[%s9594_s28 + $0x30] sm:$0xff] %v6467_v45  }
 0x693   : > { %s9930_s27 = smov (!%p5865_p8, %s5864_s27), 16 }
 0x694   : > { %s6400_s26 = sshll.u32 %s9930_s27, 6 }
 0x695   : > { %p6403_p9 = scmp.eq.s32.totalorder %s6400_s26, 0 }
 0x696   : > { %s9617_s29 = sshrl.u32 (!%p6403_p9), %s9930_s27, 4 }
 0x697   : > { %5873 = sbr.rel (%p6403_p9) target bundleno = 1732 (0x6c4), region = 100  ;;  %p6404_p10 = scmp.le.s32.totalorder (!%p6403_p9), %s9617_s29, 0 }
 0x69c   : > { %6100 = sbr.rel (%p6404_p10) target bundleno = 1715 (0x6b3), region = 178  ;;  %s9923_s30 = smov (!%p6404_p10), %s9611_s23 }
 0x69d   : > { %s9924_s21 = smov (!%p6404_p10), %s9594_s28  ;;  %s9626_s22 = smov (!%p6404_p10), 0  }
 0x69e   : > { %s9628_s19 = smov (!%p6404_p10), 0  }
 0x6a1 LB: >> { %v5890_v32 = vld [vmem:[%s7203_s21] sm:$0xf]  ;;  %v5892_v5 = vld [vmem:[%s7203_s21 + $0x4] sm:$0xf]  ;;  %v5894_v36 = vld [vmem:[%s7203_s21 + $0x8] sm:$0xf]  ;;  %s7211_s19 = sphi %s9628_s19, %s5884_s19   ;;  %s7207_s22 = sphi %s9626_s22, %s9925_s22   ;;  %s7203_s21 = sphi %s9924_s21, %s5927_s21   ;;  %s7199_s30 = sphi %s9923_s30, %s5928_s30  }
 0x6a2   : >> { %5891 = vst [vmem:[%s7199_s30] sm:$0xf] %v5890_v32  ;;  %5893 = vst [vmem:[%s7199_s30 + $0x4] sm:$0xf] %v5892_v5  ;;  %v5896_v58 = vld [vmem:[%s7203_s21 + $0xc] sm:$0xf]  ;;  %s5922_s1 = sadd.s32 1, %s7207_s22 }
 0x6a3   : >> { %5895 = vst [vmem:[%s7199_s30 + $0x8] sm:$0xf] %v5894_v36  ;;  %v5898_v50 = vld [vmem:[%s7203_s21 + $0x10] sm:$0xf]  ;;  %v5900_v35 = vld [vmem:[%s7203_s21 + $0x14] sm:$0xf]  ;;  %p5923_p11 = scmp.ge.s32.totalorder %s5922_s1, %s9617_s29 }
 0x6a4   : >> { %5897 = vst [vmem:[%s7199_s30 + $0xc] sm:$0xf] %v5896_v58  ;;  %5899 = vst [vmem:[%s7199_s30 + $0x10] sm:$0xf] %v5898_v50  ;;  %v5902_v62 = vld [vmem:[%s7203_s21 + $0x18] sm:$0xf] }
 0x6a5   : >> { %5901 = vst [vmem:[%s7199_s30 + $0x14] sm:$0xf] %v5900_v35  ;;  %v5904_v12 = vld [vmem:[%s7203_s21 + $0x1c] sm:$0xf]  ;;  %v5906_v40 = vld [vmem:[%s7203_s21 + $0x20] sm:$0xf] }
 0x6a6   : >> { %5903 = vst [vmem:[%s7199_s30 + $0x18] sm:$0xf] %v5902_v62  ;;  %5905 = vst [vmem:[%s7199_s30 + $0x1c] sm:$0xf] %v5904_v12  ;;  %v5908_v37 = vld [vmem:[%s7203_s21 + $0x24] sm:$0xf] }
 0x6a7   : >> { %5907 = vst [vmem:[%s7199_s30 + $0x20] sm:$0xf] %v5906_v40  ;;  %v5910_v15 = vld [vmem:[%s7203_s21 + $0x28] sm:$0xf]  ;;  %v5912_v43 = vld [vmem:[%s7203_s21 + $0x2c] sm:$0xf] }
 0x6a8   : >> { %5909 = vst [vmem:[%s7199_s30 + $0x24] sm:$0xf] %v5908_v37  ;;  %5911 = vst [vmem:[%s7199_s30 + $0x28] sm:$0xf] %v5910_v15  ;;  %v5914_v7 = vld [vmem:[%s7203_s21 + $0x30] sm:$0xf] }
 0x6a9   : >> { %5913 = vst [vmem:[%s7199_s30 + $0x2c] sm:$0xf] %v5912_v43  ;;  %v5916_v11 = vld [vmem:[%s7203_s21 + $0x34] sm:$0xf]  ;;  %v5918_v16 = vld [vmem:[%s7203_s21 + $0x38] sm:$0xf] }
 0x6aa   : >> { %5915 = vst [vmem:[%s7199_s30 + $0x30] sm:$0xf] %v5914_v7  ;;  %5917 = vst [vmem:[%s7199_s30 + $0x34] sm:$0xf] %v5916_v11  ;;  %v5920_v33 = vld [vmem:[%s7203_s21 + $0x3c] sm:$0xf] }
 0x6ab   : >> { %5919 = vst [vmem:[%s7199_s30 + $0x38] sm:$0xf] %v5918_v16  ;;  %5921 = vst [vmem:[%s7199_s30 + $0x3c] sm:$0xf] %v5920_v33  ;;  %s9932_s1 = smov (%p5923_p11, %s5922_s1), 0  ;;  %s5884_s19 = sadd.s32 1, %s7211_s19  }
 0x6ac   : >> { %s6405_s24 = sshll.u32 %s9932_s1, 6  ;;  %p5883_p12 = scmp.ge.s32.totalorder %s5884_s19, %s9617_s29 }
 0x6ad   : >> { %s5927_s21 = scalar_lea.vmem %s9594_s28, %s6405_s24 [#allocation2]   ;;  %s5928_s30 = scalar_lea.vmem %s9611_s23, %s6405_s24  }
 0x6ae   : >> { %s9925_s22 = smov %s9932_s1  ;;  %5886 = sbr.rel (!%p5883_p12) target bundleno = 1697 (0x6a1), region = 184 }
 0x6b3 PF: > { %s9689_s25 = sand.u32 15, %s9930_s27   ;;  %s6432_s0 = sshll.u32 %s9617_s29, 6 }
 0x6b4   : > { %s5933_s18 = scalar_lea.vmem %s9594_s28, %s6432_s0 [#allocation2]   ;;  %s5935_s20 = scalar_lea.vmem %s9611_s23, %s6432_s0  }
 0x6b5   : > { %p6410_p13 = scmp.le.s32.totalorder %s9689_s25, 0 }
 0x6b6   : > { %s7213_s2 = smov (!%p6410_p13), %s5935_s20   ;;  %s7217_s26 = smov (!%p6410_p13), %s5933_s18  }
 0x6b7   : > { %6114 = sbr.rel (%p6410_p13) target bundleno = 1732 (0x6c4), region = 189  ;;  %s7221_s24 = smov (!%p6410_p13), 0  }
 0x6b8   : > { %s7225_s1 = smov (!%p6410_p13), 0  }
 0x6bc LB: >> { %v5945_v42 = vld [vmem:[%s7219_s26] sm:$0xf]  ;;  %s5947_s27 = sadd.s32 1, %s7223_s24  ;;  %s5939_s1 = sadd.s32 1, %s7227_s1   ;;  %s7227_s1 = sphi %s7225_s1, %s5939_s1   ;;  %s7223_s24 = sphi %s7221_s24, %s7222_s24   ;;  %s7219_s26 = sphi %s7217_s26, %s5952_s26   ;;  %s7215_s2 = sphi %s7213_s2, %s5953_s2  }
 0x6bd   : >> { %5946 = vst [vmem:[%s7215_s2] sm:$0xf] %v5945_v42  ;;  %p5948_p0 = scmp.ge.s32.totalorder %s5947_s27, %s9689_s25  ;;  %p5938_p1 = scmp.ge.s32.totalorder %s5939_s1, %s9689_s25 }
 0x6bf   : >> { %s9934_s27 = smov (%p5948_p0, %s5947_s27), 0  ;;  %5941 = sbr.rel (!%p5938_p1) target bundleno = 1724 (0x6bc), region = 195 }
 0x6c0   : >> { %s6411_s28 = sshll.u32 %s9934_s27, 2  ;;  %s7222_s24 = smov %s9934_s27  }
 0x6c1   : >> { %s5952_s26 = scalar_lea.vmem %s5933_s18, %s6411_s28 [#allocation2]   ;;  %s5953_s2 = scalar_lea.vmem %s5935_s20, %s6411_s28  }
 0x6c4 PF: > { %s9926_s29 = sld [smem:[#allocation4_spill]] }
 0x6c5   : > { %s9927_s27 = sld [smem:[#allocation3_spill]] }
 0x6c6   : > { %s9928_s28 = sld [smem:[#allocation5_spill]] }
 0x6ca   : > { %p25_p2 = scmp.ge.s32.totalorder %s9926_s29, 4  }
 0x6cc   :  { %27 = sbr.rel (!%p25_p2) target bundleno = 7 (0x7), region = 206 }

</bundles_post_ra>
